<compile_context>
chip_gen: v7x
topology: tpu7x:2x2x1
jax: 0.10.0
libtpu: 0.0.40
codegen_flags: <defaults>
</compile_context>

<pallas_src>
import math

import jax
import jax.numpy as jnp
from jax import lax
from jax.experimental import pallas as pl
from jax.experimental.pallas import tpu as pltpu

# ---- model hyper-parameters (small, consistent with the module defaults) ----
D_MODEL = 32          # encoder_output_size / attention_dim
N_HEADS = 4           # attention_heads
D_HEAD = D_MODEL // N_HEADS
FFN_DIM = 64          # linear_units (small for the demo)
VOCAB = 50            # vocab_size
LANE = 128
VOCAB_PAD = LANE      # logits padded to a full 128-lane register
QKV_PAD = LANE        # fused Wq|Wk|Wv output dim (3*D = 96) padded to 128
KV_PAD = LANE         # fused Wk|Wv output dim (2*D = 64) padded to 128
FFN_PAD = LANE        # FFN hidden dim (64) padded to 128
N_BLOCKS = 2          # num_blocks (small for the demo)
LN_EPS = 1e-12        # ESPnet LayerNorm default eps
NEG_INF = float(jnp.finfo(jnp.float32).min)
INV_SQRT_DH = 1.0 / math.sqrt(D_HEAD)


# ----------------------------- kernel helpers -------------------------------
def _layer_norm(x, g, b):
    mu = jnp.mean(x, axis=-1, keepdims=True)
    var = jnp.mean((x - mu) ** 2, axis=-1, keepdims=True)
    return (x - mu) * lax.rsqrt(var + LN_EPS) * g + b


def _attention(q, k, v, valid, has_key, w_o, b_o):
    """Heads-batched attention for one batch element.

    q: (Tq, D) already scaled by 1/sqrt(d_head); k, v: (Tk, D);
    valid: bool (Tq, Tk) or (1, Tk); has_key: scalar bool (length > 0) guard
    for fully-masked rows; w_o: (D, D); b_o: (1, D).
    """
    # split heads once; einsums below are batched over the leading head axis
    qh = jnp.stack([q[:, h * D_HEAD:(h + 1) * D_HEAD] for h in range(N_HEADS)], axis=0)
    kh = jnp.stack([k[:, h * D_HEAD:(h + 1) * D_HEAD] for h in range(N_HEADS)], axis=0)
    vh = jnp.stack([v[:, h * D_HEAD:(h + 1) * D_HEAD] for h in range(N_HEADS)], axis=0)

    s = jnp.einsum("hqd,hkd->hqk", qh, kh, preferred_element_type=jnp.float32)
    s = jnp.where(valid[None, :, :], s, NEG_INF)
    # ONE softmax chain over all heads (max/exp/sum/reciprocal on (H, Tq, Tk))
    m = jnp.max(s, axis=-1, keepdims=True)
    e = jnp.exp(s - m)          # masked keys underflow to exact 0 when any key is valid
    inv = pl.reciprocal(jnp.sum(e, axis=-1, keepdims=True), approx=True)
    attn = e * inv

    ctx = jnp.einsum("hqk,hkd->hqd", attn, vh, preferred_element_type=jnp.float32)
    # head concat along lanes -> ONE (Tq, D) x (D, D) output projection
    ctx = jnp.concatenate([ctx[h] for h in range(N_HEADS)], axis=-1)
    # fully-masked-row guard (== reference post-softmax zero-fill when len == 0)
    ctx = jnp.where(has_key, ctx, 0.0)
    return jnp.dot(ctx, w_o, preferred_element_type=jnp.float32) + b_o


# ------------------------------ fused kernel ---------------------------------
def fused_decoder_kernel(hlens_ref, ylens_ref,                    # SMEM scalars
                         x_ref, mem_ref,
                         ln_g_ref, ln_b_ref,
                         sa_qkv_w_ref, sa_qkv_b_ref, sa_o_w_ref, sa_o_b_ref,
                         ca_q_w_ref, ca_q_b_ref, ca_kv_w_ref, ca_kv_b_ref,
                         ca_o_w_ref, ca_o_b_ref,
                         w1_ref, b1_ref, w2_ref, b2_ref,
                         fin_g_ref, fin_b_ref, out_w_ref, out_b_ref,
                         out_ref):
    b = pl.program_id(0)
    T = x_ref.shape[1]
    S = mem_ref.shape[1]
    D = D_MODEL

    y_len = ylens_ref[b]
    h_len = hlens_ref[b]

    # masks built from two SMEM scalars with one broadcast compare each
    col_t = lax.broadcasted_iota(jnp.int32, (T, T), 1)
    row_t = lax.broadcasted_iota(jnp.int32, (T, T), 0)
    tgt_valid = jnp.logical_and(col_t < y_len, col_t <= row_t)      # (T, T)
    mem_valid = lax.broadcasted_iota(jnp.int32, (1, S), 1) < h_len  # (1, S)
    tgt_has = y_len > 0
    mem_has = h_len > 0

    x = x_ref[0]          # (T, D) residual stream stays 2-D the whole kernel
    mem = mem_ref[0]      # (S, D)

    for l in range(N_BLOCKS):                    # static unroll over layers
        ln_g = ln_g_ref[l]
        ln_b = ln_b_ref[l]

        # --- self-attention (pre-LN + residual); fused QKV matmul ------------
        t = _layer_norm(x, ln_g[0], ln_b[0])
        qkv = (jnp.dot(t, sa_qkv_w_ref[l], preferred_element_type=jnp.float32)
               + sa_qkv_b_ref[l])
        q = qkv[:, 0 * D:1 * D] * INV_SQRT_DH
        k = qkv[:, 1 * D:2 * D]
        v = qkv[:, 2 * D:3 * D]
        x = x + _attention(q, k, v, tgt_valid, tgt_has,
                           sa_o_w_ref[l], sa_o_b_ref[l])

        # --- source (cross) attention; fused KV matmul on memory ------------
        t = _layer_norm(x, ln_g[1], ln_b[1])
        q = (jnp.dot(t, ca_q_w_ref[l], preferred_element_type=jnp.float32)
             + ca_q_b_ref[l]) * INV_SQRT_DH
        kv = (jnp.dot(mem, ca_kv_w_ref[l], preferred_element_type=jnp.float32)
              + ca_kv_b_ref[l])
        k = kv[:, 0 * D:1 * D]
        v = kv[:, 1 * D:2 * D]
        x = x + _attention(q, k, v, mem_valid, mem_has,
                           ca_o_w_ref[l], ca_o_b_ref[l])

        # --- position-wise feed-forward (hidden padded to 128 lanes) --------
        t = _layer_norm(x, ln_g[2], ln_b[2])
        h = jnp.maximum(
            jnp.dot(t, w1_ref[l], preferred_element_type=jnp.float32) + b1_ref[l],
            0.0)
        x = x + jnp.dot(h, w2_ref[l], preferred_element_type=jnp.float32) + b2_ref[l]

    # after_norm + output projection (vocab padded to a lane-dense 128 store)
    xn = _layer_norm(x, fin_g_ref[...], fin_b_ref[...])
    logits = (jnp.dot(xn, out_w_ref[...], preferred_element_type=jnp.float32)
              + out_b_ref[...])
    out_ref[0] = logits


# ------------------------------- wrapper --------------------------------------
def transformer_decoder_forward(params, hs_pad, hlens, ys_in_pad, ys_in_lens):
    B, T = ys_in_pad.shape
    S = hs_pad.shape[1]

    # Embedding gather + sinusoidal positional encoding (glue, not the hot path).
    x = params["embed"][ys_in_pad] * math.sqrt(D_MODEL) \
        + positional_encoding(T, D_MODEL)[None]

    def pad_last(a, width):
        return jnp.pad(a, [(0, 0)] * (a.ndim - 1) + [(0, width - a.shape[-1])])

    # Fuse Wq|Wk|Wv (self) / Wk|Wv (cross) column-wise, zero-pad every matmul
    # output dim to 128 lanes, and stack layers on a leading axis (VMEM-resident).
    sa_qkv_w, sa_qkv_b, sa_o_w, sa_o_b = [], [], [], []
    ca_q_w, ca_q_b, ca_kv_w, ca_kv_b, ca_o_w, ca_o_b = [], [], [], [], [], []
    w1, b1, w2, b2, ln_g, ln_b = [], [], [], [], [], []
    for lp in params["layers"]:
        sa_qkv_w.append(pad_last(
            jnp.concatenate([lp["sa_w"][0], lp["sa_w"][1], lp["sa_w"][2]], axis=1), QKV_PAD))
        sa_qkv_b.append(pad_last(
            jnp.concatenate([lp["sa_b"][0], lp["sa_b"][1], lp["sa_b"][2]], axis=1), QKV_PAD))
        sa_o_w.append(lp["sa_w"][3]); sa_o_b.append(lp["sa_b"][3])
        ca_q_w.append(lp["ca_w"][0]); ca_q_b.append(lp["ca_b"][0])
        ca_kv_w.append(pad_last(
            jnp.concatenate([lp["ca_w"][1], lp["ca_w"][2]], axis=1), KV_PAD))
        ca_kv_b.append(pad_last(
            jnp.concatenate([lp["ca_b"][1], lp["ca_b"][2]], axis=1), KV_PAD))
        ca_o_w.append(lp["ca_w"][3]); ca_o_b.append(lp["ca_b"][3])
        w1.append(pad_last(lp["w1"], FFN_PAD))
        b1.append(pad_last(lp["b1"], FFN_PAD))
        w2.append(jnp.pad(lp["w2"], [(0, FFN_PAD - FFN_DIM), (0, 0)]))
        b2.append(lp["b2"])
        ln_g.append(lp["ln_g"]); ln_b.append(lp["ln_b"])
    stk = jnp.stack

    out_w = pad_last(params["out_w"], VOCAB_PAD)
    out_b = pad_last(params["out_b"], VOCAB_PAD)

    tensor_inputs = (
        x, hs_pad,
        stk(ln_g), stk(ln_b),
        stk(sa_qkv_w), stk(sa_qkv_b), stk(sa_o_w), stk(sa_o_b),
        stk(ca_q_w), stk(ca_q_b), stk(ca_kv_w), stk(ca_kv_b),
        stk(ca_o_w), stk(ca_o_b),
        stk(w1), stk(b1), stk(w2), stk(b2),
        params["final_g"], params["final_b"], out_w, out_b,
    )

    def bcast_spec(shape):
        nd = len(shape)
        return pl.BlockSpec(shape, lambda b, *_: (0,) * nd)

    in_specs = [
        pl.BlockSpec((1, T, D_MODEL), lambda b, *_: (b, 0, 0)),   # x: one batch row / step
        pl.BlockSpec((1, S, D_MODEL), lambda b, *_: (b, 0, 0)),   # encoder memory
    ] + [bcast_spec(a.shape) for a in tensor_inputs[2:]]

    # explicit VMEM budget sized from the actual weight + activation footprint
    out_bytes = B * T * VOCAB_PAD * 4
    total_bytes = sum(int(a.size) * a.dtype.itemsize for a in tensor_inputs) + out_bytes
    vmem_limit = int(min(64 << 20, max(16 << 20, 2 * total_bytes + (2 << 20))))

    logits_pad = pl.pallas_call(
        fused_decoder_kernel,
        out_shape=jax.ShapeDtypeStruct((B, T, VOCAB_PAD), jnp.float32),
        grid_spec=pltpu.PrefetchScalarGridSpec(
            num_scalar_prefetch=2,                 # hlens, ys_in_lens -> SMEM
            grid=(B,),                             # batch axis (megacore-parallel)
            in_specs=in_specs,
            out_specs=pl.BlockSpec((1, T, VOCAB_PAD), lambda b, *_: (b, 0, 0)),
        ),
        compiler_params=pltpu.CompilerParams(
            dimension_semantics=("parallel",),
            vmem_limit_bytes=vmem_limit),
    )(hlens.astype(jnp.int32), ys_in_lens.astype(jnp.int32), *tensor_inputs)

    return logits_pad[..., :VOCAB]


# ------------------------ parameters & glue (plain JAX) -----------------------
def init_params(key):
    keys = list(jax.random.split(key, 8 * N_BLOCKS + 8))
    kit = iter(keys)

    def w(shape, scale=0.02):
        return scale * jax.random.normal(next(kit), shape, jnp.float32)

    params = {
        "embed": w((VOCAB, D_MODEL), 1.0),
        "layers": [],
        "final_g": jnp.ones((1, D_MODEL), jnp.float32),
        "final_b": jnp.zeros((1, D_MODEL), jnp.float32),
        "out_w": w((D_MODEL, VOCAB)),
        "out_b": jnp.zeros((1, VOCAB), jnp.float32),
    }
    for _ in range(N_BLOCKS):
        params["layers"].append(dict(
            ln_g=jnp.ones((3, 1, D_MODEL), jnp.float32),
            ln_b=jnp.zeros((3, 1, D_MODEL), jnp.float32),
            sa_w=w((4, D_MODEL, D_MODEL)),
            sa_b=w((4, 1, D_MODEL)),
            ca_w=w((4, D_MODEL, D_MODEL)),
            ca_b=w((4, 1, D_MODEL)),
            w1=w((D_MODEL, FFN_DIM)),
            b1=w((1, FFN_DIM)),
            w2=w((FFN_DIM, D_MODEL)),
            b2=w((1, D_MODEL)),
        ))
    return params


def positional_encoding(T, d):
    pos = jnp.arange(T, dtype=jnp.float32)[:, None]
    i = jnp.arange(0, d, 2, dtype=jnp.float32)[None, :]
    div = jnp.exp(-i * (math.log(10000.0) / d))
    pe = jnp.zeros((T, d), jnp.float32)
    pe = pe.at[:, 0::2].set(jnp.sin(pos * div))
    pe = pe.at[:, 1::2].set(jnp.cos(pos * div))
    return pe


def make_masks(hlens, ys_in_lens, S, T):
    tgt_valid = jnp.arange(T)[None, :] < ys_in_lens[:, None]               # (B, T)
    causal = jnp.tril(jnp.ones((T, T), jnp.bool_))                          # subsequent_mask
    tgt_mask = (tgt_valid[:, None, :] & causal[None]).astype(jnp.float32)   # (B, T, T)
    mem_valid = jnp.arange(S)[None, :] < hlens[:, None]
    memory_mask = mem_valid[:, None, :].astype(jnp.float32)                 # (B, 1, S)
    return tgt_mask, memory_mask


# ---------------------------- pure-JAX reference ------------------------------
def reference_forward(params, hs_pad, hlens, ys_in_pad, ys_in_lens):
    B, T = ys_in_pad.shape
    S = hs_pad.shape[1]
    tgt_mask, memory_mask = make_masks(hlens, ys_in_lens, S, T)
    x = params["embed"][ys_in_pad] * math.sqrt(D_MODEL) \
        + positional_encoding(T, D_MODEL)[None]

    def mha(q_in, kv_in, w, b, mask):
        q = q_in @ w[0] + b[0]
        k = kv_in @ w[1] + b[1]
        v = kv_in @ w[2] + b[2]
        Bq, Tq, _ = q.shape
        Tk = kv_in.shape[1]
        q = q.reshape(Bq, Tq, N_HEADS, D_HEAD).transpose(0, 2, 1, 3)
        k = k.reshape(Bq, Tk, N_HEADS, D_HEAD).transpose(0, 2, 1, 3)
        v = v.reshape(Bq, Tk, N_HEADS, D_HEAD).transpose(0, 2, 1, 3)
        scores = jnp.einsum("bhqd,bhkd->bhqk", q, k) / math.sqrt(D_HEAD)
        m = mask[:, None, :, :] > 0
        scores = jnp.where(m, scores, NEG_INF)
        mx = jnp.max(scores, axis=-1, keepdims=True)
        e = jnp.exp(scores - mx)
        attn = e / jnp.sum(e, axis=-1, keepdims=True)
        attn = jnp.where(m, attn, 0.0)
        ctx = jnp.einsum("bhqk,bhkd->bhqd", attn, v)
        ctx = ctx.transpose(0, 2, 1, 3).reshape(Bq, Tq, D_MODEL)
        return ctx @ w[3] + b[3]

    for lp in params["layers"]:
        t = _layer_norm(x, lp["ln_g"][0], lp["ln_b"][0])
        x = x + mha(t, t, lp["sa_w"], lp["sa_b"], tgt_mask)
        t = _layer_norm(x, lp["ln_g"][1], lp["ln_b"][1])
        x = x + mha(t, hs_pad, lp["ca_w"], lp["ca_b"], memory_mask)
        t = _layer_norm(x, lp["ln_g"][2], lp["ln_b"][2])
        x = x + jnp.maximum(t @ lp["w1"] + lp["b1"], 0.0) @ lp["w2"] + lp["b2"]
    x = _layer_norm(x, params["final_g"], params["final_b"])
    return x @ params["out_w"] + params["out_b"]


# ----------------------------------- main -------------------------------------
if __name__ == "__main__":
    key = jax.random.PRNGKey(0)
    kp, kh, ky = jax.random.split(key, 3)
    B, S, T = 2, 16, 8
    params = init_params(kp)
    hs_pad = jax.random.normal(kh, (B, S, D_MODEL), jnp.float32)   # encoder memory
    hlens = jnp.array([16, 11], jnp.int32)
    ys_in_pad = jax.random.randint(ky, (B, T), 0, VOCAB, jnp.int32)
    ys_in_lens = jnp.array([8, 5], jnp.int32)

    out = transformer_decoder_forward(params, hs_pad, hlens, ys_in_pad, ys_in_lens)
    out = jax.block_until_ready(out)
    assert out.shape == (B, T, VOCAB), out.shape

    ref = reference_forward(params, hs_pad, hlens, ys_in_pad, ys_in_lens)
    max_err = float(jnp.max(jnp.abs(out - ref)))
    assert jnp.allclose(out, ref, rtol=2e-3, atol=2e-3), max_err

    print("KERNEL_OK")
</pallas_src>

<mosaic_0001>
module attributes {stable_mosaic.version = 11 : i64} {
  func.func @fused_decoder_kernel(%arg0: i32, %arg1: memref<2xi32, #tpu.memory_space<smem>>, %arg2: memref<2xi32, #tpu.memory_space<smem>>, %arg3: memref<1x8x32xf32, #tpu.memory_space<vmem>>, %arg4: memref<1x16x32xf32, #tpu.memory_space<vmem>>, %arg5: memref<2x3x1x32xf32, #tpu.memory_space<vmem>>, %arg6: memref<2x3x1x32xf32, #tpu.memory_space<vmem>>, %arg7: memref<2x32x128xf32, #tpu.memory_space<vmem>>, %arg8: memref<2x1x128xf32, #tpu.memory_space<vmem>>, %arg9: memref<2x32x32xf32, #tpu.memory_space<vmem>>, %arg10: memref<2x1x32xf32, #tpu.memory_space<vmem>>, %arg11: memref<2x32x32xf32, #tpu.memory_space<vmem>>, %arg12: memref<2x1x32xf32, #tpu.memory_space<vmem>>, %arg13: memref<2x32x128xf32, #tpu.memory_space<vmem>>, %arg14: memref<2x1x128xf32, #tpu.memory_space<vmem>>, %arg15: memref<2x32x32xf32, #tpu.memory_space<vmem>>, %arg16: memref<2x1x32xf32, #tpu.memory_space<vmem>>, %arg17: memref<2x32x128xf32, #tpu.memory_space<vmem>>, %arg18: memref<2x1x128xf32, #tpu.memory_space<vmem>>, %arg19: memref<2x128x32xf32, #tpu.memory_space<vmem>>, %arg20: memref<2x1x32xf32, #tpu.memory_space<vmem>>, %arg21: memref<1x32xf32, #tpu.memory_space<vmem>>, %arg22: memref<1x32xf32, #tpu.memory_space<vmem>>, %arg23: memref<32x128xf32, #tpu.memory_space<vmem>>, %arg24: memref<1x128xf32, #tpu.memory_space<vmem>>, %arg25: memref<1x8x128xf32, #tpu.memory_space<vmem>>) attributes {dimension_semantics = [#tpu.dimension_semantics<parallel>], iteration_bounds = array<i64: 2>, scalar_prefetch = 2 : i64, scratch_operands = 0 : i64, tpu.core_type = #tpu.core_type<tc>, window_params = [{transform_indices = @transform_0, window_bounds = array<i64: 1, 8, 32>}, {transform_indices = @transform_1, window_bounds = array<i64: 1, 16, 32>}, {pipeline_mode = #tpu.pipeline_mode<synchronous>, transform_indices = @transform_2, window_bounds = array<i64: 2, 3, 1, 32>}, {pipeline_mode = #tpu.pipeline_mode<synchronous>, transform_indices = @transform_3, window_bounds = array<i64: 2, 3, 1, 32>}, {pipeline_mode = #tpu.pipeline_mode<synchronous>, transform_indices = @transform_4, window_bounds = array<i64: 2, 32, 128>}, {pipeline_mode = #tpu.pipeline_mode<synchronous>, transform_indices = @transform_5, window_bounds = array<i64: 2, 1, 128>}, {pipeline_mode = #tpu.pipeline_mode<synchronous>, transform_indices = @transform_6, window_bounds = array<i64: 2, 32, 32>}, {pipeline_mode = #tpu.pipeline_mode<synchronous>, transform_indices = @transform_7, window_bounds = array<i64: 2, 1, 32>}, {pipeline_mode = #tpu.pipeline_mode<synchronous>, transform_indices = @transform_8, window_bounds = array<i64: 2, 32, 32>}, {pipeline_mode = #tpu.pipeline_mode<synchronous>, transform_indices = @transform_9, window_bounds = array<i64: 2, 1, 32>}, {pipeline_mode = #tpu.pipeline_mode<synchronous>, transform_indices = @transform_10, window_bounds = array<i64: 2, 32, 128>}, {pipeline_mode = #tpu.pipeline_mode<synchronous>, transform_indices = @transform_11, window_bounds = array<i64: 2, 1, 128>}, {pipeline_mode = #tpu.pipeline_mode<synchronous>, transform_indices = @transform_12, window_bounds = array<i64: 2, 32, 32>}, {pipeline_mode = #tpu.pipeline_mode<synchronous>, transform_indices = @transform_13, window_bounds = array<i64: 2, 1, 32>}, {pipeline_mode = #tpu.pipeline_mode<synchronous>, transform_indices = @transform_14, window_bounds = array<i64: 2, 32, 128>}, {pipeline_mode = #tpu.pipeline_mode<synchronous>, transform_indices = @transform_15, window_bounds = array<i64: 2, 1, 128>}, {pipeline_mode = #tpu.pipeline_mode<synchronous>, transform_indices = @transform_16, window_bounds = array<i64: 2, 128, 32>}, {pipeline_mode = #tpu.pipeline_mode<synchronous>, transform_indices = @transform_17, window_bounds = array<i64: 2, 1, 32>}, {pipeline_mode = #tpu.pipeline_mode<synchronous>, transform_indices = @transform_18, window_bounds = array<i64: 1, 32>}, {pipeline_mode = #tpu.pipeline_mode<synchronous>, transform_indices = @transform_19, window_bounds = array<i64: 1, 32>}, {pipeline_mode = #tpu.pipeline_mode<synchronous>, transform_indices = @transform_20, window_bounds = array<i64: 32, 128>}, {pipeline_mode = #tpu.pipeline_mode<synchronous>, transform_indices = @transform_21, window_bounds = array<i64: 1, 128>}, {transform_indices = @transform_22, window_bounds = array<i64: 1, 8, 128>}]} {
    %0 = arith.index_cast %arg0 : i32 to index
    %1 = memref.load %arg2[%0] : memref<2xi32, #tpu.memory_space<smem>>
    %2 = arith.index_cast %arg0 : i32 to index
    %3 = memref.load %arg1[%2] : memref<2xi32, #tpu.memory_space<smem>>
    %4 = tpu.iota {dimensions = array<i32: 1>} : vector<8x8xi32>
    %5 = tpu.iota {dimensions = array<i32: 0>} : vector<8x8xi32>
    %6 = vector.broadcast %1 : i32 to vector<8x8xi32>
    %7 = arith.cmpi slt, %4, %6 : vector<8x8xi32>
    %8 = arith.cmpi sle, %4, %5 : vector<8x8xi32>
    %9 = arith.andi %7, %8 : vector<8x8xi1>
    %10 = tpu.iota {dimensions = array<i32: 1>} : vector<1x16xi32>
    %11 = vector.broadcast %3 : i32 to vector<1x16xi32>
    %12 = arith.cmpi slt, %10, %11 : vector<1x16xi32>
    %c0_i32 = arith.constant 0 : i32
    %13 = arith.cmpi sgt, %1, %c0_i32 : i32
    %c0_i32_0 = arith.constant 0 : i32
    %14 = arith.cmpi sgt, %3, %c0_i32_0 : i32
    %c0 = arith.constant 0 : index
    %c0_1 = arith.constant 0 : index
    %c0_2 = arith.constant 0 : index
    %15 = vector.load %arg3[%c0, %c0_1, %c0_2] : memref<1x8x32xf32, #tpu.memory_space<vmem>>, vector<1x8x32xf32>
    %16 = vector.shape_cast %15 : vector<1x8x32xf32> to vector<8x32xf32>
    %c0_3 = arith.constant 0 : index
    %c0_4 = arith.constant 0 : index
    %c0_5 = arith.constant 0 : index
    %17 = vector.load %arg4[%c0_3, %c0_4, %c0_5] : memref<1x16x32xf32, #tpu.memory_space<vmem>>, vector<1x16x32xf32>
    %18 = vector.shape_cast %17 : vector<1x16x32xf32> to vector<16x32xf32>
    %c0_6 = arith.constant 0 : index
    %c0_7 = arith.constant 0 : index
    %c0_8 = arith.constant 0 : index
    %c0_9 = arith.constant 0 : index
    %19 = vector.load %arg5[%c0_6, %c0_7, %c0_8, %c0_9] : memref<2x3x1x32xf32, #tpu.memory_space<vmem>>, vector<1x3x1x32xf32>
    %20 = vector.shape_cast %19 : vector<1x3x1x32xf32> to vector<3x1x32xf32>
    %c0_10 = arith.constant 0 : index
    %c0_11 = arith.constant 0 : index
    %c0_12 = arith.constant 0 : index
    %c0_13 = arith.constant 0 : index
    %21 = vector.load %arg6[%c0_10, %c0_11, %c0_12, %c0_13] : memref<2x3x1x32xf32, #tpu.memory_space<vmem>>, vector<1x3x1x32xf32>
    %22 = vector.shape_cast %21 : vector<1x3x1x32xf32> to vector<3x1x32xf32>
    %23 = vector.extract_strided_slice %20 {offsets = [0, 0, 0], sizes = [1, 1, 32], strides = [1, 1, 1]} : vector<3x1x32xf32> to vector<1x1x32xf32>
    %24 = vector.shape_cast %23 : vector<1x1x32xf32> to vector<1x32xf32>
    %25 = vector.extract_strided_slice %22 {offsets = [0, 0, 0], sizes = [1, 1, 32], strides = [1, 1, 1]} : vector<3x1x32xf32> to vector<1x1x32xf32>
    %26 = vector.shape_cast %25 : vector<1x1x32xf32> to vector<1x32xf32>
    %cst = arith.constant dense<0.000000e+00> : vector<8xf32>
    %27 = vector.multi_reduction <add>, %16, %cst [1] : vector<8x32xf32> to vector<8xf32>
    %28 = vector.shape_cast %27 : vector<8xf32> to vector<8x1xf32>
    %cst_14 = arith.constant 3.200000e+01 : f32
    %29 = vector.broadcast %cst_14 : f32 to vector<8x1xf32>
    %30 = arith.divf %28, %29 : vector<8x1xf32>
    %31 = vector.broadcast %30 : vector<8x1xf32> to vector<8x32xf32>
    %32 = arith.subf %16, %31 : vector<8x32xf32>
    %33 = arith.mulf %32, %32 : vector<8x32xf32>
    %cst_15 = arith.constant dense<0.000000e+00> : vector<8xf32>
    %34 = vector.multi_reduction <add>, %33, %cst_15 [1] : vector<8x32xf32> to vector<8xf32>
    %35 = vector.shape_cast %34 : vector<8xf32> to vector<8x1xf32>
    %cst_16 = arith.constant 3.200000e+01 : f32
    %36 = vector.broadcast %cst_16 : f32 to vector<8x1xf32>
    %37 = arith.divf %35, %36 : vector<8x1xf32>
    %38 = vector.broadcast %30 : vector<8x1xf32> to vector<8x32xf32>
    %39 = arith.subf %16, %38 : vector<8x32xf32>
    %cst_17 = arith.constant 9.99999996E-13 : f32
    %40 = vector.broadcast %cst_17 : f32 to vector<8x1xf32>
    %41 = arith.addf %37, %40 : vector<8x1xf32>
    %42 = math.rsqrt %41 : vector<8x1xf32>
    %43 = vector.broadcast %42 : vector<8x1xf32> to vector<8x32xf32>
    %44 = arith.mulf %39, %43 : vector<8x32xf32>
    %45 = vector.broadcast %24 : vector<1x32xf32> to vector<8x32xf32>
    %46 = arith.mulf %44, %45 : vector<8x32xf32>
    %47 = vector.broadcast %26 : vector<1x32xf32> to vector<8x32xf32>
    %48 = arith.addf %46, %47 : vector<8x32xf32>
    %c0_18 = arith.constant 0 : index
    %c0_19 = arith.constant 0 : index
    %c0_20 = arith.constant 0 : index
    %49 = vector.load %arg7[%c0_18, %c0_19, %c0_20] : memref<2x32x128xf32, #tpu.memory_space<vmem>>, vector<1x32x128xf32>
    %50 = vector.shape_cast %49 : vector<1x32x128xf32> to vector<32x128xf32>
    %cst_21 = arith.constant dense<0.000000e+00> : vector<8x128xf32>
    %51 = tpu.matmul %48, %50, %cst_21 {dimension_numbers = #tpu.dot_dimension_numbers<[1], [0], [0], [1], [0, 0, 1, 1], [], []>} : vector<8x32xf32>, vector<32x128xf32>, vector<8x128xf32> -> vector<8x128xf32>
    %c0_22 = arith.constant 0 : index
    %c0_23 = arith.constant 0 : index
    %c0_24 = arith.constant 0 : index
    %52 = vector.load %arg8[%c0_22, %c0_23, %c0_24] : memref<2x1x128xf32, #tpu.memory_space<vmem>>, vector<1x1x128xf32>
    %53 = vector.shape_cast %52 : vector<1x1x128xf32> to vector<1x128xf32>
    %54 = vector.broadcast %53 : vector<1x128xf32> to vector<8x128xf32>
    %55 = arith.addf %51, %54 : vector<8x128xf32>
    %56 = vector.extract_strided_slice %55 {offsets = [0, 0], sizes = [8, 32], strides = [1, 1]} : vector<8x128xf32> to vector<8x32xf32>
    %cst_25 = arith.constant 0.353553385 : f32
    %57 = vector.broadcast %cst_25 : f32 to vector<8x32xf32>
    %58 = arith.mulf %56, %57 : vector<8x32xf32>
    %59 = vector.extract_strided_slice %55 {offsets = [0, 32], sizes = [8, 32], strides = [1, 1]} : vector<8x128xf32> to vector<8x32xf32>
    %60 = vector.extract_strided_slice %55 {offsets = [0, 64], sizes = [8, 32], strides = [1, 1]} : vector<8x128xf32> to vector<8x32xf32>
    %c0_26 = arith.constant 0 : index
    %c0_27 = arith.constant 0 : index
    %c0_28 = arith.constant 0 : index
    %61 = vector.load %arg9[%c0_26, %c0_27, %c0_28] : memref<2x32x32xf32, #tpu.memory_space<vmem>>, vector<1x32x32xf32>
    %62 = vector.shape_cast %61 : vector<1x32x32xf32> to vector<32x32xf32>
    %c0_29 = arith.constant 0 : index
    %c0_30 = arith.constant 0 : index
    %c0_31 = arith.constant 0 : index
    %63 = vector.load %arg10[%c0_29, %c0_30, %c0_31] : memref<2x1x32xf32, #tpu.memory_space<vmem>>, vector<1x1x32xf32>
    %64 = vector.shape_cast %63 : vector<1x1x32xf32> to vector<1x32xf32>
    %65 = vector.extract_strided_slice %58 {offsets = [0, 0], sizes = [8, 8], strides = [1, 1]} : vector<8x32xf32> to vector<8x8xf32>
    %66 = vector.extract_strided_slice %58 {offsets = [0, 8], sizes = [8, 8], strides = [1, 1]} : vector<8x32xf32> to vector<8x8xf32>
    %67 = vector.extract_strided_slice %58 {offsets = [0, 16], sizes = [8, 8], strides = [1, 1]} : vector<8x32xf32> to vector<8x8xf32>
    %68 = vector.extract_strided_slice %58 {offsets = [0, 24], sizes = [8, 8], strides = [1, 1]} : vector<8x32xf32> to vector<8x8xf32>
    %69 = vector.shape_cast %65 : vector<8x8xf32> to vector<1x8x8xf32>
    %70 = vector.shape_cast %66 : vector<8x8xf32> to vector<1x8x8xf32>
    %71 = vector.shape_cast %67 : vector<8x8xf32> to vector<1x8x8xf32>
    %72 = vector.shape_cast %68 : vector<8x8xf32> to vector<1x8x8xf32>
    %73 = tpu.concatenate %69, %70, %71, %72 in 0 : vector<1x8x8xf32>, vector<1x8x8xf32>, vector<1x8x8xf32>, vector<1x8x8xf32> -> vector<4x8x8xf32>
    %74 = vector.extract_strided_slice %59 {offsets = [0, 0], sizes = [8, 8], strides = [1, 1]} : vector<8x32xf32> to vector<8x8xf32>
    %75 = vector.extract_strided_slice %59 {offsets = [0, 8], sizes = [8, 8], strides = [1, 1]} : vector<8x32xf32> to vector<8x8xf32>
    %76 = vector.extract_strided_slice %59 {offsets = [0, 16], sizes = [8, 8], strides = [1, 1]} : vector<8x32xf32> to vector<8x8xf32>
    %77 = vector.extract_strided_slice %59 {offsets = [0, 24], sizes = [8, 8], strides = [1, 1]} : vector<8x32xf32> to vector<8x8xf32>
    %78 = vector.shape_cast %74 : vector<8x8xf32> to vector<1x8x8xf32>
    %79 = vector.shape_cast %75 : vector<8x8xf32> to vector<1x8x8xf32>
    %80 = vector.shape_cast %76 : vector<8x8xf32> to vector<1x8x8xf32>
    %81 = vector.shape_cast %77 : vector<8x8xf32> to vector<1x8x8xf32>
    %82 = tpu.concatenate %78, %79, %80, %81 in 0 : vector<1x8x8xf32>, vector<1x8x8xf32>, vector<1x8x8xf32>, vector<1x8x8xf32> -> vector<4x8x8xf32>
    %83 = vector.extract_strided_slice %60 {offsets = [0, 0], sizes = [8, 8], strides = [1, 1]} : vector<8x32xf32> to vector<8x8xf32>
    %84 = vector.extract_strided_slice %60 {offsets = [0, 8], sizes = [8, 8], strides = [1, 1]} : vector<8x32xf32> to vector<8x8xf32>
    %85 = vector.extract_strided_slice %60 {offsets = [0, 16], sizes = [8, 8], strides = [1, 1]} : vector<8x32xf32> to vector<8x8xf32>
    %86 = vector.extract_strided_slice %60 {offsets = [0, 24], sizes = [8, 8], strides = [1, 1]} : vector<8x32xf32> to vector<8x8xf32>
    %87 = vector.shape_cast %83 : vector<8x8xf32> to vector<1x8x8xf32>
    %88 = vector.shape_cast %84 : vector<8x8xf32> to vector<1x8x8xf32>
    %89 = vector.shape_cast %85 : vector<8x8xf32> to vector<1x8x8xf32>
    %90 = vector.shape_cast %86 : vector<8x8xf32> to vector<1x8x8xf32>
    %91 = tpu.concatenate %87, %88, %89, %90 in 0 : vector<1x8x8xf32>, vector<1x8x8xf32>, vector<1x8x8xf32>, vector<1x8x8xf32> -> vector<4x8x8xf32>
    "tpu.trace_start"() <{level = 10 : i32, message = "hqd,hkd->hqk"}> : () -> ()
    %cst_32 = arith.constant dense<0.000000e+00> : vector<4x8x8xf32>
    %92 = tpu.matmul %73, %82, %cst_32 {dimension_numbers = #tpu.dot_dimension_numbers<[2], [2], [1], [1], [0, 0, 0, 1, 1, 1], [0], [0]>} : vector<4x8x8xf32>, vector<4x8x8xf32>, vector<4x8x8xf32> -> vector<4x8x8xf32>
    "tpu.trace_stop"() : () -> ()
    %93 = vector.shape_cast %9 : vector<8x8xi1> to vector<1x8x8xi1>
    %cst_33 = arith.constant -3.40282347E+38 : f32
    %94 = vector.shape_cast %93 : vector<1x8x8xi1> to vector<1x8x8xi1>
    %95 = vector.broadcast %94 : vector<1x8x8xi1> to vector<4x8x8xi1>
    %96 = vector.broadcast %cst_33 : f32 to vector<4x8x8xf32>
    %97 = arith.select %95, %92, %96 : vector<4x8x8xi1>, vector<4x8x8xf32>
    %cst_34 = arith.constant dense<0xFF800000> : vector<4x8xf32>
    %98 = vector.multi_reduction <maximumf>, %97, %cst_34 [2] : vector<4x8x8xf32> to vector<4x8xf32>
    %99 = vector.shape_cast %98 : vector<4x8xf32> to vector<4x8x1xf32>
    %100 = vector.broadcast %99 : vector<4x8x1xf32> to vector<4x8x8xf32>
    %101 = arith.subf %97, %100 : vector<4x8x8xf32>
    %102 = math.exp %101 : vector<4x8x8xf32>
    %cst_35 = arith.constant dense<0.000000e+00> : vector<4x8xf32>
    %103 = vector.multi_reduction <add>, %102, %cst_35 [2] : vector<4x8x8xf32> to vector<4x8xf32>
    %104 = vector.shape_cast %103 : vector<4x8xf32> to vector<4x8x1xf32>
    %105 = tpu.reciprocal %104 {approx = true} : vector<4x8x1xf32> -> vector<4x8x1xf32>
    %106 = vector.broadcast %105 : vector<4x8x1xf32> to vector<4x8x8xf32>
    %107 = arith.mulf %102, %106 : vector<4x8x8xf32>
    "tpu.trace_start"() <{level = 10 : i32, message = "hqk,hkd->hqd"}> : () -> ()
    %cst_36 = arith.constant dense<0.000000e+00> : vector<4x8x8xf32>
    %108 = tpu.matmul %107, %91, %cst_36 {dimension_numbers = #tpu.dot_dimension_numbers<[2], [1], [1], [2], [0, 0, 0, 1, 1, 2], [0], [0]>} : vector<4x8x8xf32>, vector<4x8x8xf32>, vector<4x8x8xf32> -> vector<4x8x8xf32>
    "tpu.trace_stop"() : () -> ()
    %109 = vector.extract_strided_slice %108 {offsets = [0, 0, 0], sizes = [1, 8, 8], strides = [1, 1, 1]} : vector<4x8x8xf32> to vector<1x8x8xf32>
    %110 = vector.shape_cast %109 : vector<1x8x8xf32> to vector<8x8xf32>
    %111 = vector.extract_strided_slice %108 {offsets = [1, 0, 0], sizes = [1, 8, 8], strides = [1, 1, 1]} : vector<4x8x8xf32> to vector<1x8x8xf32>
    %112 = vector.shape_cast %111 : vector<1x8x8xf32> to vector<8x8xf32>
    %113 = vector.extract_strided_slice %108 {offsets = [2, 0, 0], sizes = [1, 8, 8], strides = [1, 1, 1]} : vector<4x8x8xf32> to vector<1x8x8xf32>
    %114 = vector.shape_cast %113 : vector<1x8x8xf32> to vector<8x8xf32>
    %115 = vector.extract_strided_slice %108 {offsets = [3, 0, 0], sizes = [1, 8, 8], strides = [1, 1, 1]} : vector<4x8x8xf32> to vector<1x8x8xf32>
    %116 = vector.shape_cast %115 : vector<1x8x8xf32> to vector<8x8xf32>
    %117 = tpu.concatenate %110, %112, %114, %116 in 1 : vector<8x8xf32>, vector<8x8xf32>, vector<8x8xf32>, vector<8x8xf32> -> vector<8x32xf32>
    %cst_37 = arith.constant 0.000000e+00 : f32
    %118 = vector.broadcast %cst_37 : f32 to vector<8x32xf32>
    %119 = arith.select %13, %117, %118 : vector<8x32xf32>
    %cst_38 = arith.constant dense<0.000000e+00> : vector<8x32xf32>
    %120 = tpu.matmul %119, %62, %cst_38 {dimension_numbers = #tpu.dot_dimension_numbers<[1], [0], [0], [1], [0, 0, 1, 1], [], []>} : vector<8x32xf32>, vector<32x32xf32>, vector<8x32xf32> -> vector<8x32xf32>
    %121 = vector.broadcast %64 : vector<1x32xf32> to vector<8x32xf32>
    %122 = arith.addf %120, %121 : vector<8x32xf32>
    %123 = arith.addf %16, %122 : vector<8x32xf32>
    %124 = vector.extract_strided_slice %20 {offsets = [1, 0, 0], sizes = [1, 1, 32], strides = [1, 1, 1]} : vector<3x1x32xf32> to vector<1x1x32xf32>
    %125 = vector.shape_cast %124 : vector<1x1x32xf32> to vector<1x32xf32>
    %126 = vector.extract_strided_slice %22 {offsets = [1, 0, 0], sizes = [1, 1, 32], strides = [1, 1, 1]} : vector<3x1x32xf32> to vector<1x1x32xf32>
    %127 = vector.shape_cast %126 : vector<1x1x32xf32> to vector<1x32xf32>
    %cst_39 = arith.constant dense<0.000000e+00> : vector<8xf32>
    %128 = vector.multi_reduction <add>, %123, %cst_39 [1] : vector<8x32xf32> to vector<8xf32>
    %129 = vector.shape_cast %128 : vector<8xf32> to vector<8x1xf32>
    %cst_40 = arith.constant 3.200000e+01 : f32
    %130 = vector.broadcast %cst_40 : f32 to vector<8x1xf32>
    %131 = arith.divf %129, %130 : vector<8x1xf32>
    %132 = vector.broadcast %131 : vector<8x1xf32> to vector<8x32xf32>
    %133 = arith.subf %123, %132 : vector<8x32xf32>
    %134 = arith.mulf %133, %133 : vector<8x32xf32>
    %cst_41 = arith.constant dense<0.000000e+00> : vector<8xf32>
    %135 = vector.multi_reduction <add>, %134, %cst_41 [1] : vector<8x32xf32> to vector<8xf32>
    %136 = vector.shape_cast %135 : vector<8xf32> to vector<8x1xf32>
    %cst_42 = arith.constant 3.200000e+01 : f32
    %137 = vector.broadcast %cst_42 : f32 to vector<8x1xf32>
    %138 = arith.divf %136, %137 : vector<8x1xf32>
    %139 = vector.broadcast %131 : vector<8x1xf32> to vector<8x32xf32>
    %140 = arith.subf %123, %139 : vector<8x32xf32>
    %cst_43 = arith.constant 9.99999996E-13 : f32
    %141 = vector.broadcast %cst_43 : f32 to vector<8x1xf32>
    %142 = arith.addf %138, %141 : vector<8x1xf32>
    %143 = math.rsqrt %142 : vector<8x1xf32>
    %144 = vector.broadcast %143 : vector<8x1xf32> to vector<8x32xf32>
    %145 = arith.mulf %140, %144 : vector<8x32xf32>
    %146 = vector.broadcast %125 : vector<1x32xf32> to vector<8x32xf32>
    %147 = arith.mulf %145, %146 : vector<8x32xf32>
    %148 = vector.broadcast %127 : vector<1x32xf32> to vector<8x32xf32>
    %149 = arith.addf %147, %148 : vector<8x32xf32>
    %c0_44 = arith.constant 0 : index
    %c0_45 = arith.constant 0 : index
    %c0_46 = arith.constant 0 : index
    %150 = vector.load %arg11[%c0_44, %c0_45, %c0_46] : memref<2x32x32xf32, #tpu.memory_space<vmem>>, vector<1x32x32xf32>
    %151 = vector.shape_cast %150 : vector<1x32x32xf32> to vector<32x32xf32>
    %cst_47 = arith.constant dense<0.000000e+00> : vector<8x32xf32>
    %152 = tpu.matmul %149, %151, %cst_47 {dimension_numbers = #tpu.dot_dimension_numbers<[1], [0], [0], [1], [0, 0, 1, 1], [], []>} : vector<8x32xf32>, vector<32x32xf32>, vector<8x32xf32> -> vector<8x32xf32>
    %c0_48 = arith.constant 0 : index
    %c0_49 = arith.constant 0 : index
    %c0_50 = arith.constant 0 : index
    %153 = vector.load %arg12[%c0_48, %c0_49, %c0_50] : memref<2x1x32xf32, #tpu.memory_space<vmem>>, vector<1x1x32xf32>
    %154 = vector.shape_cast %153 : vector<1x1x32xf32> to vector<1x32xf32>
    %155 = vector.broadcast %154 : vector<1x32xf32> to vector<8x32xf32>
    %156 = arith.addf %152, %155 : vector<8x32xf32>
    %cst_51 = arith.constant 0.353553385 : f32
    %157 = vector.broadcast %cst_51 : f32 to vector<8x32xf32>
    %158 = arith.mulf %156, %157 : vector<8x32xf32>
    %c0_52 = arith.constant 0 : index
    %c0_53 = arith.constant 0 : index
    %c0_54 = arith.constant 0 : index
    %159 = vector.load %arg13[%c0_52, %c0_53, %c0_54] : memref<2x32x128xf32, #tpu.memory_space<vmem>>, vector<1x32x128xf32>
    %160 = vector.shape_cast %159 : vector<1x32x128xf32> to vector<32x128xf32>
    %cst_55 = arith.constant dense<0.000000e+00> : vector<16x128xf32>
    %161 = tpu.matmul %18, %160, %cst_55 {dimension_numbers = #tpu.dot_dimension_numbers<[1], [0], [0], [1], [0, 0, 1, 1], [], []>} : vector<16x32xf32>, vector<32x128xf32>, vector<16x128xf32> -> vector<16x128xf32>
    %c0_56 = arith.constant 0 : index
    %c0_57 = arith.constant 0 : index
    %c0_58 = arith.constant 0 : index
    %162 = vector.load %arg14[%c0_56, %c0_57, %c0_58] : memref<2x1x128xf32, #tpu.memory_space<vmem>>, vector<1x1x128xf32>
    %163 = vector.shape_cast %162 : vector<1x1x128xf32> to vector<1x128xf32>
    %164 = vector.broadcast %163 : vector<1x128xf32> to vector<16x128xf32>
    %165 = arith.addf %161, %164 : vector<16x128xf32>
    %166 = vector.extract_strided_slice %165 {offsets = [0, 0], sizes = [16, 32], strides = [1, 1]} : vector<16x128xf32> to vector<16x32xf32>
    %167 = vector.extract_strided_slice %165 {offsets = [0, 32], sizes = [16, 32], strides = [1, 1]} : vector<16x128xf32> to vector<16x32xf32>
    %c0_59 = arith.constant 0 : index
    %c0_60 = arith.constant 0 : index
    %c0_61 = arith.constant 0 : index
    %168 = vector.load %arg15[%c0_59, %c0_60, %c0_61] : memref<2x32x32xf32, #tpu.memory_space<vmem>>, vector<1x32x32xf32>
    %169 = vector.shape_cast %168 : vector<1x32x32xf32> to vector<32x32xf32>
    %c0_62 = arith.constant 0 : index
    %c0_63 = arith.constant 0 : index
    %c0_64 = arith.constant 0 : index
    %170 = vector.load %arg16[%c0_62, %c0_63, %c0_64] : memref<2x1x32xf32, #tpu.memory_space<vmem>>, vector<1x1x32xf32>
    %171 = vector.shape_cast %170 : vector<1x1x32xf32> to vector<1x32xf32>
    %172 = vector.extract_strided_slice %158 {offsets = [0, 0], sizes = [8, 8], strides = [1, 1]} : vector<8x32xf32> to vector<8x8xf32>
    %173 = vector.extract_strided_slice %158 {offsets = [0, 8], sizes = [8, 8], strides = [1, 1]} : vector<8x32xf32> to vector<8x8xf32>
    %174 = vector.extract_strided_slice %158 {offsets = [0, 16], sizes = [8, 8], strides = [1, 1]} : vector<8x32xf32> to vector<8x8xf32>
    %175 = vector.extract_strided_slice %158 {offsets = [0, 24], sizes = [8, 8], strides = [1, 1]} : vector<8x32xf32> to vector<8x8xf32>
    %176 = vector.shape_cast %172 : vector<8x8xf32> to vector<1x8x8xf32>
    %177 = vector.shape_cast %173 : vector<8x8xf32> to vector<1x8x8xf32>
    %178 = vector.shape_cast %174 : vector<8x8xf32> to vector<1x8x8xf32>
    %179 = vector.shape_cast %175 : vector<8x8xf32> to vector<1x8x8xf32>
    %180 = tpu.concatenate %176, %177, %178, %179 in 0 : vector<1x8x8xf32>, vector<1x8x8xf32>, vector<1x8x8xf32>, vector<1x8x8xf32> -> vector<4x8x8xf32>
    %181 = vector.extract_strided_slice %166 {offsets = [0, 0], sizes = [16, 8], strides = [1, 1]} : vector<16x32xf32> to vector<16x8xf32>
    %182 = vector.extract_strided_slice %166 {offsets = [0, 8], sizes = [16, 8], strides = [1, 1]} : vector<16x32xf32> to vector<16x8xf32>
    %183 = vector.extract_strided_slice %166 {offsets = [0, 16], sizes = [16, 8], strides = [1, 1]} : vector<16x32xf32> to vector<16x8xf32>
    %184 = vector.extract_strided_slice %166 {offsets = [0, 24], sizes = [16, 8], strides = [1, 1]} : vector<16x32xf32> to vector<16x8xf32>
    %185 = vector.shape_cast %181 : vector<16x8xf32> to vector<1x16x8xf32>
    %186 = vector.shape_cast %182 : vector<16x8xf32> to vector<1x16x8xf32>
    %187 = vector.shape_cast %183 : vector<16x8xf32> to vector<1x16x8xf32>
    %188 = vector.shape_cast %184 : vector<16x8xf32> to vector<1x16x8xf32>
    %189 = tpu.concatenate %185, %186, %187, %188 in 0 : vector<1x16x8xf32>, vector<1x16x8xf32>, vector<1x16x8xf32>, vector<1x16x8xf32> -> vector<4x16x8xf32>
    %190 = vector.extract_strided_slice %167 {offsets = [0, 0], sizes = [16, 8], strides = [1, 1]} : vector<16x32xf32> to vector<16x8xf32>
    %191 = vector.extract_strided_slice %167 {offsets = [0, 8], sizes = [16, 8], strides = [1, 1]} : vector<16x32xf32> to vector<16x8xf32>
    %192 = vector.extract_strided_slice %167 {offsets = [0, 16], sizes = [16, 8], strides = [1, 1]} : vector<16x32xf32> to vector<16x8xf32>
    %193 = vector.extract_strided_slice %167 {offsets = [0, 24], sizes = [16, 8], strides = [1, 1]} : vector<16x32xf32> to vector<16x8xf32>
    %194 = vector.shape_cast %190 : vector<16x8xf32> to vector<1x16x8xf32>
    %195 = vector.shape_cast %191 : vector<16x8xf32> to vector<1x16x8xf32>
    %196 = vector.shape_cast %192 : vector<16x8xf32> to vector<1x16x8xf32>
    %197 = vector.shape_cast %193 : vector<16x8xf32> to vector<1x16x8xf32>
    %198 = tpu.concatenate %194, %195, %196, %197 in 0 : vector<1x16x8xf32>, vector<1x16x8xf32>, vector<1x16x8xf32>, vector<1x16x8xf32> -> vector<4x16x8xf32>
    "tpu.trace_start"() <{level = 10 : i32, message = "hqd,hkd->hqk"}> : () -> ()
    %cst_65 = arith.constant dense<0.000000e+00> : vector<4x8x16xf32>
    %199 = tpu.matmul %180, %189, %cst_65 {dimension_numbers = #tpu.dot_dimension_numbers<[2], [2], [1], [1], [0, 0, 0, 1, 1, 1], [0], [0]>} : vector<4x8x8xf32>, vector<4x16x8xf32>, vector<4x8x16xf32> -> vector<4x8x16xf32>
    "tpu.trace_stop"() : () -> ()
    %200 = vector.shape_cast %12 : vector<1x16xi1> to vector<1x1x16xi1>
    %cst_66 = arith.constant -3.40282347E+38 : f32
    %201 = vector.shape_cast %200 : vector<1x1x16xi1> to vector<1x1x16xi1>
    %202 = vector.broadcast %201 : vector<1x1x16xi1> to vector<4x8x16xi1>
    %203 = vector.broadcast %cst_66 : f32 to vector<4x8x16xf32>
    %204 = arith.select %202, %199, %203 : vector<4x8x16xi1>, vector<4x8x16xf32>
    %cst_67 = arith.constant dense<0xFF800000> : vector<4x8xf32>
    %205 = vector.multi_reduction <maximumf>, %204, %cst_67 [2] : vector<4x8x16xf32> to vector<4x8xf32>
    %206 = vector.shape_cast %205 : vector<4x8xf32> to vector<4x8x1xf32>
    %207 = vector.broadcast %206 : vector<4x8x1xf32> to vector<4x8x16xf32>
    %208 = arith.subf %204, %207 : vector<4x8x16xf32>
    %209 = math.exp %208 : vector<4x8x16xf32>
    %cst_68 = arith.constant dense<0.000000e+00> : vector<4x8xf32>
    %210 = vector.multi_reduction <add>, %209, %cst_68 [2] : vector<4x8x16xf32> to vector<4x8xf32>
    %211 = vector.shape_cast %210 : vector<4x8xf32> to vector<4x8x1xf32>
    %212 = tpu.reciprocal %211 {approx = true} : vector<4x8x1xf32> -> vector<4x8x1xf32>
    %213 = vector.broadcast %212 : vector<4x8x1xf32> to vector<4x8x16xf32>
    %214 = arith.mulf %209, %213 : vector<4x8x16xf32>
    "tpu.trace_start"() <{level = 10 : i32, message = "hqk,hkd->hqd"}> : () -> ()
    %cst_69 = arith.constant dense<0.000000e+00> : vector<4x8x8xf32>
    %215 = tpu.matmul %214, %198, %cst_69 {dimension_numbers = #tpu.dot_dimension_numbers<[2], [1], [1], [2], [0, 0, 0, 1, 1, 2], [0], [0]>} : vector<4x8x16xf32>, vector<4x16x8xf32>, vector<4x8x8xf32> -> vector<4x8x8xf32>
    "tpu.trace_stop"() : () -> ()
    %216 = vector.extract_strided_slice %215 {offsets = [0, 0, 0], sizes = [1, 8, 8], strides = [1, 1, 1]} : vector<4x8x8xf32> to vector<1x8x8xf32>
    %217 = vector.shape_cast %216 : vector<1x8x8xf32> to vector<8x8xf32>
    %218 = vector.extract_strided_slice %215 {offsets = [1, 0, 0], sizes = [1, 8, 8], strides = [1, 1, 1]} : vector<4x8x8xf32> to vector<1x8x8xf32>
    %219 = vector.shape_cast %218 : vector<1x8x8xf32> to vector<8x8xf32>
    %220 = vector.extract_strided_slice %215 {offsets = [2, 0, 0], sizes = [1, 8, 8], strides = [1, 1, 1]} : vector<4x8x8xf32> to vector<1x8x8xf32>
    %221 = vector.shape_cast %220 : vector<1x8x8xf32> to vector<8x8xf32>
    %222 = vector.extract_strided_slice %215 {offsets = [3, 0, 0], sizes = [1, 8, 8], strides = [1, 1, 1]} : vector<4x8x8xf32> to vector<1x8x8xf32>
    %223 = vector.shape_cast %222 : vector<1x8x8xf32> to vector<8x8xf32>
    %224 = tpu.concatenate %217, %219, %221, %223 in 1 : vector<8x8xf32>, vector<8x8xf32>, vector<8x8xf32>, vector<8x8xf32> -> vector<8x32xf32>
    %cst_70 = arith.constant 0.000000e+00 : f32
    %225 = vector.broadcast %cst_70 : f32 to vector<8x32xf32>
    %226 = arith.select %14, %224, %225 : vector<8x32xf32>
    %cst_71 = arith.constant dense<0.000000e+00> : vector<8x32xf32>
    %227 = tpu.matmul %226, %169, %cst_71 {dimension_numbers = #tpu.dot_dimension_numbers<[1], [0], [0], [1], [0, 0, 1, 1], [], []>} : vector<8x32xf32>, vector<32x32xf32>, vector<8x32xf32> -> vector<8x32xf32>
    %228 = vector.broadcast %171 : vector<1x32xf32> to vector<8x32xf32>
    %229 = arith.addf %227, %228 : vector<8x32xf32>
    %230 = arith.addf %123, %229 : vector<8x32xf32>
    %231 = vector.extract_strided_slice %20 {offsets = [2, 0, 0], sizes = [1, 1, 32], strides = [1, 1, 1]} : vector<3x1x32xf32> to vector<1x1x32xf32>
    %232 = vector.shape_cast %231 : vector<1x1x32xf32> to vector<1x32xf32>
    %233 = vector.extract_strided_slice %22 {offsets = [2, 0, 0], sizes = [1, 1, 32], strides = [1, 1, 1]} : vector<3x1x32xf32> to vector<1x1x32xf32>
    %234 = vector.shape_cast %233 : vector<1x1x32xf32> to vector<1x32xf32>
    %cst_72 = arith.constant dense<0.000000e+00> : vector<8xf32>
    %235 = vector.multi_reduction <add>, %230, %cst_72 [1] : vector<8x32xf32> to vector<8xf32>
    %236 = vector.shape_cast %235 : vector<8xf32> to vector<8x1xf32>
    %cst_73 = arith.constant 3.200000e+01 : f32
    %237 = vector.broadcast %cst_73 : f32 to vector<8x1xf32>
    %238 = arith.divf %236, %237 : vector<8x1xf32>
    %239 = vector.broadcast %238 : vector<8x1xf32> to vector<8x32xf32>
    %240 = arith.subf %230, %239 : vector<8x32xf32>
    %241 = arith.mulf %240, %240 : vector<8x32xf32>
    %cst_74 = arith.constant dense<0.000000e+00> : vector<8xf32>
    %242 = vector.multi_reduction <add>, %241, %cst_74 [1] : vector<8x32xf32> to vector<8xf32>
    %243 = vector.shape_cast %242 : vector<8xf32> to vector<8x1xf32>
    %cst_75 = arith.constant 3.200000e+01 : f32
    %244 = vector.broadcast %cst_75 : f32 to vector<8x1xf32>
    %245 = arith.divf %243, %244 : vector<8x1xf32>
    %246 = vector.broadcast %238 : vector<8x1xf32> to vector<8x32xf32>
    %247 = arith.subf %230, %246 : vector<8x32xf32>
    %cst_76 = arith.constant 9.99999996E-13 : f32
    %248 = vector.broadcast %cst_76 : f32 to vector<8x1xf32>
    %249 = arith.addf %245, %248 : vector<8x1xf32>
    %250 = math.rsqrt %249 : vector<8x1xf32>
    %251 = vector.broadcast %250 : vector<8x1xf32> to vector<8x32xf32>
    %252 = arith.mulf %247, %251 : vector<8x32xf32>
    %253 = vector.broadcast %232 : vector<1x32xf32> to vector<8x32xf32>
    %254 = arith.mulf %252, %253 : vector<8x32xf32>
    %255 = vector.broadcast %234 : vector<1x32xf32> to vector<8x32xf32>
    %256 = arith.addf %254, %255 : vector<8x32xf32>
    %c0_77 = arith.constant 0 : index
    %c0_78 = arith.constant 0 : index
    %c0_79 = arith.constant 0 : index
    %257 = vector.load %arg17[%c0_77, %c0_78, %c0_79] : memref<2x32x128xf32, #tpu.memory_space<vmem>>, vector<1x32x128xf32>
    %258 = vector.shape_cast %257 : vector<1x32x128xf32> to vector<32x128xf32>
    %cst_80 = arith.constant dense<0.000000e+00> : vector<8x128xf32>
    %259 = tpu.matmul %256, %258, %cst_80 {dimension_numbers = #tpu.dot_dimension_numbers<[1], [0], [0], [1], [0, 0, 1, 1], [], []>} : vector<8x32xf32>, vector<32x128xf32>, vector<8x128xf32> -> vector<8x128xf32>
    %c0_81 = arith.constant 0 : index
    %c0_82 = arith.constant 0 : index
    %c0_83 = arith.constant 0 : index
    %260 = vector.load %arg18[%c0_81, %c0_82, %c0_83] : memref<2x1x128xf32, #tpu.memory_space<vmem>>, vector<1x1x128xf32>
    %261 = vector.shape_cast %260 : vector<1x1x128xf32> to vector<1x128xf32>
    %262 = vector.broadcast %261 : vector<1x128xf32> to vector<8x128xf32>
    %263 = arith.addf %259, %262 : vector<8x128xf32>
    %cst_84 = arith.constant 0.000000e+00 : f32
    %264 = vector.broadcast %cst_84 : f32 to vector<8x128xf32>
    %265 = arith.maximumf %263, %264 : vector<8x128xf32>
    %c0_85 = arith.constant 0 : index
    %c0_86 = arith.constant 0 : index
    %c0_87 = arith.constant 0 : index
    %266 = vector.load %arg19[%c0_85, %c0_86, %c0_87] : memref<2x128x32xf32, #tpu.memory_space<vmem>>, vector<1x128x32xf32>
    %267 = vector.shape_cast %266 : vector<1x128x32xf32> to vector<128x32xf32>
    %cst_88 = arith.constant dense<0.000000e+00> : vector<8x32xf32>
    %268 = tpu.matmul %265, %267, %cst_88 {dimension_numbers = #tpu.dot_dimension_numbers<[1], [0], [0], [1], [0, 0, 1, 1], [], []>} : vector<8x128xf32>, vector<128x32xf32>, vector<8x32xf32> -> vector<8x32xf32>
    %269 = arith.addf %230, %268 : vector<8x32xf32>
    %c0_89 = arith.constant 0 : index
    %c0_90 = arith.constant 0 : index
    %c0_91 = arith.constant 0 : index
    %270 = vector.load %arg20[%c0_89, %c0_90, %c0_91] : memref<2x1x32xf32, #tpu.memory_space<vmem>>, vector<1x1x32xf32>
    %271 = vector.shape_cast %270 : vector<1x1x32xf32> to vector<1x32xf32>
    %272 = vector.broadcast %271 : vector<1x32xf32> to vector<8x32xf32>
    %273 = arith.addf %269, %272 : vector<8x32xf32>
    %c1 = arith.constant 1 : index
    %c0_92 = arith.constant 0 : index
    %c0_93 = arith.constant 0 : index
    %c0_94 = arith.constant 0 : index
    %274 = vector.load %arg5[%c1, %c0_92, %c0_93, %c0_94] : memref<2x3x1x32xf32, #tpu.memory_space<vmem>>, vector<1x3x1x32xf32>
    %275 = vector.shape_cast %274 : vector<1x3x1x32xf32> to vector<3x1x32xf32>
    %c1_95 = arith.constant 1 : index
    %c0_96 = arith.constant 0 : index
    %c0_97 = arith.constant 0 : index
    %c0_98 = arith.constant 0 : index
    %276 = vector.load %arg6[%c1_95, %c0_96, %c0_97, %c0_98] : memref<2x3x1x32xf32, #tpu.memory_space<vmem>>, vector<1x3x1x32xf32>
    %277 = vector.shape_cast %276 : vector<1x3x1x32xf32> to vector<3x1x32xf32>
    %278 = vector.extract_strided_slice %275 {offsets = [0, 0, 0], sizes = [1, 1, 32], strides = [1, 1, 1]} : vector<3x1x32xf32> to vector<1x1x32xf32>
    %279 = vector.shape_cast %278 : vector<1x1x32xf32> to vector<1x32xf32>
    %280 = vector.extract_strided_slice %277 {offsets = [0, 0, 0], sizes = [1, 1, 32], strides = [1, 1, 1]} : vector<3x1x32xf32> to vector<1x1x32xf32>
    %281 = vector.shape_cast %280 : vector<1x1x32xf32> to vector<1x32xf32>
    %cst_99 = arith.constant dense<0.000000e+00> : vector<8xf32>
    %282 = vector.multi_reduction <add>, %273, %cst_99 [1] : vector<8x32xf32> to vector<8xf32>
    %283 = vector.shape_cast %282 : vector<8xf32> to vector<8x1xf32>
    %cst_100 = arith.constant 3.200000e+01 : f32
    %284 = vector.broadcast %cst_100 : f32 to vector<8x1xf32>
    %285 = arith.divf %283, %284 : vector<8x1xf32>
    %286 = vector.broadcast %285 : vector<8x1xf32> to vector<8x32xf32>
    %287 = arith.subf %273, %286 : vector<8x32xf32>
    %288 = arith.mulf %287, %287 : vector<8x32xf32>
    %cst_101 = arith.constant dense<0.000000e+00> : vector<8xf32>
    %289 = vector.multi_reduction <add>, %288, %cst_101 [1] : vector<8x32xf32> to vector<8xf32>
    %290 = vector.shape_cast %289 : vector<8xf32> to vector<8x1xf32>
    %cst_102 = arith.constant 3.200000e+01 : f32
    %291 = vector.broadcast %cst_102 : f32 to vector<8x1xf32>
    %292 = arith.divf %290, %291 : vector<8x1xf32>
    %293 = vector.broadcast %285 : vector<8x1xf32> to vector<8x32xf32>
    %294 = arith.subf %273, %293 : vector<8x32xf32>
    %cst_103 = arith.constant 9.99999996E-13 : f32
    %295 = vector.broadcast %cst_103 : f32 to vector<8x1xf32>
    %296 = arith.addf %292, %295 : vector<8x1xf32>
    %297 = math.rsqrt %296 : vector<8x1xf32>
    %298 = vector.broadcast %297 : vector<8x1xf32> to vector<8x32xf32>
    %299 = arith.mulf %294, %298 : vector<8x32xf32>
    %300 = vector.broadcast %279 : vector<1x32xf32> to vector<8x32xf32>
    %301 = arith.mulf %299, %300 : vector<8x32xf32>
    %302 = vector.broadcast %281 : vector<1x32xf32> to vector<8x32xf32>
    %303 = arith.addf %301, %302 : vector<8x32xf32>
    %c1_104 = arith.constant 1 : index
    %c0_105 = arith.constant 0 : index
    %c0_106 = arith.constant 0 : index
    %304 = vector.load %arg7[%c1_104, %c0_105, %c0_106] : memref<2x32x128xf32, #tpu.memory_space<vmem>>, vector<1x32x128xf32>
    %305 = vector.shape_cast %304 : vector<1x32x128xf32> to vector<32x128xf32>
    %cst_107 = arith.constant dense<0.000000e+00> : vector<8x128xf32>
    %306 = tpu.matmul %303, %305, %cst_107 {dimension_numbers = #tpu.dot_dimension_numbers<[1], [0], [0], [1], [0, 0, 1, 1], [], []>} : vector<8x32xf32>, vector<32x128xf32>, vector<8x128xf32> -> vector<8x128xf32>
    %c1_108 = arith.constant 1 : index
    %c0_109 = arith.constant 0 : index
    %c0_110 = arith.constant 0 : index
    %307 = vector.load %arg8[%c1_108, %c0_109, %c0_110] : memref<2x1x128xf32, #tpu.memory_space<vmem>>, vector<1x1x128xf32>
    %308 = vector.shape_cast %307 : vector<1x1x128xf32> to vector<1x128xf32>
    %309 = vector.broadcast %308 : vector<1x128xf32> to vector<8x128xf32>
    %310 = arith.addf %306, %309 : vector<8x128xf32>
    %311 = vector.extract_strided_slice %310 {offsets = [0, 0], sizes = [8, 32], strides = [1, 1]} : vector<8x128xf32> to vector<8x32xf32>
    %cst_111 = arith.constant 0.353553385 : f32
    %312 = vector.broadcast %cst_111 : f32 to vector<8x32xf32>
    %313 = arith.mulf %311, %312 : vector<8x32xf32>
    %314 = vector.extract_strided_slice %310 {offsets = [0, 32], sizes = [8, 32], strides = [1, 1]} : vector<8x128xf32> to vector<8x32xf32>
    %315 = vector.extract_strided_slice %310 {offsets = [0, 64], sizes = [8, 32], strides = [1, 1]} : vector<8x128xf32> to vector<8x32xf32>
    %c1_112 = arith.constant 1 : index
    %c0_113 = arith.constant 0 : index
    %c0_114 = arith.constant 0 : index
    %316 = vector.load %arg9[%c1_112, %c0_113, %c0_114] : memref<2x32x32xf32, #tpu.memory_space<vmem>>, vector<1x32x32xf32>
    %317 = vector.shape_cast %316 : vector<1x32x32xf32> to vector<32x32xf32>
    %c1_115 = arith.constant 1 : index
    %c0_116 = arith.constant 0 : index
    %c0_117 = arith.constant 0 : index
    %318 = vector.load %arg10[%c1_115, %c0_116, %c0_117] : memref<2x1x32xf32, #tpu.memory_space<vmem>>, vector<1x1x32xf32>
    %319 = vector.shape_cast %318 : vector<1x1x32xf32> to vector<1x32xf32>
    %320 = vector.extract_strided_slice %313 {offsets = [0, 0], sizes = [8, 8], strides = [1, 1]} : vector<8x32xf32> to vector<8x8xf32>
    %321 = vector.extract_strided_slice %313 {offsets = [0, 8], sizes = [8, 8], strides = [1, 1]} : vector<8x32xf32> to vector<8x8xf32>
    %322 = vector.extract_strided_slice %313 {offsets = [0, 16], sizes = [8, 8], strides = [1, 1]} : vector<8x32xf32> to vector<8x8xf32>
    %323 = vector.extract_strided_slice %313 {offsets = [0, 24], sizes = [8, 8], strides = [1, 1]} : vector<8x32xf32> to vector<8x8xf32>
    %324 = vector.shape_cast %320 : vector<8x8xf32> to vector<1x8x8xf32>
    %325 = vector.shape_cast %321 : vector<8x8xf32> to vector<1x8x8xf32>
    %326 = vector.shape_cast %322 : vector<8x8xf32> to vector<1x8x8xf32>
    %327 = vector.shape_cast %323 : vector<8x8xf32> to vector<1x8x8xf32>
    %328 = tpu.concatenate %324, %325, %326, %327 in 0 : vector<1x8x8xf32>, vector<1x8x8xf32>, vector<1x8x8xf32>, vector<1x8x8xf32> -> vector<4x8x8xf32>
    %329 = vector.extract_strided_slice %314 {offsets = [0, 0], sizes = [8, 8], strides = [1, 1]} : vector<8x32xf32> to vector<8x8xf32>
    %330 = vector.extract_strided_slice %314 {offsets = [0, 8], sizes = [8, 8], strides = [1, 1]} : vector<8x32xf32> to vector<8x8xf32>
    %331 = vector.extract_strided_slice %314 {offsets = [0, 16], sizes = [8, 8], strides = [1, 1]} : vector<8x32xf32> to vector<8x8xf32>
    %332 = vector.extract_strided_slice %314 {offsets = [0, 24], sizes = [8, 8], strides = [1, 1]} : vector<8x32xf32> to vector<8x8xf32>
    %333 = vector.shape_cast %329 : vector<8x8xf32> to vector<1x8x8xf32>
    %334 = vector.shape_cast %330 : vector<8x8xf32> to vector<1x8x8xf32>
    %335 = vector.shape_cast %331 : vector<8x8xf32> to vector<1x8x8xf32>
    %336 = vector.shape_cast %332 : vector<8x8xf32> to vector<1x8x8xf32>
    %337 = tpu.concatenate %333, %334, %335, %336 in 0 : vector<1x8x8xf32>, vector<1x8x8xf32>, vector<1x8x8xf32>, vector<1x8x8xf32> -> vector<4x8x8xf32>
    %338 = vector.extract_strided_slice %315 {offsets = [0, 0], sizes = [8, 8], strides = [1, 1]} : vector<8x32xf32> to vector<8x8xf32>
    %339 = vector.extract_strided_slice %315 {offsets = [0, 8], sizes = [8, 8], strides = [1, 1]} : vector<8x32xf32> to vector<8x8xf32>
    %340 = vector.extract_strided_slice %315 {offsets = [0, 16], sizes = [8, 8], strides = [1, 1]} : vector<8x32xf32> to vector<8x8xf32>
    %341 = vector.extract_strided_slice %315 {offsets = [0, 24], sizes = [8, 8], strides = [1, 1]} : vector<8x32xf32> to vector<8x8xf32>
    %342 = vector.shape_cast %338 : vector<8x8xf32> to vector<1x8x8xf32>
    %343 = vector.shape_cast %339 : vector<8x8xf32> to vector<1x8x8xf32>
    %344 = vector.shape_cast %340 : vector<8x8xf32> to vector<1x8x8xf32>
    %345 = vector.shape_cast %341 : vector<8x8xf32> to vector<1x8x8xf32>
    %346 = tpu.concatenate %342, %343, %344, %345 in 0 : vector<1x8x8xf32>, vector<1x8x8xf32>, vector<1x8x8xf32>, vector<1x8x8xf32> -> vector<4x8x8xf32>
    "tpu.trace_start"() <{level = 10 : i32, message = "hqd,hkd->hqk"}> : () -> ()
    %cst_118 = arith.constant dense<0.000000e+00> : vector<4x8x8xf32>
    %347 = tpu.matmul %328, %337, %cst_118 {dimension_numbers = #tpu.dot_dimension_numbers<[2], [2], [1], [1], [0, 0, 0, 1, 1, 1], [0], [0]>} : vector<4x8x8xf32>, vector<4x8x8xf32>, vector<4x8x8xf32> -> vector<4x8x8xf32>
    "tpu.trace_stop"() : () -> ()
    %348 = vector.shape_cast %9 : vector<8x8xi1> to vector<1x8x8xi1>
    %cst_119 = arith.constant -3.40282347E+38 : f32
    %349 = vector.shape_cast %348 : vector<1x8x8xi1> to vector<1x8x8xi1>
    %350 = vector.broadcast %349 : vector<1x8x8xi1> to vector<4x8x8xi1>
    %351 = vector.broadcast %cst_119 : f32 to vector<4x8x8xf32>
    %352 = arith.select %350, %347, %351 : vector<4x8x8xi1>, vector<4x8x8xf32>
    %cst_120 = arith.constant dense<0xFF800000> : vector<4x8xf32>
    %353 = vector.multi_reduction <maximumf>, %352, %cst_120 [2] : vector<4x8x8xf32> to vector<4x8xf32>
    %354 = vector.shape_cast %353 : vector<4x8xf32> to vector<4x8x1xf32>
    %355 = vector.broadcast %354 : vector<4x8x1xf32> to vector<4x8x8xf32>
    %356 = arith.subf %352, %355 : vector<4x8x8xf32>
    %357 = math.exp %356 : vector<4x8x8xf32>
    %cst_121 = arith.constant dense<0.000000e+00> : vector<4x8xf32>
    %358 = vector.multi_reduction <add>, %357, %cst_121 [2] : vector<4x8x8xf32> to vector<4x8xf32>
    %359 = vector.shape_cast %358 : vector<4x8xf32> to vector<4x8x1xf32>
    %360 = tpu.reciprocal %359 {approx = true} : vector<4x8x1xf32> -> vector<4x8x1xf32>
    %361 = vector.broadcast %360 : vector<4x8x1xf32> to vector<4x8x8xf32>
    %362 = arith.mulf %357, %361 : vector<4x8x8xf32>
    "tpu.trace_start"() <{level = 10 : i32, message = "hqk,hkd->hqd"}> : () -> ()
    %cst_122 = arith.constant dense<0.000000e+00> : vector<4x8x8xf32>
    %363 = tpu.matmul %362, %346, %cst_122 {dimension_numbers = #tpu.dot_dimension_numbers<[2], [1], [1], [2], [0, 0, 0, 1, 1, 2], [0], [0]>} : vector<4x8x8xf32>, vector<4x8x8xf32>, vector<4x8x8xf32> -> vector<4x8x8xf32>
    "tpu.trace_stop"() : () -> ()
    %364 = vector.extract_strided_slice %363 {offsets = [0, 0, 0], sizes = [1, 8, 8], strides = [1, 1, 1]} : vector<4x8x8xf32> to vector<1x8x8xf32>
    %365 = vector.shape_cast %364 : vector<1x8x8xf32> to vector<8x8xf32>
    %366 = vector.extract_strided_slice %363 {offsets = [1, 0, 0], sizes = [1, 8, 8], strides = [1, 1, 1]} : vector<4x8x8xf32> to vector<1x8x8xf32>
    %367 = vector.shape_cast %366 : vector<1x8x8xf32> to vector<8x8xf32>
    %368 = vector.extract_strided_slice %363 {offsets = [2, 0, 0], sizes = [1, 8, 8], strides = [1, 1, 1]} : vector<4x8x8xf32> to vector<1x8x8xf32>
    %369 = vector.shape_cast %368 : vector<1x8x8xf32> to vector<8x8xf32>
    %370 = vector.extract_strided_slice %363 {offsets = [3, 0, 0], sizes = [1, 8, 8], strides = [1, 1, 1]} : vector<4x8x8xf32> to vector<1x8x8xf32>
    %371 = vector.shape_cast %370 : vector<1x8x8xf32> to vector<8x8xf32>
    %372 = tpu.concatenate %365, %367, %369, %371 in 1 : vector<8x8xf32>, vector<8x8xf32>, vector<8x8xf32>, vector<8x8xf32> -> vector<8x32xf32>
    %cst_123 = arith.constant 0.000000e+00 : f32
    %373 = vector.broadcast %cst_123 : f32 to vector<8x32xf32>
    %374 = arith.select %13, %372, %373 : vector<8x32xf32>
    %cst_124 = arith.constant dense<0.000000e+00> : vector<8x32xf32>
    %375 = tpu.matmul %374, %317, %cst_124 {dimension_numbers = #tpu.dot_dimension_numbers<[1], [0], [0], [1], [0, 0, 1, 1], [], []>} : vector<8x32xf32>, vector<32x32xf32>, vector<8x32xf32> -> vector<8x32xf32>
    %376 = vector.broadcast %319 : vector<1x32xf32> to vector<8x32xf32>
    %377 = arith.addf %375, %376 : vector<8x32xf32>
    %378 = arith.addf %273, %377 : vector<8x32xf32>
    %379 = vector.extract_strided_slice %275 {offsets = [1, 0, 0], sizes = [1, 1, 32], strides = [1, 1, 1]} : vector<3x1x32xf32> to vector<1x1x32xf32>
    %380 = vector.shape_cast %379 : vector<1x1x32xf32> to vector<1x32xf32>
    %381 = vector.extract_strided_slice %277 {offsets = [1, 0, 0], sizes = [1, 1, 32], strides = [1, 1, 1]} : vector<3x1x32xf32> to vector<1x1x32xf32>
    %382 = vector.shape_cast %381 : vector<1x1x32xf32> to vector<1x32xf32>
    %cst_125 = arith.constant dense<0.000000e+00> : vector<8xf32>
    %383 = vector.multi_reduction <add>, %378, %cst_125 [1] : vector<8x32xf32> to vector<8xf32>
    %384 = vector.shape_cast %383 : vector<8xf32> to vector<8x1xf32>
    %cst_126 = arith.constant 3.200000e+01 : f32
    %385 = vector.broadcast %cst_126 : f32 to vector<8x1xf32>
    %386 = arith.divf %384, %385 : vector<8x1xf32>
    %387 = vector.broadcast %386 : vector<8x1xf32> to vector<8x32xf32>
    %388 = arith.subf %378, %387 : vector<8x32xf32>
    %389 = arith.mulf %388, %388 : vector<8x32xf32>
    %cst_127 = arith.constant dense<0.000000e+00> : vector<8xf32>
    %390 = vector.multi_reduction <add>, %389, %cst_127 [1] : vector<8x32xf32> to vector<8xf32>
    %391 = vector.shape_cast %390 : vector<8xf32> to vector<8x1xf32>
    %cst_128 = arith.constant 3.200000e+01 : f32
    %392 = vector.broadcast %cst_128 : f32 to vector<8x1xf32>
    %393 = arith.divf %391, %392 : vector<8x1xf32>
    %394 = vector.broadcast %386 : vector<8x1xf32> to vector<8x32xf32>
    %395 = arith.subf %378, %394 : vector<8x32xf32>
    %cst_129 = arith.constant 9.99999996E-13 : f32
    %396 = vector.broadcast %cst_129 : f32 to vector<8x1xf32>
    %397 = arith.addf %393, %396 : vector<8x1xf32>
    %398 = math.rsqrt %397 : vector<8x1xf32>
    %399 = vector.broadcast %398 : vector<8x1xf32> to vector<8x32xf32>
    %400 = arith.mulf %395, %399 : vector<8x32xf32>
    %401 = vector.broadcast %380 : vector<1x32xf32> to vector<8x32xf32>
    %402 = arith.mulf %400, %401 : vector<8x32xf32>
    %403 = vector.broadcast %382 : vector<1x32xf32> to vector<8x32xf32>
    %404 = arith.addf %402, %403 : vector<8x32xf32>
    %c1_130 = arith.constant 1 : index
    %c0_131 = arith.constant 0 : index
    %c0_132 = arith.constant 0 : index
    %405 = vector.load %arg11[%c1_130, %c0_131, %c0_132] : memref<2x32x32xf32, #tpu.memory_space<vmem>>, vector<1x32x32xf32>
    %406 = vector.shape_cast %405 : vector<1x32x32xf32> to vector<32x32xf32>
    %cst_133 = arith.constant dense<0.000000e+00> : vector<8x32xf32>
    %407 = tpu.matmul %404, %406, %cst_133 {dimension_numbers = #tpu.dot_dimension_numbers<[1], [0], [0], [1], [0, 0, 1, 1], [], []>} : vector<8x32xf32>, vector<32x32xf32>, vector<8x32xf32> -> vector<8x32xf32>
    %c1_134 = arith.constant 1 : index
    %c0_135 = arith.constant 0 : index
    %c0_136 = arith.constant 0 : index
    %408 = vector.load %arg12[%c1_134, %c0_135, %c0_136] : memref<2x1x32xf32, #tpu.memory_space<vmem>>, vector<1x1x32xf32>
    %409 = vector.shape_cast %408 : vector<1x1x32xf32> to vector<1x32xf32>
    %410 = vector.broadcast %409 : vector<1x32xf32> to vector<8x32xf32>
    %411 = arith.addf %407, %410 : vector<8x32xf32>
    %cst_137 = arith.constant 0.353553385 : f32
    %412 = vector.broadcast %cst_137 : f32 to vector<8x32xf32>
    %413 = arith.mulf %411, %412 : vector<8x32xf32>
    %c1_138 = arith.constant 1 : index
    %c0_139 = arith.constant 0 : index
    %c0_140 = arith.constant 0 : index
    %414 = vector.load %arg13[%c1_138, %c0_139, %c0_140] : memref<2x32x128xf32, #tpu.memory_space<vmem>>, vector<1x32x128xf32>
    %415 = vector.shape_cast %414 : vector<1x32x128xf32> to vector<32x128xf32>
    %cst_141 = arith.constant dense<0.000000e+00> : vector<16x128xf32>
    %416 = tpu.matmul %18, %415, %cst_141 {dimension_numbers = #tpu.dot_dimension_numbers<[1], [0], [0], [1], [0, 0, 1, 1], [], []>} : vector<16x32xf32>, vector<32x128xf32>, vector<16x128xf32> -> vector<16x128xf32>
    %c1_142 = arith.constant 1 : index
    %c0_143 = arith.constant 0 : index
    %c0_144 = arith.constant 0 : index
    %417 = vector.load %arg14[%c1_142, %c0_143, %c0_144] : memref<2x1x128xf32, #tpu.memory_space<vmem>>, vector<1x1x128xf32>
    %418 = vector.shape_cast %417 : vector<1x1x128xf32> to vector<1x128xf32>
    %419 = vector.broadcast %418 : vector<1x128xf32> to vector<16x128xf32>
    %420 = arith.addf %416, %419 : vector<16x128xf32>
    %421 = vector.extract_strided_slice %420 {offsets = [0, 0], sizes = [16, 32], strides = [1, 1]} : vector<16x128xf32> to vector<16x32xf32>
    %422 = vector.extract_strided_slice %420 {offsets = [0, 32], sizes = [16, 32], strides = [1, 1]} : vector<16x128xf32> to vector<16x32xf32>
    %c1_145 = arith.constant 1 : index
    %c0_146 = arith.constant 0 : index
    %c0_147 = arith.constant 0 : index
    %423 = vector.load %arg15[%c1_145, %c0_146, %c0_147] : memref<2x32x32xf32, #tpu.memory_space<vmem>>, vector<1x32x32xf32>
    %424 = vector.shape_cast %423 : vector<1x32x32xf32> to vector<32x32xf32>
    %c1_148 = arith.constant 1 : index
    %c0_149 = arith.constant 0 : index
    %c0_150 = arith.constant 0 : index
    %425 = vector.load %arg16[%c1_148, %c0_149, %c0_150] : memref<2x1x32xf32, #tpu.memory_space<vmem>>, vector<1x1x32xf32>
    %426 = vector.shape_cast %425 : vector<1x1x32xf32> to vector<1x32xf32>
    %427 = vector.extract_strided_slice %413 {offsets = [0, 0], sizes = [8, 8], strides = [1, 1]} : vector<8x32xf32> to vector<8x8xf32>
    %428 = vector.extract_strided_slice %413 {offsets = [0, 8], sizes = [8, 8], strides = [1, 1]} : vector<8x32xf32> to vector<8x8xf32>
    %429 = vector.extract_strided_slice %413 {offsets = [0, 16], sizes = [8, 8], strides = [1, 1]} : vector<8x32xf32> to vector<8x8xf32>
    %430 = vector.extract_strided_slice %413 {offsets = [0, 24], sizes = [8, 8], strides = [1, 1]} : vector<8x32xf32> to vector<8x8xf32>
    %431 = vector.shape_cast %427 : vector<8x8xf32> to vector<1x8x8xf32>
    %432 = vector.shape_cast %428 : vector<8x8xf32> to vector<1x8x8xf32>
    %433 = vector.shape_cast %429 : vector<8x8xf32> to vector<1x8x8xf32>
    %434 = vector.shape_cast %430 : vector<8x8xf32> to vector<1x8x8xf32>
    %435 = tpu.concatenate %431, %432, %433, %434 in 0 : vector<1x8x8xf32>, vector<1x8x8xf32>, vector<1x8x8xf32>, vector<1x8x8xf32> -> vector<4x8x8xf32>
    %436 = vector.extract_strided_slice %421 {offsets = [0, 0], sizes = [16, 8], strides = [1, 1]} : vector<16x32xf32> to vector<16x8xf32>
    %437 = vector.extract_strided_slice %421 {offsets = [0, 8], sizes = [16, 8], strides = [1, 1]} : vector<16x32xf32> to vector<16x8xf32>
    %438 = vector.extract_strided_slice %421 {offsets = [0, 16], sizes = [16, 8], strides = [1, 1]} : vector<16x32xf32> to vector<16x8xf32>
    %439 = vector.extract_strided_slice %421 {offsets = [0, 24], sizes = [16, 8], strides = [1, 1]} : vector<16x32xf32> to vector<16x8xf32>
    %440 = vector.shape_cast %436 : vector<16x8xf32> to vector<1x16x8xf32>
    %441 = vector.shape_cast %437 : vector<16x8xf32> to vector<1x16x8xf32>
    %442 = vector.shape_cast %438 : vector<16x8xf32> to vector<1x16x8xf32>
    %443 = vector.shape_cast %439 : vector<16x8xf32> to vector<1x16x8xf32>
    %444 = tpu.concatenate %440, %441, %442, %443 in 0 : vector<1x16x8xf32>, vector<1x16x8xf32>, vector<1x16x8xf32>, vector<1x16x8xf32> -> vector<4x16x8xf32>
    %445 = vector.extract_strided_slice %422 {offsets = [0, 0], sizes = [16, 8], strides = [1, 1]} : vector<16x32xf32> to vector<16x8xf32>
    %446 = vector.extract_strided_slice %422 {offsets = [0, 8], sizes = [16, 8], strides = [1, 1]} : vector<16x32xf32> to vector<16x8xf32>
    %447 = vector.extract_strided_slice %422 {offsets = [0, 16], sizes = [16, 8], strides = [1, 1]} : vector<16x32xf32> to vector<16x8xf32>
    %448 = vector.extract_strided_slice %422 {offsets = [0, 24], sizes = [16, 8], strides = [1, 1]} : vector<16x32xf32> to vector<16x8xf32>
    %449 = vector.shape_cast %445 : vector<16x8xf32> to vector<1x16x8xf32>
    %450 = vector.shape_cast %446 : vector<16x8xf32> to vector<1x16x8xf32>
    %451 = vector.shape_cast %447 : vector<16x8xf32> to vector<1x16x8xf32>
    %452 = vector.shape_cast %448 : vector<16x8xf32> to vector<1x16x8xf32>
    %453 = tpu.concatenate %449, %450, %451, %452 in 0 : vector<1x16x8xf32>, vector<1x16x8xf32>, vector<1x16x8xf32>, vector<1x16x8xf32> -> vector<4x16x8xf32>
    "tpu.trace_start"() <{level = 10 : i32, message = "hqd,hkd->hqk"}> : () -> ()
    %cst_151 = arith.constant dense<0.000000e+00> : vector<4x8x16xf32>
    %454 = tpu.matmul %435, %444, %cst_151 {dimension_numbers = #tpu.dot_dimension_numbers<[2], [2], [1], [1], [0, 0, 0, 1, 1, 1], [0], [0]>} : vector<4x8x8xf32>, vector<4x16x8xf32>, vector<4x8x16xf32> -> vector<4x8x16xf32>
    "tpu.trace_stop"() : () -> ()
    %455 = vector.shape_cast %12 : vector<1x16xi1> to vector<1x1x16xi1>
    %cst_152 = arith.constant -3.40282347E+38 : f32
    %456 = vector.shape_cast %455 : vector<1x1x16xi1> to vector<1x1x16xi1>
    %457 = vector.broadcast %456 : vector<1x1x16xi1> to vector<4x8x16xi1>
    %458 = vector.broadcast %cst_152 : f32 to vector<4x8x16xf32>
    %459 = arith.select %457, %454, %458 : vector<4x8x16xi1>, vector<4x8x16xf32>
    %cst_153 = arith.constant dense<0xFF800000> : vector<4x8xf32>
    %460 = vector.multi_reduction <maximumf>, %459, %cst_153 [2] : vector<4x8x16xf32> to vector<4x8xf32>
    %461 = vector.shape_cast %460 : vector<4x8xf32> to vector<4x8x1xf32>
    %462 = vector.broadcast %461 : vector<4x8x1xf32> to vector<4x8x16xf32>
    %463 = arith.subf %459, %462 : vector<4x8x16xf32>
    %464 = math.exp %463 : vector<4x8x16xf32>
    %cst_154 = arith.constant dense<0.000000e+00> : vector<4x8xf32>
    %465 = vector.multi_reduction <add>, %464, %cst_154 [2] : vector<4x8x16xf32> to vector<4x8xf32>
    %466 = vector.shape_cast %465 : vector<4x8xf32> to vector<4x8x1xf32>
    %467 = tpu.reciprocal %466 {approx = true} : vector<4x8x1xf32> -> vector<4x8x1xf32>
    %468 = vector.broadcast %467 : vector<4x8x1xf32> to vector<4x8x16xf32>
    %469 = arith.mulf %464, %468 : vector<4x8x16xf32>
    "tpu.trace_start"() <{level = 10 : i32, message = "hqk,hkd->hqd"}> : () -> ()
    %cst_155 = arith.constant dense<0.000000e+00> : vector<4x8x8xf32>
    %470 = tpu.matmul %469, %453, %cst_155 {dimension_numbers = #tpu.dot_dimension_numbers<[2], [1], [1], [2], [0, 0, 0, 1, 1, 2], [0], [0]>} : vector<4x8x16xf32>, vector<4x16x8xf32>, vector<4x8x8xf32> -> vector<4x8x8xf32>
    "tpu.trace_stop"() : () -> ()
    %471 = vector.extract_strided_slice %470 {offsets = [0, 0, 0], sizes = [1, 8, 8], strides = [1, 1, 1]} : vector<4x8x8xf32> to vector<1x8x8xf32>
    %472 = vector.shape_cast %471 : vector<1x8x8xf32> to vector<8x8xf32>
    %473 = vector.extract_strided_slice %470 {offsets = [1, 0, 0], sizes = [1, 8, 8], strides = [1, 1, 1]} : vector<4x8x8xf32> to vector<1x8x8xf32>
    %474 = vector.shape_cast %473 : vector<1x8x8xf32> to vector<8x8xf32>
    %475 = vector.extract_strided_slice %470 {offsets = [2, 0, 0], sizes = [1, 8, 8], strides = [1, 1, 1]} : vector<4x8x8xf32> to vector<1x8x8xf32>
    %476 = vector.shape_cast %475 : vector<1x8x8xf32> to vector<8x8xf32>
    %477 = vector.extract_strided_slice %470 {offsets = [3, 0, 0], sizes = [1, 8, 8], strides = [1, 1, 1]} : vector<4x8x8xf32> to vector<1x8x8xf32>
    %478 = vector.shape_cast %477 : vector<1x8x8xf32> to vector<8x8xf32>
    %479 = tpu.concatenate %472, %474, %476, %478 in 1 : vector<8x8xf32>, vector<8x8xf32>, vector<8x8xf32>, vector<8x8xf32> -> vector<8x32xf32>
    %cst_156 = arith.constant 0.000000e+00 : f32
    %480 = vector.broadcast %cst_156 : f32 to vector<8x32xf32>
    %481 = arith.select %14, %479, %480 : vector<8x32xf32>
    %cst_157 = arith.constant dense<0.000000e+00> : vector<8x32xf32>
    %482 = tpu.matmul %481, %424, %cst_157 {dimension_numbers = #tpu.dot_dimension_numbers<[1], [0], [0], [1], [0, 0, 1, 1], [], []>} : vector<8x32xf32>, vector<32x32xf32>, vector<8x32xf32> -> vector<8x32xf32>
    %483 = vector.broadcast %426 : vector<1x32xf32> to vector<8x32xf32>
    %484 = arith.addf %482, %483 : vector<8x32xf32>
    %485 = arith.addf %378, %484 : vector<8x32xf32>
    %486 = vector.extract_strided_slice %275 {offsets = [2, 0, 0], sizes = [1, 1, 32], strides = [1, 1, 1]} : vector<3x1x32xf32> to vector<1x1x32xf32>
    %487 = vector.shape_cast %486 : vector<1x1x32xf32> to vector<1x32xf32>
    %488 = vector.extract_strided_slice %277 {offsets = [2, 0, 0], sizes = [1, 1, 32], strides = [1, 1, 1]} : vector<3x1x32xf32> to vector<1x1x32xf32>
    %489 = vector.shape_cast %488 : vector<1x1x32xf32> to vector<1x32xf32>
    %cst_158 = arith.constant dense<0.000000e+00> : vector<8xf32>
    %490 = vector.multi_reduction <add>, %485, %cst_158 [1] : vector<8x32xf32> to vector<8xf32>
    %491 = vector.shape_cast %490 : vector<8xf32> to vector<8x1xf32>
    %cst_159 = arith.constant 3.200000e+01 : f32
    %492 = vector.broadcast %cst_159 : f32 to vector<8x1xf32>
    %493 = arith.divf %491, %492 : vector<8x1xf32>
    %494 = vector.broadcast %493 : vector<8x1xf32> to vector<8x32xf32>
    %495 = arith.subf %485, %494 : vector<8x32xf32>
    %496 = arith.mulf %495, %495 : vector<8x32xf32>
    %cst_160 = arith.constant dense<0.000000e+00> : vector<8xf32>
    %497 = vector.multi_reduction <add>, %496, %cst_160 [1] : vector<8x32xf32> to vector<8xf32>
    %498 = vector.shape_cast %497 : vector<8xf32> to vector<8x1xf32>
    %cst_161 = arith.constant 3.200000e+01 : f32
    %499 = vector.broadcast %cst_161 : f32 to vector<8x1xf32>
    %500 = arith.divf %498, %499 : vector<8x1xf32>
    %501 = vector.broadcast %493 : vector<8x1xf32> to vector<8x32xf32>
    %502 = arith.subf %485, %501 : vector<8x32xf32>
    %cst_162 = arith.constant 9.99999996E-13 : f32
    %503 = vector.broadcast %cst_162 : f32 to vector<8x1xf32>
    %504 = arith.addf %500, %503 : vector<8x1xf32>
    %505 = math.rsqrt %504 : vector<8x1xf32>
    %506 = vector.broadcast %505 : vector<8x1xf32> to vector<8x32xf32>
    %507 = arith.mulf %502, %506 : vector<8x32xf32>
    %508 = vector.broadcast %487 : vector<1x32xf32> to vector<8x32xf32>
    %509 = arith.mulf %507, %508 : vector<8x32xf32>
    %510 = vector.broadcast %489 : vector<1x32xf32> to vector<8x32xf32>
    %511 = arith.addf %509, %510 : vector<8x32xf32>
    %c1_163 = arith.constant 1 : index
    %c0_164 = arith.constant 0 : index
    %c0_165 = arith.constant 0 : index
    %512 = vector.load %arg17[%c1_163, %c0_164, %c0_165] : memref<2x32x128xf32, #tpu.memory_space<vmem>>, vector<1x32x128xf32>
    %513 = vector.shape_cast %512 : vector<1x32x128xf32> to vector<32x128xf32>
    %cst_166 = arith.constant dense<0.000000e+00> : vector<8x128xf32>
    %514 = tpu.matmul %511, %513, %cst_166 {dimension_numbers = #tpu.dot_dimension_numbers<[1], [0], [0], [1], [0, 0, 1, 1], [], []>} : vector<8x32xf32>, vector<32x128xf32>, vector<8x128xf32> -> vector<8x128xf32>
    %c1_167 = arith.constant 1 : index
    %c0_168 = arith.constant 0 : index
    %c0_169 = arith.constant 0 : index
    %515 = vector.load %arg18[%c1_167, %c0_168, %c0_169] : memref<2x1x128xf32, #tpu.memory_space<vmem>>, vector<1x1x128xf32>
    %516 = vector.shape_cast %515 : vector<1x1x128xf32> to vector<1x128xf32>
    %517 = vector.broadcast %516 : vector<1x128xf32> to vector<8x128xf32>
    %518 = arith.addf %514, %517 : vector<8x128xf32>
    %cst_170 = arith.constant 0.000000e+00 : f32
    %519 = vector.broadcast %cst_170 : f32 to vector<8x128xf32>
    %520 = arith.maximumf %518, %519 : vector<8x128xf32>
    %c1_171 = arith.constant 1 : index
    %c0_172 = arith.constant 0 : index
    %c0_173 = arith.constant 0 : index
    %521 = vector.load %arg19[%c1_171, %c0_172, %c0_173] : memref<2x128x32xf32, #tpu.memory_space<vmem>>, vector<1x128x32xf32>
    %522 = vector.shape_cast %521 : vector<1x128x32xf32> to vector<128x32xf32>
    %cst_174 = arith.constant dense<0.000000e+00> : vector<8x32xf32>
    %523 = tpu.matmul %520, %522, %cst_174 {dimension_numbers = #tpu.dot_dimension_numbers<[1], [0], [0], [1], [0, 0, 1, 1], [], []>} : vector<8x128xf32>, vector<128x32xf32>, vector<8x32xf32> -> vector<8x32xf32>
    %524 = arith.addf %485, %523 : vector<8x32xf32>
    %c1_175 = arith.constant 1 : index
    %c0_176 = arith.constant 0 : index
    %c0_177 = arith.constant 0 : index
    %525 = vector.load %arg20[%c1_175, %c0_176, %c0_177] : memref<2x1x32xf32, #tpu.memory_space<vmem>>, vector<1x1x32xf32>
    %526 = vector.shape_cast %525 : vector<1x1x32xf32> to vector<1x32xf32>
    %527 = vector.broadcast %526 : vector<1x32xf32> to vector<8x32xf32>
    %528 = arith.addf %524, %527 : vector<8x32xf32>
    %c0_178 = arith.constant 0 : index
    %c0_179 = arith.constant 0 : index
    %529 = vector.load %arg21[%c0_178, %c0_179] : memref<1x32xf32, #tpu.memory_space<vmem>>, vector<1x32xf32>
    %c0_180 = arith.constant 0 : index
    %c0_181 = arith.constant 0 : index
    %530 = vector.load %arg22[%c0_180, %c0_181] : memref<1x32xf32, #tpu.memory_space<vmem>>, vector<1x32xf32>
    %cst_182 = arith.constant dense<0.000000e+00> : vector<8xf32>
    %531 = vector.multi_reduction <add>, %528, %cst_182 [1] : vector<8x32xf32> to vector<8xf32>
    %532 = vector.shape_cast %531 : vector<8xf32> to vector<8x1xf32>
    %cst_183 = arith.constant 3.200000e+01 : f32
    %533 = vector.broadcast %cst_183 : f32 to vector<8x1xf32>
    %534 = arith.divf %532, %533 : vector<8x1xf32>
    %535 = vector.broadcast %534 : vector<8x1xf32> to vector<8x32xf32>
    %536 = arith.subf %528, %535 : vector<8x32xf32>
    %537 = arith.mulf %536, %536 : vector<8x32xf32>
    %cst_184 = arith.constant dense<0.000000e+00> : vector<8xf32>
    %538 = vector.multi_reduction <add>, %537, %cst_184 [1] : vector<8x32xf32> to vector<8xf32>
    %539 = vector.shape_cast %538 : vector<8xf32> to vector<8x1xf32>
    %cst_185 = arith.constant 3.200000e+01 : f32
    %540 = vector.broadcast %cst_185 : f32 to vector<8x1xf32>
    %541 = arith.divf %539, %540 : vector<8x1xf32>
    %542 = vector.broadcast %534 : vector<8x1xf32> to vector<8x32xf32>
    %543 = arith.subf %528, %542 : vector<8x32xf32>
    %cst_186 = arith.constant 9.99999996E-13 : f32
    %544 = vector.broadcast %cst_186 : f32 to vector<8x1xf32>
    %545 = arith.addf %541, %544 : vector<8x1xf32>
    %546 = math.rsqrt %545 : vector<8x1xf32>
    %547 = vector.broadcast %546 : vector<8x1xf32> to vector<8x32xf32>
    %548 = arith.mulf %543, %547 : vector<8x32xf32>
    %549 = vector.broadcast %529 : vector<1x32xf32> to vector<8x32xf32>
    %550 = arith.mulf %548, %549 : vector<8x32xf32>
    %551 = vector.broadcast %530 : vector<1x32xf32> to vector<8x32xf32>
    %552 = arith.addf %550, %551 : vector<8x32xf32>
    %c0_187 = arith.constant 0 : index
    %c0_188 = arith.constant 0 : index
    %553 = vector.load %arg23[%c0_187, %c0_188] : memref<32x128xf32, #tpu.memory_space<vmem>>, vector<32x128xf32>
    %cst_189 = arith.constant dense<0.000000e+00> : vector<8x128xf32>
    %554 = tpu.matmul %552, %553, %cst_189 {dimension_numbers = #tpu.dot_dimension_numbers<[1], [0], [0], [1], [0, 0, 1, 1], [], []>} : vector<8x32xf32>, vector<32x128xf32>, vector<8x128xf32> -> vector<8x128xf32>
    %c0_190 = arith.constant 0 : index
    %c0_191 = arith.constant 0 : index
    %555 = vector.load %arg24[%c0_190, %c0_191] : memref<1x128xf32, #tpu.memory_space<vmem>>, vector<1x128xf32>
    %556 = vector.broadcast %555 : vector<1x128xf32> to vector<8x128xf32>
    %557 = arith.addf %554, %556 : vector<8x128xf32>
    %c0_192 = arith.constant 0 : index
    %c0_193 = arith.constant 0 : index
    %c0_194 = arith.constant 0 : index
    %558 = vector.load %arg25[%c0_192, %c0_193, %c0_194] : memref<1x8x128xf32, #tpu.memory_space<vmem>>, vector<1x8x128xf32>
    %559 = vector.shape_cast %558 : vector<1x8x128xf32> to vector<8x128xf32>
    %560 = vector.shape_cast %557 : vector<8x128xf32> to vector<1x8x128xf32>
    tpu.vector_store %arg25[%c0_192, %c0_193, %c0_194], %560 {strides = array<i32>} : memref<1x8x128xf32, #tpu.memory_space<vmem>>, vector<1x8x128xf32>,
    return
  }
  func.func @transform_0(%arg0: i32, %arg1: memref<2xi32, #tpu.memory_space<smem>>, %arg2: memref<2xi32, #tpu.memory_space<smem>>) -> (i32, i32, i32) {
    %c0_i32 = arith.constant 0 : i32
    %c0_i32_0 = arith.constant 0 : i32
    %c0_i32_1 = arith.constant 0 : i32
    return %arg0, %c0_i32, %c0_i32_0 : i32, i32, i32
  }
  func.func @transform_1(%arg0: i32, %arg1: memref<2xi32, #tpu.memory_space<smem>>, %arg2: memref<2xi32, #tpu.memory_space<smem>>) -> (i32, i32, i32) {
    %c0_i32 = arith.constant 0 : i32
    %c0_i32_0 = arith.constant 0 : i32
    %c0_i32_1 = arith.constant 0 : i32
    return %arg0, %c0_i32, %c0_i32_0 : i32, i32, i32
  }
  func.func @transform_2(%arg0: i32, %arg1: memref<2xi32, #tpu.memory_space<smem>>, %arg2: memref<2xi32, #tpu.memory_space<smem>>) -> (i32, i32, i32, i32) {
    %c0_i32 = arith.constant 0 : i32
    %c0_i32_0 = arith.constant 0 : i32
    %c0_i32_1 = arith.constant 0 : i32
    %c0_i32_2 = arith.constant 0 : i32
    %c0_i32_3 = arith.constant 0 : i32
    return %c0_i32, %c0_i32_0, %c0_i32_1, %c0_i32_2 : i32, i32, i32, i32
  }
  func.func @transform_3(%arg0: i32, %arg1: memref<2xi32, #tpu.memory_space<smem>>, %arg2: memref<2xi32, #tpu.memory_space<smem>>) -> (i32, i32, i32, i32) {
    %c0_i32 = arith.constant 0 : i32
    %c0_i32_0 = arith.constant 0 : i32
    %c0_i32_1 = arith.constant 0 : i32
    %c0_i32_2 = arith.constant 0 : i32
    %c0_i32_3 = arith.constant 0 : i32
    return %c0_i32, %c0_i32_0, %c0_i32_1, %c0_i32_2 : i32, i32, i32, i32
  }
  func.func @transform_4(%arg0: i32, %arg1: memref<2xi32, #tpu.memory_space<smem>>, %arg2: memref<2xi32, #tpu.memory_space<smem>>) -> (i32, i32, i32) {
    %c0_i32 = arith.constant 0 : i32
    %c0_i32_0 = arith.constant 0 : i32
    %c0_i32_1 = arith.constant 0 : i32
    %c0_i32_2 = arith.constant 0 : i32
    return %c0_i32, %c0_i32_0, %c0_i32_1 : i32, i32, i32
  }
  func.func @transform_5(%arg0: i32, %arg1: memref<2xi32, #tpu.memory_space<smem>>, %arg2: memref<2xi32, #tpu.memory_space<smem>>) -> (i32, i32, i32) {
    %c0_i32 = arith.constant 0 : i32
    %c0_i32_0 = arith.constant 0 : i32
    %c0_i32_1 = arith.constant 0 : i32
    %c0_i32_2 = arith.constant 0 : i32
    return %c0_i32, %c0_i32_0, %c0_i32_1 : i32, i32, i32
  }
  func.func @transform_6(%arg0: i32, %arg1: memref<2xi32, #tpu.memory_space<smem>>, %arg2: memref<2xi32, #tpu.memory_space<smem>>) -> (i32, i32, i32) {
    %c0_i32 = arith.constant 0 : i32
    %c0_i32_0 = arith.constant 0 : i32
    %c0_i32_1 = arith.constant 0 : i32
    %c0_i32_2 = arith.constant 0 : i32
    return %c0_i32, %c0_i32_0, %c0_i32_1 : i32, i32, i32
  }
  func.func @transform_7(%arg0: i32, %arg1: memref<2xi32, #tpu.memory_space<smem>>, %arg2: memref<2xi32, #tpu.memory_space<smem>>) -> (i32, i32, i32) {
    %c0_i32 = arith.constant 0 : i32
    %c0_i32_0 = arith.constant 0 : i32
    %c0_i32_1 = arith.constant 0 : i32
    %c0_i32_2 = arith.constant 0 : i32
    return %c0_i32, %c0_i32_0, %c0_i32_1 : i32, i32, i32
  }
  func.func @transform_8(%arg0: i32, %arg1: memref<2xi32, #tpu.memory_space<smem>>, %arg2: memref<2xi32, #tpu.memory_space<smem>>) -> (i32, i32, i32) {
    %c0_i32 = arith.constant 0 : i32
    %c0_i32_0 = arith.constant 0 : i32
    %c0_i32_1 = arith.constant 0 : i32
    %c0_i32_2 = arith.constant 0 : i32
    return %c0_i32, %c0_i32_0, %c0_i32_1 : i32, i32, i32
  }
  func.func @transform_9(%arg0: i32, %arg1: memref<2xi32, #tpu.memory_space<smem>>, %arg2: memref<2xi32, #tpu.memory_space<smem>>) -> (i32, i32, i32) {
    %c0_i32 = arith.constant 0 : i32
    %c0_i32_0 = arith.constant 0 : i32
    %c0_i32_1 = arith.constant 0 : i32
    %c0_i32_2 = arith.constant 0 : i32
    return %c0_i32, %c0_i32_0, %c0_i32_1 : i32, i32, i32
  }
  func.func @transform_10(%arg0: i32, %arg1: memref<2xi32, #tpu.memory_space<smem>>, %arg2: memref<2xi32, #tpu.memory_space<smem>>) -> (i32, i32, i32) {
    %c0_i32 = arith.constant 0 : i32
    %c0_i32_0 = arith.constant 0 : i32
    %c0_i32_1 = arith.constant 0 : i32
    %c0_i32_2 = arith.constant 0 : i32
    return %c0_i32, %c0_i32_0, %c0_i32_1 : i32, i32, i32
  }
  func.func @transform_11(%arg0: i32, %arg1: memref<2xi32, #tpu.memory_space<smem>>, %arg2: memref<2xi32, #tpu.memory_space<smem>>) -> (i32, i32, i32) {
    %c0_i32 = arith.constant 0 : i32
    %c0_i32_0 = arith.constant 0 : i32
    %c0_i32_1 = arith.constant 0 : i32
    %c0_i32_2 = arith.constant 0 : i32
    return %c0_i32, %c0_i32_0, %c0_i32_1 : i32, i32, i32
  }
  func.func @transform_12(%arg0: i32, %arg1: memref<2xi32, #tpu.memory_space<smem>>, %arg2: memref<2xi32, #tpu.memory_space<smem>>) -> (i32, i32, i32) {
    %c0_i32 = arith.constant 0 : i32
    %c0_i32_0 = arith.constant 0 : i32
    %c0_i32_1 = arith.constant 0 : i32
    %c0_i32_2 = arith.constant 0 : i32
    return %c0_i32, %c0_i32_0, %c0_i32_1 : i32, i32, i32
  }
  func.func @transform_13(%arg0: i32, %arg1: memref<2xi32, #tpu.memory_space<smem>>, %arg2: memref<2xi32, #tpu.memory_space<smem>>) -> (i32, i32, i32) {
    %c0_i32 = arith.constant 0 : i32
    %c0_i32_0 = arith.constant 0 : i32
    %c0_i32_1 = arith.constant 0 : i32
    %c0_i32_2 = arith.constant 0 : i32
    return %c0_i32, %c0_i32_0, %c0_i32_1 : i32, i32, i32
  }
  func.func @transform_14(%arg0: i32, %arg1: memref<2xi32, #tpu.memory_space<smem>>, %arg2: memref<2xi32, #tpu.memory_space<smem>>) -> (i32, i32, i32) {
    %c0_i32 = arith.constant 0 : i32
    %c0_i32_0 = arith.constant 0 : i32
    %c0_i32_1 = arith.constant 0 : i32
    %c0_i32_2 = arith.constant 0 : i32
    return %c0_i32, %c0_i32_0, %c0_i32_1 : i32, i32, i32
  }
  func.func @transform_15(%arg0: i32, %arg1: memref<2xi32, #tpu.memory_space<smem>>, %arg2: memref<2xi32, #tpu.memory_space<smem>>) -> (i32, i32, i32) {
    %c0_i32 = arith.constant 0 : i32
    %c0_i32_0 = arith.constant 0 : i32
    %c0_i32_1 = arith.constant 0 : i32
    %c0_i32_2 = arith.constant 0 : i32
    return %c0_i32, %c0_i32_0, %c0_i32_1 : i32, i32, i32
  }
  func.func @transform_16(%arg0: i32, %arg1: memref<2xi32, #tpu.memory_space<smem>>, %arg2: memref<2xi32, #tpu.memory_space<smem>>) -> (i32, i32, i32) {
    %c0_i32 = arith.constant 0 : i32
    %c0_i32_0 = arith.constant 0 : i32
    %c0_i32_1 = arith.constant 0 : i32
    %c0_i32_2 = arith.constant 0 : i32
    return %c0_i32, %c0_i32_0, %c0_i32_1 : i32, i32, i32
  }
  func.func @transform_17(%arg0: i32, %arg1: memref<2xi32, #tpu.memory_space<smem>>, %arg2: memref<2xi32, #tpu.memory_space<smem>>) -> (i32, i32, i32) {
    %c0_i32 = arith.constant 0 : i32
    %c0_i32_0 = arith.constant 0 : i32
    %c0_i32_1 = arith.constant 0 : i32
    %c0_i32_2 = arith.constant 0 : i32
    return %c0_i32, %c0_i32_0, %c0_i32_1 : i32, i32, i32
  }
  func.func @transform_18(%arg0: i32, %arg1: memref<2xi32, #tpu.memory_space<smem>>, %arg2: memref<2xi32, #tpu.memory_space<smem>>) -> (i32, i32) {
    %c0_i32 = arith.constant 0 : i32
    %c0_i32_0 = arith.constant 0 : i32
    %c0_i32_1 = arith.constant 0 : i32
    return %c0_i32, %c0_i32_0 : i32, i32
  }
  func.func @transform_19(%arg0: i32, %arg1: memref<2xi32, #tpu.memory_space<smem>>, %arg2: memref<2xi32, #tpu.memory_space<smem>>) -> (i32, i32) {
    %c0_i32 = arith.constant 0 : i32
    %c0_i32_0 = arith.constant 0 : i32
    %c0_i32_1 = arith.constant 0 : i32
    return %c0_i32, %c0_i32_0 : i32, i32
  }
  func.func @transform_20(%arg0: i32, %arg1: memref<2xi32, #tpu.memory_space<smem>>, %arg2: memref<2xi32, #tpu.memory_space<smem>>) -> (i32, i32) {
    %c0_i32 = arith.constant 0 : i32
    %c0_i32_0 = arith.constant 0 : i32
    %c0_i32_1 = arith.constant 0 : i32
    return %c0_i32, %c0_i32_0 : i32, i32
  }
  func.func @transform_21(%arg0: i32, %arg1: memref<2xi32, #tpu.memory_space<smem>>, %arg2: memref<2xi32, #tpu.memory_space<smem>>) -> (i32, i32) {
    %c0_i32 = arith.constant 0 : i32
    %c0_i32_0 = arith.constant 0 : i32
    %c0_i32_1 = arith.constant 0 : i32
    return %c0_i32, %c0_i32_0 : i32, i32
  }
  func.func @transform_22(%arg0: i32, %arg1: memref<2xi32, #tpu.memory_space<smem>>, %arg2: memref<2xi32, #tpu.memory_space<smem>>) -> (i32, i32, i32) {
    %c0_i32 = arith.constant 0 : i32
    %c0_i32_0 = arith.constant 0 : i32
    %c0_i32_1 = arith.constant 0 : i32
    return %arg0, %c0_i32, %c0_i32_0 : i32, i32, i32
  }
}

</mosaic_0001>

<bundles_post_ra>
// kernel: tpu_custom_call.1
= control target key start
LH: loop header
LB: loop body
LE: loop exit
PB: predicated region body
PF: predicated region fallthrough
CT: control target
= control target key end

     0   :  { %s8504_s0 = inlined_call_operand.hbm [shape: s32[2], index: 0, kind: input, shape index: {}]   ;;  %s8505_s2 = inlined_call_operand.hbm [shape: f32[2,8,32], index: 2, kind: input, shape index: {}]   ;;  %s8506_s3 = inlined_call_operand.hbm [shape: f32[2,16,32], index: 3, kind: input, shape index: {}]   ;;  %s8507_s4 = inlined_call_operand.hbm [shape: f32[2,3,1,32], index: 4, kind: input, shape index: {}]   ;;  %s8508_s5 = inlined_call_operand.hbm [shape: f32[2,3,1,32], index: 5, kind: input, shape index: {}]   ;;  %s8509_s6 = inlined_call_operand.vmem [shape: f32[2,32,128], index: 6, kind: input, shape index: {}]   ;;  %s8510_s7 = inlined_call_operand.vmem [shape: f32[2,1,128], index: 7, kind: input, shape index: {}]   ;;  %s8511_s8 = inlined_call_operand.vmem [shape: f32[2,32,32], index: 8, kind: input, shape index: {}]   ;;  %s8512_s9 = inlined_call_operand.vmem [shape: f32[2,1,32], index: 9, kind: input, shape index: {}]   ;;  %s8513_s10 = inlined_call_operand.vmem [shape: f32[2,32,32], index: 10, kind: input, shape index: {}]   ;;  %s8514_s11 = inlined_call_operand.hbm [shape: f32[2,1,32], index: 11, kind: input, shape index: {}]   ;;  %s8515_s12 = inlined_call_operand.vmem [shape: f32[2,32,128], index: 12, kind: input, shape index: {}]   ;;  %s8516_s13 = inlined_call_operand.hbm [shape: f32[2,1,128], index: 13, kind: input, shape index: {}]   ;;  %s8517_s14 = inlined_call_operand.vmem [shape: f32[2,32,32], index: 14, kind: input, shape index: {}]   ;;  %s8518_s15 = inlined_call_operand.hbm [shape: f32[2,1,32], index: 15, kind: input, shape index: {}]   ;;  %s8519_s16 = inlined_call_operand.hbm [shape: f32[2,32,128], index: 16, kind: input, shape index: {}]   ;;  %s8520_s17 = inlined_call_operand.hbm [shape: f32[2,1,128], index: 17, kind: input, shape index: {}]   ;;  %s8521_s18 = inlined_call_operand.vmem [shape: f32[2,128,32], index: 18, kind: input, shape index: {}]   ;;  %s8522_s19 = inlined_call_operand.hbm [shape: f32[2,1,32], index: 19, kind: input, shape index: {}]   ;;  %s8523_s20 = inlined_call_operand.vmem [shape: f32[1,32], index: 20, kind: input, shape index: {}]   ;;  %s8524_s21 = inlined_call_operand.vmem [shape: f32[1,32], index: 21, kind: input, shape index: {}]   ;;  %s8525_s22 = inlined_call_operand.hbm [shape: f32[32,128], index: 22, kind: input, shape index: {}]   ;;  %s8526_s23 = inlined_call_operand.vmem [shape: f32[1,128], index: 23, kind: input, shape index: {}]   ;;  %s8527_s24 = inlined_call_operand.hbm [shape: f32[2,8,128], index: 24, kind: output, shape index: {}]   ;;  %s8528_s1 = inlined_call_operand.hbm [shape: s32[2], index: 1, kind: input, shape index: {}]  }
   0x1   :  { %8577 = sst [smem:[#allocation33_spill]] %s8504_s0 }
   0x2   :  { %8578 = sst [smem:[#allocation34_spill]] %s8505_s2  ;;  %s8601_s27 = sld [smem:[#allocation33_spill]] }
   0x3   :  { %8579 = sst [smem:[#allocation35_spill]] %s8506_s3 }
   0x4   :  { %8580 = sst [smem:[#allocation36_spill]] %s8507_s4 }
   0x5   :  { %8581 = sst [smem:[#allocation37_spill]] %s8508_s5 }
   0x6   :  { %8582 = sst [smem:[#allocation38_spill]] %s8509_s6 }
   0x7   :  { %8583 = sst [smem:[#allocation39_spill]] %s8510_s7 }
   0x8   :  { %8584 = sst [smem:[#allocation40_spill]] %s8511_s8 }
   0x9   :  { %8585 = sst [smem:[#allocation41_spill]] %s8512_s9 }
   0xa   :  { %8586 = sst [smem:[#allocation42_spill]] %s8513_s10 }
   0xb   :  { %8587 = sst [smem:[#allocation43_spill]] %s8514_s11 }
   0xc   :  { %8588 = sst [smem:[#allocation44_spill]] %s8515_s12 }
   0xd   :  { %8589 = sst [smem:[#allocation45_spill]] %s8516_s13 }
   0xe   :  { %8590 = sst [smem:[#allocation46_spill]] %s8517_s14 }
   0xf   :  { %8591 = sst [smem:[#allocation47_spill]] %s8518_s15 }
  0x10   :  { %8592 = sst [smem:[#allocation48_spill]] %s8519_s16 }
  0x11   :  { %8593 = sst [smem:[#allocation49_spill]] %s8520_s17 }
  0x12   :  { %8594 = sst [smem:[#allocation50_spill]] %s8521_s18  ;;  %s6657_s18 = scalar_lea.hbm %s8601_s27, 16 }
  0x13   :  { %8595 = sst [smem:[#allocation51_spill]] %s8522_s19  ;;  %p6658_p0 = scmp.ne.s32.totalorder %s8601_s27, %s6657_s18 }
  0x14   :  { %8596 = sst [smem:[#allocation52_spill]] %s8523_s20  ;;  %p6661_p1 = scmp.lt.u32.totalorder %s6657_s18, %s8601_s27 }
  0x15   :  { %8597 = sst [smem:[#allocation53_spill]] %s8524_s21 }
  0x16   :  { %8598 = sst [smem:[#allocation54_spill]] %s8525_s22  ;;  %p6663_p2 = pnand %p6661_p1, %p6658_p0 }
  0x17   :  { %8599 = sst [smem:[#allocation55_spill]] %s8526_s23 }
  0x18   :  { %8600 = sst [smem:[#allocation56_spill]] %s8527_s24 }
  0x19   :  { %6666 = shalt.err (!%p6663_p2)  }
  0x1a   :  { %s7083_s0 = smov [#allocation3]   ;;  %s6667_s9 = scalar_lea.hbm %s8528_s1, 16 }
  0x1b   :  { %30 = dma.hbm_to_smem %s8601_s27, 16, %s7083_s0, [#allocation2] }
  0x1c   :  { %p6668_p3 = scmp.ne.s32.totalorder %s8528_s1, %s6667_s9  ;;  %p6671_p4 = scmp.lt.u32.totalorder %s6667_s9, %s8528_s1 }
  0x1e   :  { %p6673_p5 = pnand %p6671_p4, %p6668_p3 }
  0x20   :  { %6676 = shalt.err (!%p6673_p5)  }
  0x21   :  { %s7084_s18 = smov [#allocation4]  }
  0x22   :  { %32 = dma.hbm_to_smem %s8528_s1, 16, %s7084_s18, [#allocation2] }
  0x23   :  { %7033 = dma.done.wait [#allocation2], 32 }
  0x24   :  { %7034 = vsyncadd [#allocation2], 4294967264 }
  0x25   :  { %34 = sfence }
  0x26   :  { %35 = vsyncpa [#allocation6], 0 }
  0x27   :  { %37 = vsyncpa [#allocation6 + $0x1], 0 }
  0x28   :  { %38 = vsyncpa [#allocation9], 0 }
  0x29   :  { %40 = vsyncpa [#allocation9 + $0x1], 0 }
  0x2a   :  { %41 = vsyncpa [#allocation12], 0 }
  0x2b   :  { %42 = vsyncpa [#allocation15], 0 }
  0x2c   :  { %43 = vsyncpa [#allocation18], 0 }
  0x2d   :  { %44 = vsyncpa [#allocation21], 0 }
  0x2e   :  { %45 = vsyncpa [#allocation7], 0 }
  0x2f   :  { %47 = vsyncpa [#allocation7 + $0x1], 0  ;;  %s7261_s27 = smov 0   ;;  %s7263_s3 = smov 0  }
  0x30   :  { %s7265_s29 = smov 0   ;;  %s7267_s1 = smov 0  }
  0x31 LB: > { %s7085_s0 = smov [#allocation10]   ;;  %s7282_s30 = sadd.s32 4294967295, %s7081_s1   ;;  %s7081_s1 = sphi %s7267_s1, %s8674_s1   ;;  %s7077_s29 = sphi %s7265_s29, %s8673_s29   ;;  %s7073_s3 = sphi %s7263_s3, %s8672_s3   ;;  %s7069_s27 = sphi %s7261_s27, %s8671_s27  }
  0x32   : > { %s568_s8 = sshll.u32 %s7085_s0, 4  ;;  %p5406_p6 = scmp.ge.s32.totalorder %s7081_s1, 1  ;;  %s7287_s8 = int_to_ptr.vmem [resolvable:$true] %s568_s8 }
  0x33   : > { %p8543_p7 = scmp.eq.s32.totalorder %s7282_s30, 0  ;;  %p556_p8 = scmp.lt.s32.totalorder %s7081_s1, 3 }
  0x34   : > { %s7086_s25 = smov [#allocation11]   ;;  %s7087_s2 = smov [#allocation14]  }
  0x35   : > { %p7289_p9 = pnand %p5406_p6, %p556_p8  ;;  %s581_s9 = sshll.u32 %s7086_s25, 4  ;;  %s7302_s9 = int_to_ptr.vmem [resolvable:$true] %s581_s9 }
  0x36   : > { %s625_s6 = sshll.u32 %s7087_s2, 4  ;;  %s8604_s28 = sld [smem:[#allocation36_spill]]  ;;  %s7304_s6 = int_to_ptr.vmem [resolvable:$true] %s625_s6 }
  0x37   : > { %s8602_s4 = scalar_select %p7289_p9, 1, 0 }
  0x38   : > { %p6392_p11 = pneg %p7289_p9 }
  0x3a   : > { %p7298_p12 = pnand %p6392_p11, %p8543_p7 }
  0x3c   : > { %s6677_s7 = scalar_lea.hbm %s8604_s28, 96  ;;  %p7314_p0 = pneg %p7298_p12 }
  0x3d   : > { %p6678_p13 = scmp.ne.s32.totalorder %s8604_s28, %s6677_s7  ;;  %p6684_p3 = scmp.lt.u32.totalorder %s6677_s7, %s8604_s28 }
  0x3f   : > { %p6680_p1 = pnand %p7314_p0, %p6678_p13 }
  0x41   : > { %p6681_p2 = pneg %p6680_p1 }
  0x43   : > { %p6686_p4 = pnand %p6684_p3, %p6681_p2 }
  0x45   : > { %6689 = shalt.err (!%p6686_p4)
}
  0x46   : > { %s6690_s24 = scalar_lea.vmem %s7287_s8, 96  ;;  %p6698_p11 = scmp.lt.s32.totalorder %s7287_s8, %s7287_s8 }
  0x47   : > { %p6691_p5 = scmp.ne.s32.totalorder %s7287_s8, %s6690_s24  ;;  %p6699_p10 = scmp.lt.s32.totalorder %s6690_s24, %s6690_s24 }
  0x49   : > { %p6693_p6 = pnand %p6691_p5, %p7314_p0  ;;  %p6700_p13 = por %p6699_p10, %p6698_p11 }
  0x4b   : > { %p6694_p8 = pneg %p6693_p6 }
  0x4d   : > { %p6701_p1 = pnand %p6700_p13, %p6694_p8 }
  0x4f   : > { %6704 = shalt.err (!%p6701_p1)
}
  0x50   : > { %s8545_s26 = smov 16   ;;  %s8547_s23 = smov 1  }
  0x51   : > { %6395 = dma.hbm_to_vmem [thread:$0]  (!%p7298_p12), %s8604_s28, 96, %s7287_s8, [#allocation9], %s8545_s26, %s8545_s26, %s8547_s23  }
  0x52   : > { %s8606_s21 = sld [smem:[#allocation37_spill]] }
  0x58   : > { %s6705_s24 = scalar_lea.hbm %s8606_s21, 96 }
  0x59   : > { %p6706_p10 = scmp.ne.s32.totalorder %s8606_s21, %s6705_s24  ;;  %p6712_p4 = scmp.lt.u32.totalorder %s6705_s24, %s8606_s21 }
  0x5b   : > { %p6708_p2 = pnand %p6706_p10, %p7314_p0 }
  0x5d   : > { %p6709_p3 = pneg %p6708_p2 }
  0x5f   : > { %p6714_p5 = pnand %p6712_p4, %p6709_p3 }
  0x61   : > { %6717 = shalt.err (!%p6714_p5)
}
  0x62   : > { %s6718_s8 = scalar_lea.vmem %s7302_s9, 96  ;;  %p6726_p13 = scmp.lt.s32.totalorder %s7302_s9, %s7302_s9 }
  0x63   : > { %p6719_p6 = scmp.ne.s32.totalorder %s7302_s9, %s6718_s8  ;;  %p6727_p1 = scmp.lt.s32.totalorder %s6718_s8, %s6718_s8 }
  0x65   : > { %p6721_p8 = pnand %p6719_p6, %p7314_p0  ;;  %p6728_p10 = por %p6727_p1, %p6726_p13 }
  0x67   : > { %p6722_p11 = pneg %p6721_p8 }
  0x69   : > { %p6729_p2 = pnand %p6728_p10, %p6722_p11 }
  0x6b   : > { %6732 = shalt.err (!%p6729_p2)
}
  0x6c   : > { %6398 = dma.hbm_to_vmem [thread:$0]  (!%p7298_p12), %s8606_s21, 96, %s7302_s9, [#allocation12], %s8545_s26, %s8545_s26, %s8547_s23  }
  0x6d   : > { %s8607_s13 = sld [smem:[#allocation45_spill]] }
  0x73   : > { %s6733_s18 = scalar_lea.hbm %s8607_s13, 32 }
  0x74   : > { %p6734_p3 = scmp.ne.s32.totalorder %s8607_s13, %s6733_s18  ;;  %p6740_p6 = scmp.lt.u32.totalorder %s6733_s18, %s8607_s13 }
  0x76   : > { %p6736_p4 = pnand %p6734_p3, %p7314_p0 }
  0x78   : > { %p6737_p5 = pneg %p6736_p4 }
  0x7a   : > { %p6742_p8 = pnand %p6740_p6, %p6737_p5 }
  0x7c   : > { %6745 = shalt.err (!%p6742_p8)
}
  0x7d   : > { %s6746_s9 = scalar_lea.vmem %s7304_s6, 32  ;;  %p6754_p10 = scmp.lt.s32.totalorder %s7304_s6, %s7304_s6 }
  0x7e   : > { %p6747_p11 = scmp.ne.s32.totalorder %s7304_s6, %s6746_s9  ;;  %p6755_p2 = scmp.lt.s32.totalorder %s6746_s9, %s6746_s9 }
  0x80   : > { %p6749_p13 = pnand %p6747_p11, %p7314_p0  ;;  %p6756_p3 = por %p6755_p2, %p6754_p10 }
  0x82   : > { %p6750_p1 = pneg %p6749_p13 }
  0x84   : > { %p6757_p4 = pnand %p6756_p3, %p6750_p1 }
  0x86   : > { %6760 = shalt.err (!%p6757_p4)
}
  0x87   : > { %6404 = dma.hbm_to_vmem [thread:$0]  (!%p7298_p12), %s8607_s13, 32, %s7304_s6, [#allocation15], %s8545_s26, %s8545_s26, %s8547_s23  }
  0x88   : > { %s7090_s12 = smov [#allocation17]   ;;  %s8608_s16 = sld [smem:[#allocation48_spill]] }
  0x89   : > { %s654_s14 = sshll.u32 %s7090_s12, 4  ;;  %s655_s14 = int_to_ptr.vmem [resolvable:$true] %s654_s14 }
  0x8e   : > { %s6761_s7 = scalar_lea.hbm %s8608_s16, 1024 }
  0x8f   : > { %p6762_p5 = scmp.ne.s32.totalorder %s8608_s16, %s6761_s7  ;;  %p6768_p11 = scmp.lt.u32.totalorder %s6761_s7, %s8608_s16 }
  0x91   : > { %p6764_p6 = pnand %p6762_p5, %p7314_p0 }
  0x93   : > { %p6765_p8 = pneg %p6764_p6 }
  0x95   : > { %p6770_p13 = pnand %p6768_p11, %p6765_p8 }
  0x97   : > { %6773 = shalt.err (!%p6770_p13)
}
  0x98   : > { %s6774_s6 = scalar_lea.vmem %s655_s14, 1024  ;;  %p6782_p3 = scmp.lt.s32.totalorder %s655_s14, %s655_s14 }
  0x99   : > { %p6775_p1 = scmp.ne.s32.totalorder %s655_s14, %s6774_s6  ;;  %p6783_p4 = scmp.lt.s32.totalorder %s6774_s6, %s6774_s6 }
  0x9b   : > { %p6777_p10 = pnand %p6775_p1, %p7314_p0  ;;  %p6784_p7 = por %p6783_p4, %p6782_p3 }
  0x9d   : > { %p6778_p2 = pneg %p6777_p10 }
  0x9f   : > { %p6785_p9 = pnand %p6784_p7, %p6778_p2 }
  0xa1   : > { %6788 = shalt.err (!%p6785_p9)
}
  0xa2   : > { %s8549_s8 = smov 128   ;;  %s8551_s10 = smov 8  }
  0xa3   : > { %6410 = dma.hbm_to_vmem [thread:$0]  (!%p7298_p12), %s8608_s16, 1024, %s655_s14, [#allocation18], %s8549_s8, %s8549_s8, %s8551_s10  }
  0xa4   : > { %s7093_s18 = smov [#allocation20]   ;;  %s7094_s0 = smov [#allocation13]  }
  0xa5   : > { %s683_s7 = sshll.u32 %s7093_s18, 4  ;;  %s609_s2 = sshll.u32 %s7094_s0, 4  ;;  %s684_s7 = int_to_ptr.vmem [resolvable:$true] %s683_s7  ;;  %s7411_s2 = int_to_ptr.vmem [resolvable:$true] %s609_s2 }
  0xa6   : > { %s8609_s19 = sld [smem:[#allocation51_spill]] }
  0xac   : > { %s6789_s6 = scalar_lea.hbm %s8609_s19, 32 }
  0xad   : > { %p6790_p7 = scmp.ne.s32.totalorder %s8609_s19, %s6789_s6  ;;  %p6796_p6 = scmp.lt.u32.totalorder %s6789_s6, %s8609_s19 }
  0xaf   : > { %p6792_p9 = pnand %p6790_p7, %p7314_p0 }
  0xb1   : > { %p6793_p5 = pneg %p6792_p9 }
  0xb3   : > { %p6798_p8 = pnand %p6796_p6, %p6793_p5 }
  0xb5   : > { %6801 = shalt.err (!%p6798_p8)
}
  0xb6   : > { %s6802_s20 = scalar_lea.vmem %s684_s7, 32  ;;  %p6810_p10 = scmp.lt.s32.totalorder %s684_s7, %s684_s7 }
  0xb7   : > { %p6803_p11 = scmp.ne.s32.totalorder %s684_s7, %s6802_s20  ;;  %p6811_p2 = scmp.lt.s32.totalorder %s6802_s20, %s6802_s20 }
  0xb9   : > { %p6805_p13 = pnand %p6803_p11, %p7314_p0  ;;  %p6812_p3 = por %p6811_p2, %p6810_p10 }
  0xbb   : > { %p6806_p1 = pneg %p6805_p13 }
  0xbd   : > { %p6813_p4 = pnand %p6812_p3, %p6806_p1 }
  0xbf   : > { %6816 = shalt.err (!%p6813_p4)
}
  0xc0   : > { %s8610_s26 = smov 1   ;;  %s8611_s23 = smov 16  }
  0xc1   : > { %6416 = dma.hbm_to_vmem [thread:$0]  (!%p7298_p12), %s8609_s19, 32, %s684_s7, [#allocation21], %s8611_s23, %s8611_s23, %s8610_s26  }
  0xc2   : > { %s8612_s11 = sld [smem:[#allocation43_spill]] }
  0xc8   : > { %s6817_s6 = scalar_lea.hbm %s8612_s11, 32 }
  0xc9   : > { %p6818_p7 = scmp.ne.s32.totalorder %s8612_s11, %s6817_s6  ;;  %p6824_p6 = scmp.lt.u32.totalorder %s6817_s6, %s8612_s11 }
  0xcb   : > { %p6820_p9 = pnand %p6818_p7, %p7314_p0 }
  0xcd   : > { %p6821_p5 = pneg %p6820_p9 }
  0xcf   : > { %p6826_p8 = pnand %p6824_p6, %p6821_p5 }
  0xd1   : > { %6829 = shalt.err (!%p6826_p8)
}
  0xd2   : > { %s6830_s7 = scalar_lea.vmem %s7411_s2, 32  ;;  %p6838_p10 = scmp.lt.s32.totalorder %s7411_s2, %s7411_s2 }
  0xd3   : > { %p6831_p11 = scmp.ne.s32.totalorder %s7411_s2, %s6830_s7  ;;  %p6839_p2 = scmp.lt.s32.totalorder %s6830_s7, %s6830_s7 }
  0xd5   : > { %p6833_p13 = pnand %p6831_p11, %p7314_p0  ;;  %p6840_p3 = por %p6839_p2, %p6838_p10 }
  0xd7   : > { %p6834_p1 = pneg %p6833_p13 }
  0xd9   : > { %p6841_p4 = pnand %p6840_p3, %p6834_p1 }
  0xdb   : > { %6844 = shalt.err (!%p6841_p4)
}
  0xdc   : > { %6401 = dma.hbm_to_vmem [thread:$0]  (!%p7298_p12), %s8612_s11, 32, %s7411_s2, [#allocation12], %s8611_s23, %s8611_s23, %s8610_s26  }
  0xdd   : > { %s7095_s0 = smov [#allocation16]   ;;  %s7096_s9 = smov [#allocation19]  }
  0xde   : > { %s641_s24 = sshll.u32 %s7095_s0, 4  ;;  %s667_s6 = sshll.u32 %s7096_s9, 4  ;;  %s642_s24 = int_to_ptr.vmem [resolvable:$true] %s641_s24  ;;  %s7460_s6 = int_to_ptr.vmem [resolvable:$true] %s667_s6 }
  0xdf   : > { %s8613_s15 = sld [smem:[#allocation47_spill]] }
  0xe5   : > { %s6845_s20 = scalar_lea.hbm %s8613_s15, 32 }
  0xe6   : > { %p6846_p7 = scmp.ne.s32.totalorder %s8613_s15, %s6845_s20  ;;  %p6852_p6 = scmp.lt.u32.totalorder %s6845_s20, %s8613_s15 }
  0xe8   : > { %p6848_p9 = pnand %p6846_p7, %p7314_p0 }
  0xea   : > { %p6849_p5 = pneg %p6848_p9 }
  0xec   : > { %p6854_p8 = pnand %p6852_p6, %p6849_p5 }
  0xee   : > { %6857 = shalt.err (!%p6854_p8)
}
  0xef   : > { %s6858_s18 = scalar_lea.vmem %s642_s24, 32  ;;  %p6866_p10 = scmp.lt.s32.totalorder %s642_s24, %s642_s24 }
  0xf0   : > { %p6859_p11 = scmp.ne.s32.totalorder %s642_s24, %s6858_s18  ;;  %p6867_p2 = scmp.lt.s32.totalorder %s6858_s18, %s6858_s18 }
  0xf2   : > { %p6861_p13 = pnand %p6859_p11, %p7314_p0  ;;  %p6868_p3 = por %p6867_p2, %p6866_p10 }
  0xf4   : > { %p6862_p1 = pneg %p6861_p13 }
  0xf6   : > { %p6869_p4 = pnand %p6868_p3, %p6862_p1 }
  0xf8   : > { %6872 = shalt.err (!%p6869_p4)
}
  0xf9   : > { %6407 = dma.hbm_to_vmem [thread:$0]  (!%p7298_p12), %s8613_s15, 32, %s642_s24, [#allocation15], %s8611_s23, %s8611_s23, %s8610_s26  }
  0xfa   : > { %s8614_s17 = sld [smem:[#allocation49_spill]] }
 0x100   : > { %s6873_s14 = scalar_lea.hbm %s8614_s17, 32 }
 0x101   : > { %p6874_p7 = scmp.ne.s32.totalorder %s8614_s17, %s6873_s14  ;;  %p6880_p6 = scmp.lt.u32.totalorder %s6873_s14, %s8614_s17 }
 0x103   : > { %p6876_p9 = pnand %p6874_p7, %p7314_p0 }
 0x105   : > { %p6877_p5 = pneg %p6876_p9 }
 0x107   : > { %p6882_p8 = pnand %p6880_p6, %p6877_p5 }
 0x109   : > { %6885 = shalt.err (!%p6882_p8)
}
 0x10a   : > { %s6886_s24 = scalar_lea.vmem %s7460_s6, 32  ;;  %p6894_p10 = scmp.lt.s32.totalorder %s7460_s6, %s7460_s6 }
 0x10b   : > { %p6887_p11 = scmp.ne.s32.totalorder %s7460_s6, %s6886_s24  ;;  %p6895_p2 = scmp.lt.s32.totalorder %s6886_s24, %s6886_s24 }
 0x10d   : > { %p6889_p13 = pnand %p6887_p11, %p7314_p0  ;;  %p6896_p3 = por %p6895_p2, %p6894_p10 }
 0x10f   : > { %p6890_p1 = pneg %p6889_p13 }
 0x111   : > { %p6897_p4 = pnand %p6896_p3, %p6890_p1 }
 0x113   : > { %6900 = shalt.err (!%p6897_p4)
}
 0x114   : > { %6413 = dma.hbm_to_vmem [thread:$0]  (!%p7298_p12), %s8614_s17, 32, %s7460_s6, [#allocation18], %s8611_s23, %s8611_s23, %s8610_s26  }
 0x115   : > { %s7097_s0 = smov [#allocation22]   ;;  %s8615_s22 = sld [smem:[#allocation54_spill]] }
 0x116   : > { %s702_s9 = sshll.u32 %s7097_s0, 4  ;;  %s703_s9 = int_to_ptr.vmem [resolvable:$true] %s702_s9 }
 0x11b   : > { %s6901_s20 = scalar_lea.hbm %s8615_s22, 512 }
 0x11c   : > { %p6902_p7 = scmp.ne.s32.totalorder %s8615_s22, %s6901_s20  ;;  %p6908_p6 = scmp.lt.u32.totalorder %s6901_s20, %s8615_s22 }
 0x11e   : > { %p6904_p9 = pnand %p6902_p7, %p7314_p0 }
 0x120   : > { %p6905_p5 = pneg %p6904_p9 }
 0x122   : > { %p6910_p8 = pnand %p6908_p6, %p6905_p5 }
 0x124   : > { %6913 = shalt.err (!%p6910_p8)
}
 0x125   : > { %s6914_s26 = scalar_lea.vmem %s703_s9, 512  ;;  %p6922_p10 = scmp.lt.s32.totalorder %s703_s9, %s703_s9 }
 0x126   : > { %p6915_p11 = scmp.ne.s32.totalorder %s703_s9, %s6914_s26  ;;  %p6923_p2 = scmp.lt.s32.totalorder %s6914_s26, %s6914_s26 }
 0x128   : > { %p6917_p13 = pnand %p6915_p11, %p7314_p0  ;;  %p6924_p3 = por %p6923_p2, %p6922_p10 }
 0x12a   : > { %p6918_p1 = pneg %p6917_p13 }
 0x12c   : > { %p6925_p4 = pnand %p6924_p3, %p6918_p1 }
 0x12e   : > { %6928 = shalt.err (!%p6925_p4)
}
 0x12f   : > { %s8616_s23 = smov 8   ;;  %s8617_s6 = smov 128  }
 0x130   : > { %6419 = dma.hbm_to_vmem [thread:$0]  (!%p7298_p12), %s8615_s22, 512, %s703_s9, [#allocation21], %s8617_s6, %s8617_s6, %s8616_s23  }
 0x131   : > { %s5405_s5 = sadd.s32 4294967294, %s7081_s1   ;;  %s7532_s25 = sadd.s32 1, %s7081_s1  }
 0x132   : > { %s60_s0 = sadd.s32 1, %s7077_s29  ;;  %s57_s12 = ssub.s32 %s7081_s1, %s7532_s25 }
 0x133   : > { %p67_p0 = scmp.ne.s32.totalorder %s7077_s29, %s7073_s3  ;;  %p58_p7 = scmp.eq.s32.totalorder %s57_s12, 0 }
 0x134   : > { %p68_p9 = scmp.eq.s32.totalorder %s7081_s1, 0  ;;  %p73_p5 = scmp.ne.s32.totalorder %s7073_s3, %s7069_s27 }
 0x135   : > { %p543_p6 = scmp.eq.s32.totalorder %s7282_s30, 1  ;;  %p8618_p11 = scmp.eq.s32.totalorder %s7282_s30, 0 }
 0x136   : > { %s7544_s14 = scalar_select %p58_p7, %s7077_s29, %s60_s0  }
 0x137   : > { %p69_p8 = por %p68_p9, %p67_p0  ;;  %p7548_p13 = por %p8618_p11, %p73_p5 }
 0x138   : > { %p7552_p12 = por %p543_p6, %p67_p0  ;;  %p549_p1 = scmp.eq.s32.totalorder %s5405_s5, 1 }
 0x139   : > { %p6440_p10 = scmp.lt.s32.totalorder %s7081_s1, 2  ;;  %s7558_s7 = sand.u32 1, %s7077_s29  }
 0x13a   : > { %s8620_s9 = scalar_select %p7552_p12, 1, 0 }
 0x13b   : > { %p7560_p2 = por %p549_p1, %p73_p5  ;;  %s5417_s2 = sshll.u32 %s7558_s7, 3 }
 0x13c   : > { %s5418_s24 = sshll.u32 %s7081_s1, 7  ;;  %s8622_s10 = sld [smem:[#allocation34_spill]] }
 0x13d   : > { %s8621_s8 = scalar_select %p7560_p2, 1, 0 }
 0x13e   : > { %s723_s5 = scalar_lea.vmem [#allocation5], %s5417_s2  ;;  %p7571_p3 = pnand %p6440_p10, %p69_p8 }
 0x13f   : > { %s730_s12 = sshll.u32 %s723_s5, 4  ;;  %s720_s15 = scalar_lea.sflag [#allocation6], %s7558_s7  ;;  %s7575_s12 = int_to_ptr.vmem [resolvable:$true] %s730_s12 }
 0x140   : > { %p6931_p0 = pneg %p7571_p3 }
 0x142   : > { %s7569_s0 = scalar_lea.hbm %s8622_s10, %s5418_s24  ;;  %s6934_s26 = scalar_lea.hbm %s8622_s10, 256 }
 0x143   : > { %s6929_s16 = scalar_lea.hbm %s7569_s0, 128  ;;  %p6935_p5 = scmp.lt.u32.totalorder %s7569_s0, %s8622_s10 }
 0x144   : > { %p6930_p4 = scmp.ne.s32.totalorder %s7569_s0, %s6929_s16  ;;  %p6936_p6 = scmp.lt.u32.totalorder %s6934_s26, %s6929_s16 }
 0x145   : > { %p6938_p11 = scmp.lt.u32.totalorder %s6929_s16, %s7569_s0 }
 0x146   : > { %p6932_p7 = pnand %p6931_p0, %p6930_p4  ;;  %p6937_p8 = por %p6936_p6, %p6935_p5 }
 0x148   : > { %p6933_p9 = pneg %p6932_p7  ;;  %p6939_p1 = por %p6938_p11, %p6937_p8 }
 0x14a   : > { %p6940_p10 = pnand %p6939_p1, %p6933_p9 }
 0x14c   : > { %6943 = shalt.err (!%p6940_p10)
}
 0x14d   : > { %s6944_s13 = scalar_lea.vmem %s7575_s12, 128  ;;  %s7098_s2 = smov [#allocation5]  }
 0x14e   : > { %p6945_p4 = scmp.ne.s32.totalorder %s7575_s12, %s6944_s13  ;;  %s6949_s24 = sshll.u32 %s7098_s2, 4  ;;  %s6950_s24 = int_to_ptr.vmem [resolvable:$false] %s6949_s24 }
 0x14f   : > { %s6951_s18 = scalar_lea.vmem %s6950_s24, 256  ;;  %p6952_p12 = scmp.lt.s32.totalorder %s7575_s12, %s6950_s24 }
 0x150   : > { %p6947_p7 = pnand %p6945_p4, %p6931_p0  ;;  %p6953_p5 = scmp.lt.s32.totalorder %s6951_s18, %s6944_s13 }
 0x152   : > { %p6948_p2 = pneg %p6947_p7  ;;  %p6954_p6 = por %p6953_p5, %p6952_p12 }
 0x154   : > { %p6955_p8 = pnand %p6954_p6, %p6948_p2 }
 0x156   : > { %6958 = shalt.err (!%p6955_p8)
}
 0x157   : > { %6423 = dma.hbm_to_vmem [thread:$0]  (!%p7571_p3), %s7569_s0, 128, %s7575_s12, %s720_s15  }
 0x158   : > { %s8624_s16 = sshll.u32 %s7558_s7, 4  ;;  %s737_s2 = sand.u32 1, %s7081_s1  }
 0x159   : > { %s741_s26 = scalar_lea.vmem [#allocation8], %s8624_s16  ;;  %s5577_s24 = sshll.u32 %s7081_s1, 8 }
 0x15a   : > { %s748_s5 = sshll.u32 %s741_s26, 4  ;;  %s8625_s10 = sld [smem:[#allocation35_spill]]  ;;  %s7607_s5 = int_to_ptr.vmem [resolvable:$true] %s748_s5 }
 0x15b   : > { %s7615_s19 = scalar_lea.sflag [#allocation9], %s737_s2 }
 0x160   : > { %s7613_s17 = scalar_lea.hbm %s8625_s10, %s5577_s24  ;;  %s6964_s0 = scalar_lea.hbm %s8625_s10, 512 }
 0x161   : > { %s6959_s21 = scalar_lea.hbm %s7613_s17, 256  ;;  %p6965_p11 = scmp.lt.u32.totalorder %s7613_s17, %s8625_s10 }
 0x162   : > { %p6960_p12 = scmp.ne.s32.totalorder %s7613_s17, %s6959_s21  ;;  %p6966_p1 = scmp.lt.u32.totalorder %s6964_s0, %s6959_s21 }
 0x163   : > { %p6968_p4 = scmp.lt.u32.totalorder %s6959_s21, %s7613_s17 }
 0x164   : > { %p6962_p2 = pnand %p6960_p12, %p6931_p0  ;;  %p6967_p10 = por %p6966_p1, %p6965_p11 }
 0x166   : > { %p6963_p9 = pneg %p6962_p2  ;;  %p6969_p7 = por %p6968_p4, %p6967_p10 }
 0x168   : > { %p6970_p5 = pnand %p6969_p7, %p6963_p9 }
 0x16a   : > { %6973 = shalt.err (!%p6970_p5)
}
 0x16b   : > { %s6974_s26 = scalar_lea.vmem %s7607_s5, 256  ;;  %s7099_s2 = smov [#allocation8]  }
 0x16c   : > { %p6975_p6 = scmp.ne.s32.totalorder %s7607_s5, %s6974_s26  ;;  %s6979_s24 = sshll.u32 %s7099_s2, 4  ;;  %s6980_s24 = int_to_ptr.vmem [resolvable:$false] %s6979_s24 }
 0x16d   : > { %s6981_s13 = scalar_lea.vmem %s6980_s24, 512  ;;  %p6982_p2 = scmp.lt.s32.totalorder %s7607_s5, %s6980_s24 }
 0x16e   : > { %p6977_p8 = pnand %p6975_p6, %p6931_p0  ;;  %p6983_p11 = scmp.lt.s32.totalorder %s6981_s13, %s6974_s26 }
 0x170   : > { %p6978_p12 = pneg %p6977_p8  ;;  %p6984_p1 = por %p6983_p11, %p6982_p2 }
 0x172   : > { %p6985_p10 = pnand %p6984_p1, %p6978_p12 }
 0x174   : > { %6988 = shalt.err (!%p6985_p10)
}
 0x175   : > { %6426 = dma.hbm_to_vmem [thread:$0]  (!%p7571_p3), %s7613_s17, 256, %s7607_s5, %s7615_s19, %s8617_s6, %s8617_s6, %s8616_s23  }
 0x176   : > { %p8626_p0 = scmp.ne.s32.totalorder %s8602_s4, 0 }
 0x177   : > { %s7647_s21 = sand.u32 (!%p8626_p0), 1, %s7073_s3  }
 0x178   : > { %760 = sbr.rel (%p8626_p0) target bundleno = 9566 (0x255e), region = 108  ;;  %s8556_s18 = sshll.u32 (!%p8626_p0), %s7647_s21, 3 }
 0x179   : > { %s763_s15 = scalar_lea.sflag (!%p8626_p0), [#allocation6], %s7647_s21  ;;  %s766_s11 = scalar_lea.vmem (!%p8626_p0), [#allocation5], %s8556_s18 }
 0x17f   : > { %7036 = dma.done.wait (%p7548_p13), %s763_s15, 128  }
 0x180   : > { %7038 = vsyncadd (%p7548_p13), %s763_s15, 4294967168  ;;  %s771_s17 = sand.u32 1, %s7282_s30   ;;  %s5424_s19 = sshll.u32 %s7647_s21, 4 }
 0x181   : > { %s772_s4 = scalar_lea.sflag [#allocation9], %s771_s17  ;;  %s7659_s23 = scalar_lea.vmem [#allocation8], %s5424_s19 }
 0x182   : > { %7040 = dma.done.wait (%p7548_p13), %s772_s4, 256  }
 0x183   : > { %7042 = vsyncadd (%p7548_p13), %s772_s4, 4294967040  ;;  %p8627_p3 = scmp.eq.s32.totalorder %s7282_s30, 0 }
 0x185   : > { %7044 = dma.done.wait (%p8627_p3), [#allocation9], 96   ;;  %p8628_p9 = pmov %p8627_p3 }
 0x186   : > { %p8629_p4 = pmov %p8627_p3 }
 0x187   : > { %7046 = vsyncadd (%p8628_p9), [#allocation9], 4294967200 }
 0x188   : > { %7048 = dma.done.wait (%p8629_p4), [#allocation12], 128   ;;  %p8630_p7 = pmov %p8627_p3 }
 0x189   : > { %p8631_p5 = pmov %p8627_p3 }
 0x18a   : > { %7050 = vsyncadd (%p8630_p7), [#allocation12], 4294967168 }
 0x18b   : > { %7052 = dma.done.wait (%p8631_p5), [#allocation15], 64   ;;  %p8632_p6 = pmov %p8627_p3 }
 0x18c   : > { %p8633_p13 = pmov %p8627_p3 }
 0x18d   : > { %7054 = vsyncadd (%p8632_p6), [#allocation15], 4294967232 }
 0x18e   : > { %7056 = dma.done.wait (%p8633_p13), [#allocation18], 1056   ;;  %p8634_p8 = pmov %p8627_p3 }
 0x18f   : > { %p8635_p12 = pmov %p8627_p3 }
 0x190   : > { %7058 = vsyncadd (%p8634_p8), [#allocation18], 4294966240 }
 0x191   : > { %7060 = dma.done.wait (%p8635_p12), [#allocation21], 544   ;;  %p8636_p2 = pmov %p8627_p3 }
 0x192   : > { %vm900_vm0 = vcmask 261120   ;;  %v7685_v0 = vld [vmem:[%s766_s11] sm:$0xff]  ;;  %s8637_s5 = sld [smem:[#allocation38_spill]]  ;;  %v7100_v10 = vmov 0.0|0.0   ;;  %vm7101_vm1 = vmmov 0   ;;  %v7102_v13 = vmov 0.0  }
 0x193   : > { %7062 = vsyncadd (%p8636_p2), [#allocation21], 4294966752  ;;  %v901_v1 = vsel %vm900_vm0, %v7685_v0, 0.0  ;;  %6164 = vmatprep.subr.bf16.mxu1 %v7100_v10  ;;  %5767 = vmatprep.mubr.msk.f32.mxu1 %vm7101_vm1, %v7102_v13  ;;  %v5435_v19 = vld [vmem:[#allocation10] ss:$0 sm:$0xff]  ;;  %s8638_s15 = sld [smem:[#allocation39_spill]]  ;;  %v879_v39 = vlaneseq }
 0x194   : > { %902 = vadd.xlane.f32.xlu0 %v901_v1  ;;  %5790 = vmatprep.subr.mxu0 %v7102_v13  ;;  %v5436_v21 = vld [vmem:[#allocation11] ss:$0 sm:$0xff]  ;;  %s8567_s11 = smov 104   ;;  %s8569_s17 = smov 120   ;;  %vm1035_vm2 = vcmask 64512   ;;  %vm1705_vm6 = vcmask 130048  }
 0x195   : > { %5792 = vmatprep.mubr.msk.f32.mxu0 %vm7101_vm1, %v7102_v13  ;;  %s8571_s19 = smov 112   ;;  %s8565_s4 = smov 96   ;;  %v7763_v40 = vand.u32 127, %v879_v39  ;;  %v882_v41 = vshrl.u32 %v879_v39, 7  ;;  %vm1707_vm7 = vcmask 195584   ;;  %vm7894_vm9 = vmpackc.low %vm1035_vm2, %vm1035_vm2 }
 0x196   : > { %s7761_s6 = sld [smem:[#allocation4 + %s7282_s30]]  ;;  %s8557_s20 = smov 64  }
 0x197   : > { %vm885_vm4 = vcmp.le.s32.totalorder %v7763_v40, %v882_v41  ;;  %s8641_s12 = sld [smem:[#allocation40_spill]]  ;;  %s8561_s7 = smov 8  }
 0x198   : > { %v929_v7 = vld [vmem:[%s8637_s5] sm:$0xff]  ;;  %v930_v8 = vld [vmem:[%s8637_s5 + $0x8] sm:$0xff]  ;;  %v931_v9 = vld [vmem:[%s8637_s5 + $0x10] sm:$0xff]  ;;  %s8563_s0 = smov 16   ;;  %s8559_s16 = smov 24  }
 0x199   : > { %v6165_v11 = vpack.c.bf16 %v930_v8, %v929_v7  ;;  %v932_v12 = vld [vmem:[%s8637_s5 + $0x18] sm:$0xff]  ;;  %v5437_v24 = vld [vmem:[%s8638_s15] ss:$0 sm:$0xff]  ;;  %s8644_s2 = sld [smem:[#allocation41_spill]]  ;;  %s8651_s24 = sld [smem:[#allocation46_spill]] }
 0x19a   : > { %v6168_v14 = vpack.c.bf16 %v932_v12, %v931_v9  ;;  %s8654_s13 = smov 24   ;;  %s8659_s22 = smov 120  }
 0x19b   : > { %6166 = vmatpush3.bf16.msra.mxu1 %v6165_v11  ;;  %p8668_p0 = scmp.ne.s32.totalorder %s8620_s9, 0 }
 0x19c   : > { %6167 = vmatprep.subr.bf16.mxu1 %v7100_v10  ;;  %v883_v42 = vstv %s7761_s6  ;;  %p889_p11 = scmp.gt.s32.totalorder %s7761_s6, 0 }
 0x19d   : > { %vm884_vm3 = vcmp.lt.s32.totalorder %v7763_v40, %v883_v42  ;;  %v1016_v41 = vld [vmem:[%s8641_s12 + $0x10] sm:$0xff]  ;;  %v1017_v42 = vld [vmem:[%s8641_s12 + $0x18] sm:$0xff] }
 0x19e   : > { %vm7768_vm5 = vmand %vm884_vm3, %vm885_vm4  ;;  %s1709_s18 = scalar_select %p889_p11, 1, 0 }
 0x19f   : > { %6169 = vmatpush3.bf16.msra.mxu1 %v6168_v14 }
 0x1a0   : > { %5770 = vmatprep.subr.mxu1 %v7102_v13 }
 0x221   : > { %v903_v2 = vpop.xlane.xlu0 %902 }
 0x222   : > { %v905_v3 = vmul.f32 0.03125, %v903_v2 }
 0x224   : > { %v906_v4 = vsub.f32 %v7685_v0, %v905_v3 }
 0x226   : > { %v907_v5 = vmul.f32 %v906_v4, %v906_v4 }
 0x228   : > { %v908_v6 = vsel %vm900_vm0, %v907_v5, 0.0 }
 0x229   : > { %909 = vadd.xlane.f32.xlu0 %v908_v6 }
 0x2b6   : > { %v910_v15 = vpop.xlane.xlu0 %909 }
 0x2b7   : > { %v911_v16 = vmul.f32 0.03125, %v910_v15 }
 0x2b9   : > { %v912_v17 = vadd.f32 1e-12, %v911_v16 }
 0x2bb   : > { %6579 = vrsqrt.f32 %v912_v17 }
 0x2c5   : > { %v6580_v18 = vpop.eup %6579 }
 0x2c6   : > { %v914_v20 = vmul.f32 %v6580_v18, %v906_v4 }
 0x2c8   : > { %v921_v22 = vmul.f32 %v5435_v19, %v914_v20 }
 0x2ca   : > { %v928_v23 = vadd.f32 %v5436_v21, %v921_v22 }
 0x2cc   : > { %5768 = vmatmul.mubr.msk.f32.vlgmr.msra.gmra.mrb[0].mxu1 %vm900_vm0, %v928_v23 }
 0x2cd   : > { %5772 = vmatprep.mubr.msk.f32.mxu1 %vm7101_vm1, %v7102_v13 }
 0x39f   : > { %v1009_v25 = vpop.f32.mrb[0].mxu1 }
 0x3a0   : > { %v7717_v26 = vadd.f32 %v5437_v24, %v1009_v25  ;;  %v5769_v27 = vpop.f32.mrb[1].mxu1 }
 0x3a2   : > { %1031 = vrot.lane.b32.xlu0 %v7717_v26, %s8567_s11  ;;  %1027 = vrot.lane.b32.xlu1 %v7717_v26, %s8569_s17  ;;  %v1013_v28 = vmul.f32 0.35355338, %v7717_v26 }
 0x3a6   : > { %1029 = vrot.lane.b32.xlu1 %v7717_v26, %s8571_s19  ;;  %1024 = vrot.lane.b32.xlu0 %v1013_v28, %s8567_s11 }
 0x3aa   : > { %1033 = vrot.lane.b32.xlu1 %v7717_v26, %s8565_s4 }
 0x3ae   : > { %1020 = vrot.lane.b32.xlu1 %v1013_v28, %s8569_s17 }
 0x3b2   : > { %1022 = vrot.lane.b32.xlu1 %v1013_v28, %s8571_s19 }
 0x414   : > { %v1028_v29 = vpop.permute.xlu1 %1027  ;;  %v7736_v31 = vpop.permute.xlu0 %1031 }
 0x415   : > { %1110 = vrot.lane.b32.xlu1 %v1028_v29, %s8565_s4 }
 0x418   : > { %v7732_v30 = vpop.permute.xlu1 %1029  ;;  %v1025_v38 = vpop.permute.xlu0 %1024 }
 0x419   : > { %1186 = vrot.lane.b32.xlu1 %v7732_v30, %s8565_s4 }
 0x41c   : > { %v1034_v32 = vpop.permute.xlu1 %1033 }
 0x41d   : > { %5771 = vmatpush3.xpose.msk.msra.mxu1 %vm1035_vm2, %v1034_v32  ;;  %1262 = vrot.lane.b32.xlu1 %v7736_v31, %s8565_s4 }
 0x41e   : > { %5775 = vmatprep.subr.mxu1 %v7102_v13 }
 0x420   : > { %5773 = vmatmul.mubr.msk.f32.vlgmr.msra.gmra.mrb[2].mxu1 %vm1035_vm2, %v1013_v28  ;;  %v1021_v33 = vpop.permute.xlu1 %1020 }
 0x421   : > { %5777 = vmatprep.mubr.msk.f32.mxu1 %vm7101_vm1, %v7102_v13 }
 0x424   : > { %v1023_v34 = vpop.permute.xlu1 %1022 }
 0x487   : > { %v1111_v35 = vpop.permute.xlu1 %1110 }
 0x488   : > { %5776 = vmatpush3.xpose.msk.msra.mxu1 %vm1035_vm2, %v1111_v35 }
 0x489   : > { %5780 = vmatprep.subr.mxu1 %v7102_v13 }
 0x48b   : > { %v1187_v36 = vpop.permute.xlu1 %1186  ;;  %5778 = vmatmul.mubr.msk.f32.vlgmr.msra.gmra.mrb[4].mxu1 %vm1035_vm2, %v1021_v33 }
 0x48c   : > { %5781 = vmatpush3.xpose.msk.msra.mxu1 %vm1035_vm2, %v1187_v36  ;;  %5782 = vmatprep.mubr.msk.f32.mxu1 %vm7101_vm1, %v7102_v13 }
 0x48d   : > { %5785 = vmatprep.subr.mxu1 %v7102_v13 }
 0x48f   : > { %v1263_v37 = vpop.permute.xlu1 %1262  ;;  %5783 = vmatmul.mubr.msk.f32.vlgmr.msra.gmra.mrb[6].mxu1 %vm1035_vm2, %v1023_v34 }
 0x490   : > { %5786 = vmatpush3.xpose.msk.msra.mxu1 %vm1035_vm2, %v1263_v37  ;;  %5787 = vmatprep.mubr.msk.f32.mxu1 %vm7101_vm1, %v7102_v13  ;;  %v1014_v37 = vld [vmem:[%s8641_s12] sm:$0xff] }
 0x491   : > { %5795 = vmatprep.subr.mxu1 %v7102_v13 }
 0x493   : > { %5788 = vmatmul.mubr.msk.f32.vlgmr.msra.gmra.mrb[8].mxu1 %vm1035_vm2, %v1025_v38  ;;  %v1015_v38 = vld [vmem:[%s8641_s12 + $0x8] sm:$0xff] }
 0x494   : > { %5797 = vmatprep.mubr.msk.f32.mxu1 %vm7101_vm1, %v7102_v13  ;;  %v6171_v39 = vpack.c.bf16 %v1015_v38, %v1014_v37 }
 0x4f3   : > { %v1106_v44 = vpop.f32.mrb[2].mxu1 }
 0x4f4   : > { %v1340_v45 = vsel %vm7768_vm5, %v1106_v44, -3.4028235e+38  ;;  %v5774_v46 = vpop.f32.mrb[3].mxu1  ;;  %v6174_v44 = vpack.c.bf16 %v1017_v42, %v1016_v41 }
 0x4f5   : > { %v1344_v47 = vsel %vm1035_vm2, %v1340_v45, -inf }
 0x4f6   : > { %1345 = vmax.xlane.f32.xlu1 %v1344_v47 }
 0x55e   : > { %v1182_v48 = vpop.f32.mrb[4].mxu1 }
 0x55f   : > { %v1341_v49 = vsel %vm7768_vm5, %v1182_v48, -3.4028235e+38  ;;  %v5779_v50 = vpop.f32.mrb[5].mxu1 }
 0x560   : > { %v1347_v51 = vsel %vm1035_vm2, %v1341_v49, -inf }
 0x561   : > { %1348 = vmax.xlane.f32.xlu0 %v1347_v51 }
 0x562   : > { %v1258_v52 = vpop.f32.mrb[6].mxu1 }
 0x563   : > { %v1342_v53 = vsel %vm7768_vm5, %v1258_v52, -3.4028235e+38  ;;  %v5784_v54 = vpop.f32.mrb[7].mxu1  ;;  %v1710_v52 = vstv %s1709_s18  ;;  %s8645_s18 = sld [smem:[#allocation44_spill]] }
 0x564   : > { %v1350_v55 = vsel %vm1035_vm2, %v1342_v53, -inf  ;;  %vm7829_vm8 = vcmp.eq.s32.totalorder %v1710_v52, 1  ;;  %v5455_v52 = vld [vmem:[#allocation13] ss:$0 sm:$0xff] }
 0x565   : > { %1351 = vmax.xlane.f32.xlu0 %v1350_v55 }
 0x566   : > { %v1334_v56 = vpop.f32.mrb[8].mxu1 }
 0x567   : > { %v1343_v57 = vsel %vm7768_vm5, %v1334_v56, -3.4028235e+38  ;;  %v5789_v58 = vpop.f32.mrb[9].mxu1 }
 0x568   : > { %v1353_v59 = vsel %vm1035_vm2, %v1343_v57, -inf }
 0x569   : > { %1354 = vmax.xlane.f32.xlu1 %v1353_v59  ;;  %v5519_v55 = vld [vmem:[%s8645_s18 + $0x20] sm:$0xff] }
 0x57a   : > { %1464 = vrot.lane.b32.xlu1 %v1028_v29, %s8557_s20 }
 0x57b   : > { %1388 = vrot.lane.b32.xlu0 %v7717_v26, %s8557_s20 }
 0x583   : > { %v1346_v60 = vpop.xlane.xlu1 %1345 }
 0x584   : > { %v1356_v61 = vsub.f32 %v1340_v45, %v1346_v60  ;;  %v5451_v60 = vld [vmem:[%s8644_s2] ss:$0 sm:$0xff] }
 0x586   : > { %v1360_v62 = vmul.f32 1.442695, %v1356_v61 }
 0x588   : > { %6581 = vpow2.f32 %v1360_v62 }
 0x592   : > { %v6582_v63 = vpop.eup %6581 }
 0x593   : > { %v1368_v1 = vsel %vm1035_vm2, %v6582_v63, 0.0 }
 0x59a   : > { %1369 = vadd.xlane.f32.xlu0 %v1368_v1 }
 0x5ee   : > { %v1349_v2 = vpop.xlane.xlu0 %1348 }
 0x5ef   : > { %v1357_v3 = vsub.f32 %v1341_v49, %v1349_v2 }
 0x5f1   : > { %v1362_v4 = vmul.f32 1.442695, %v1357_v3  ;;  %v1905_v3 = vld [vmem:[%s8645_s18] sm:$0xff] }
 0x5f2   : > { %v1352_v5 = vpop.xlane.xlu0 %1351 }
 0x5f3   : > { %6583 = vpow2.f32 %v1362_v4  ;;  %v1358_v6 = vsub.f32 %v1342_v53, %v1352_v5  ;;  %v1906_v4 = vld [vmem:[%s8645_s18 + $0x8] sm:$0xff]  ;;  %v1907_v5 = vld [vmem:[%s8645_s18 + $0x10] sm:$0xff] }
 0x5f5   : > { %v1364_v7 = vmul.f32 1.442695, %v1358_v6  ;;  %v6182_v6 = vpack.c.bf16 %v1906_v4, %v1905_v3 }
 0x5f6   : > { %v1389_v8 = vpop.permute.xlu0 %1388  ;;  %v1355_v9 = vpop.xlane.xlu1 %1354 }
 0x5f7   : > { %6585 = vpow2.f32 %v1364_v7  ;;  %v1359_v11 = vsub.f32 %v1343_v57, %v1355_v9  ;;  %5791 = vmatpush3.msra.mxu0 %v1389_v8 }
 0x5f8   : > { %5800 = vmatprep.subr.mxu0 %v7102_v13 }
 0x5f9   : > { %v1366_v12 = vmul.f32 1.442695, %v1359_v11 }
 0x5fa   : > { %v1465_v14 = vpop.permute.xlu1 %1464 }
 0x5fb   : > { %6587 = vpow2.f32 %v1366_v12  ;;  %5796 = vmatpush3.msra.mxu1 %v1465_v14 }
 0x5fc   : > { %5805 = vmatprep.subr.mxu1 %v7102_v13 }
 0x5fd   : > { %v6584_v15 = vpop.eup %6583 }
 0x5fe   : > { %v1371_v16 = vsel %vm1035_vm2, %v6584_v15, 0.0 }
 0x5ff   : > { %1372 = vadd.xlane.f32.xlu1 %v1371_v16  ;;  %v7867_v16 = vld [vmem:[%s7659_s23 + $0x8] sm:$0xff] }
 0x601   : > { %v6586_v17 = vpop.eup %6585 }
 0x602   : > { %v1374_v18 = vsel %vm1035_vm2, %v6586_v17, 0.0 }
 0x603   : > { %1375 = vadd.xlane.f32.xlu0 %v1374_v18 }
 0x605   : > { %v6588_v19 = vpop.eup %6587 }
 0x606   : > { %v1377_v20 = vsel %vm1035_vm2, %v6588_v19, 0.0 }
 0x607   : > { %1378 = vadd.xlane.f32.xlu1 %v1377_v20 }
 0x618   : > { %1540 = vrot.lane.b32.xlu1 %v7732_v30, %s8557_s20 }
 0x619   : > { %1616 = vrot.lane.b32.xlu0 %v7736_v31, %s8557_s20  ;;  %s7944_s20 = sld [smem:[#allocation3 + %s7282_s30]] }
 0x61f   : > { %p890_p1 = scmp.gt.s32.totalorder %s7944_s20, 0 }
 0x621   : > { %s2708_s6 = scalar_select %p890_p1, 1, 0 }
 0x627   : > { %v1370_v21 = vpop.xlane.xlu0 %1369 }
 0x628   : > { %6589 = vrcp.f32 %v1370_v21 }
 0x632   : > { %v6590_v22 = vpop.eup %6589 }
 0x633   : > { %v1384_v23 = vmul.f32 %v6590_v22, %v6582_v63 }
 0x635   : > { %5793 = vmatmul.mubr.msk.f32.vlgmr.msra.gmra.mrb[0].mxu0 %vm1035_vm2, %v1384_v23 }
 0x636   : > { %5802 = vmatprep.mubr.msk.f32.mxu0 %vm7101_vm1, %v7102_v13 }
 0x68c   : > { %v1373_v24 = vpop.xlane.xlu1 %1372 }
 0x68d   : > { %6591 = vrcp.f32 %v1373_v24 }
 0x690   : > { %v1376_v25 = vpop.xlane.xlu0 %1375 }
 0x691   : > { %6593 = vrcp.f32 %v1376_v25 }
 0x694   : > { %v1379_v26 = vpop.xlane.xlu1 %1378  ;;  %v1617_v30 = vpop.permute.xlu0 %1616 }
 0x695   : > { %6595 = vrcp.f32 %v1379_v26 }
 0x697   : > { %v6592_v27 = vpop.eup %6591 }
 0x698   : > { %v1385_v28 = vmul.f32 %v6592_v27, %v6584_v15  ;;  %v1541_v29 = vpop.permute.xlu1 %1540  ;;  %v7862_v15 = vld [vmem:[%s7659_s23] sm:$0xff]  ;;  %s8666_s23 = sshll.u32 %s7647_s21, 3 }
 0x699   : > { %5801 = vmatpush3.msra.mxu0 %v1541_v29  ;;  %v5453_v27 = vld [vmem:[#allocation10 + $0x1] ss:$0 sm:$0xff]  ;;  %v5454_v29 = vld [vmem:[#allocation11 + $0x1] ss:$0 sm:$0xff] }
 0x69a   : > { %5798 = vmatmul.mubr.msk.f32.vlgmr.msra.gmra.mrb[10].mxu1 %vm1035_vm2, %v1385_v28  ;;  %6170 = vmatprep.subr.bf16.mxu0 %v7100_v10 }
 0x69b   : > { %v6594_v31 = vpop.eup %6593  ;;  %5806 = vmatpush3.msra.mxu1 %v1617_v30  ;;  %5807 = vmatprep.mubr.msk.f32.mxu1 %vm7101_vm1, %v7102_v13 }
 0x69c   : > { %v1386_v32 = vmul.f32 %v6594_v31, %v6586_v17  ;;  %6176 = vmatprep.subr.bf16.mxu1 %v7100_v10 }
 0x69e   : > { %5803 = vmatmul.mubr.msk.f32.vlgmr.msra.gmra.mrb[2].mxu0 %vm1035_vm2, %v1386_v32  ;;  %v5457_v32 = vld [vmem:[#allocation14] ss:$0 sm:$0xff] }
 0x69f   : > { %v6596_v33 = vpop.eup %6595  ;;  %5818 = vmatprep.mubr.msk.f32.mxu0 %vm7101_vm1, %v7102_v13  ;;  %6172 = vmatpush3.bf16.msra.mxu0 %v6171_v39 }
 0x6a0   : > { %v1387_v34 = vmul.f32 %v6596_v33, %v6588_v19  ;;  %6173 = vmatprep.subr.bf16.mxu0 %v7100_v10 }
 0x6a2   : > { %5808 = vmatmul.mubr.msk.f32.vlgmr.msra.gmra.mrb[12].mxu1 %vm1035_vm2, %v1387_v34 }
 0x6a3   : > { %5829 = vmatprep.mubr.msk.f32.mxu1 %vm7101_vm1, %v7102_v13  ;;  %6175 = vmatpush3.bf16.msra.mxu0 %v6174_v44 }
 0x6a4   : > { %6183 = vmatprep.subr.bf16.mxu0 %v6182_v6 }
 0x708   : > { %v1460_v35 = vpop.f32.mrb[0].mxu0 }
 0x709   : > { %v5794_v36 = vpop.f32.mrb[1].mxu0 }
 0x76d   : > { %v1536_v45 = vpop.f32.mrb[10].mxu1 }
 0x76e   : > { %1693 = vrot.lane.b32.xlu1 %v1536_v45, %s8561_s7  ;;  %v5799_v46 = vpop.f32.mrb[11].mxu1  ;;  %s8652_s7 = smov 16  }
 0x771   : > { %v1612_v47 = vpop.f32.mrb[2].mxu0 }
 0x772   : > { %1697 = vrot.lane.b32.xlu0 %v1612_v47, %s8563_s0  ;;  %v5804_v48 = vpop.f32.mrb[3].mxu0  ;;  %s8646_s0 = sld [smem:[#allocation42_spill]] }
 0x775   : > { %v1688_v49 = vpop.f32.mrb[12].mxu1 }
 0x776   : > { %1701 = vrot.lane.b32.xlu1 %v1688_v49, %s8559_s16  ;;  %v5809_v50 = vpop.f32.mrb[13].mxu1  ;;  %s8653_s16 = smov 8  }
 0x778   : > { %v1820_v17 = vld [vmem:[%s8646_s0] sm:$0xff]  ;;  %v1821_v18 = vld [vmem:[%s8646_s0 + $0x8] sm:$0xff]  ;;  %v1822_v20 = vld [vmem:[%s8646_s0 + $0x10] sm:$0xff] }
 0x779   : > { %v6177_v19 = vpack.c.bf16 %v1821_v18, %v1820_v17  ;;  %v1823_v21 = vld [vmem:[%s8646_s0 + $0x18] sm:$0xff] }
 0x77a   : > { %v6180_v22 = vpack.c.bf16 %v1823_v21, %v1822_v20 }
 0x77b   : > { %6178 = vmatpush3.bf16.msra.mxu1 %v6177_v19 }
 0x77c   : > { %6179 = vmatprep.subr.bf16.mxu1 %v7100_v10 }
 0x77f   : > { %6181 = vmatpush3.bf16.msra.mxu1 %v6180_v22 }
 0x780   : > { %6190 = vmatprep.subr.bf16.mxu1 %v7100_v10 }
 0x7e0   : > { %v1694_v51 = vpop.permute.xlu1 %1693 }
 0x7e1   : > { %v1704_v54 = vsel %vm1035_vm2, %v1460_v35, %v1694_v51 }
 0x7e4   : > { %v1698_v53 = vpop.permute.xlu0 %1697 }
 0x7e5   : > { %v1706_v56 = vsel %vm1705_vm6, %v1704_v54, %v1698_v53 }
 0x7e8   : > { %v1702_v57 = vpop.permute.xlu1 %1701 }
 0x7e9   : > { %v1708_v58 = vsel %vm1707_vm7, %v1706_v56, %v1702_v57 }
 0x7ea   : > { %v1712_v59 = vsel %vm7829_vm8, %v1708_v58, 0.0 }
 0x7eb   : > { %5819 = vmatmul.mubr.msk.f32.vlgmr.msra.gmra.mrb[4].mxu0 %vm900_vm0, %v1712_v59 }
 0x7ec   : > { %6185 = vmatpush3.bf16.msra.mxu0 %v6182_v6  ;;  %5840 = vmatprep.mubr.msk.f32.mxu0 %vm900_vm0, %v7862_v15 }
 0x8be   : > { %v1788_v61 = vpop.f32.mrb[4].mxu0 }
 0x8bf   : > { %v1789_v62 = vadd.f32 %v5451_v60, %v1788_v61  ;;  %v5820_v63 = vpop.f32.mrb[5].mxu0 }
 0x8c0   : > { %v887_v63 = vstv %s7944_s20  ;;  %s8657_s20 = sld [smem:[#allocation50_spill]] }
 0x8c1   : > { %v7842_v1 = vadd.f32 %v1789_v62, %v7685_v0  ;;  %v1908_v0 = vld [vmem:[%s8645_s18 + $0x18] sm:$0xff]  ;;  %vm7948_vm10 = vcmp.lt.s32.totalorder %v7763_v40, %v887_v63 }
 0x8c2   : > { %v6186_v7 = vpack.c.bf16 %v1908_v0, %v1907_v5 }
 0x8c3   : > { %v1793_v2 = vsel %vm900_vm0, %v7842_v1, 0.0 }
 0x8c4   : > { %1794 = vadd.xlane.f32.xlu0 %v1793_v2  ;;  %6187 = vmatprep.subr.bf16.mxu0 %v6186_v7 }
 0x8c5   : > { %6189 = vmatpush3.bf16.msra.mxu0 %v6186_v7 }
 0x8c6   : > { %6194 = vmatprep.subr.bf16.mxu0 %v7100_v10 }
 0x8c8   : > { %5841 = vmatmul.mubr.msk.f32.vlgmr.msra.gmra.mrb[6].mxu0 %vm900_vm0, %v7867_v16 }
 0x8c9   : > { %5854 = vmatprep.mubr.msk.f32.mxu0 %vm7101_vm1, %v7102_v13 }
 0x951   : > { %v1795_v8 = vpop.xlane.xlu0 %1794 }
 0x952   : > { %v1796_v9 = vmul.f32 0.03125, %v1795_v8 }
 0x954   : > { %v1797_v11 = vsub.f32 %v7842_v1, %v1796_v9 }
 0x956   : > { %v1798_v12 = vmul.f32 %v1797_v11, %v1797_v11 }
 0x958   : > { %v1799_v14 = vsel %vm900_vm0, %v1798_v12, 0.0 }
 0x959   : > { %1800 = vadd.xlane.f32.xlu1 %v1799_v14 }
 0x99b   : > { %v5842_v33 = vpop.f32.mrb[6].mxu0 }
 0x99c   : > { %v1994_v34 = vadd.f32 %v5842_v33, %v5457_v32  ;;  %v1988_v35 = vpop.f32.mrb[7].mxu0 }
 0x99d   : > { %v1989_v36 = vadd.f32 %v5457_v32, %v1988_v35 }
 0x99f   : > { %v7890_v37 = vpack.i.bf16 %v1994_v34, %v1989_v36  ;;  %v6191_v38 = vpack.c.bf16 %v1994_v34, %v1989_v36 }
 0x9a1   : > { %6510 = vrot.lane.b32.xlu0 %v7890_v37, %s8569_s17  ;;  %6515 = vrot.lane.b32.xlu1 %v7890_v37, %s8571_s19 }
 0x9a5   : > { %6520 = vrot.lane.b32.xlu0 %v7890_v37, %s8567_s11 }
 0x9e6   : > { %v1801_v23 = vpop.xlane.xlu1 %1800 }
 0x9e7   : > { %v1802_v24 = vmul.f32 0.03125, %v1801_v23 }
 0x9e9   : > { %v1803_v25 = vadd.f32 1e-12, %v1802_v24 }
 0x9eb   : > { %6597 = vrsqrt.f32 %v1803_v25 }
 0x9f5   : > { %v6598_v26 = vpop.eup %6597 }
 0x9f6   : > { %v1805_v28 = vmul.f32 %v6598_v26, %v1797_v11 }
 0x9f8   : > { %v1812_v30 = vmul.f32 %v5453_v27, %v1805_v28 }
 0x9fa   : > { %v1819_v31 = vadd.f32 %v5454_v29, %v1812_v30 }
 0x9fc   : > { %5830 = vmatmul.mubr.msk.f32.vlgmr.msra.gmra.mrb[14].mxu1 %vm900_vm0, %v1819_v31 }
 0x9fd   : > { %5847 = vmatprep.mubr.msk.f32.mxu1 %vm7101_vm1, %v7102_v13  ;;  %6193 = vmatpush3.bf16.xpose.msk.msra.mxu1 %vm7894_vm9, %v6191_v38 }
 0x9fe   : > { %6198 = vmatprep.subr.bf16.mxu1 %v7100_v10 }
 0xa13   : > { %v7907_v41 = vpop.permute.xlu0 %6510  ;;  %v7909_v42 = vpop.permute.xlu1 %6515 }
 0xa14   : > { %v6513_v44 = vunpack.i.h.bf16 %v7907_v41  ;;  %v6512_v45 = vunpack.i.l.bf16 %v7907_v41  ;;  %v6518_v46 = vunpack.i.h.bf16 %v7909_v42  ;;  %v6517_v47 = vunpack.i.l.bf16 %v7909_v42 }
 0xa16   : > { %v6195_v48 = vpack.c.bf16 %v6513_v44, %v6512_v45  ;;  %v6199_v58 = vpack.c.bf16 %v6518_v46, %v6517_v47 }
 0xa17   : > { %v7915_v49 = vpop.permute.xlu0 %6520 }
 0xa18   : > { %v6523_v50 = vunpack.i.h.bf16 %v7915_v49  ;;  %v6522_v51 = vunpack.i.l.bf16 %v7915_v49  ;;  %6197 = vmatpush3.bf16.xpose.msk.msra.mxu0 %vm7894_vm9, %v6195_v48 }
 0xa19   : > { %6202 = vmatprep.subr.bf16.mxu0 %v7100_v10 }
 0xa1a   : > { %v6203_v59 = vpack.c.bf16 %v6523_v50, %v6522_v51 }
 0xacf   : > { %v1900_v53 = vpop.f32.mrb[14].mxu1 }
 0xad0   : > { %v1901_v54 = vadd.f32 %v5455_v52, %v1900_v53  ;;  %v5831_v56 = vpop.f32.mrb[15].mxu1 }
 0xad2   : > { %v1904_v57 = vmul.f32 0.35355338, %v1901_v54 }
 0xad4   : > { %2003 = vrot.lane.b32.xlu1 %v1904_v57, %s8569_s17  ;;  %2005 = vrot.lane.b32.xlu0 %v1904_v57, %s8571_s19  ;;  %s8658_s19 = smov 112   ;;  %s876_s17 = scalar_lea.vmem [#allocation23], %s8666_s23 }
 0xad5   : > { %5848 = vmatmul.mubr.msk.f32.vlgmr.msra.gmra.mrb[16].mxu1 %vm1035_vm2, %v1904_v57  ;;  %s5227_s26 = sshll.u32 %s876_s17, 4  ;;  %s8462_s26 = int_to_ptr.vmem [resolvable:$true] %s5227_s26 }
 0xad6   : > { %6201 = vmatpush3.bf16.xpose.msk.msra.mxu1 %vm7894_vm9, %v6199_v58  ;;  %5861 = vmatprep.mubr.msk.f32.mxu1 %vm7101_vm1, %v7102_v13  ;;  %s6989_s28 = scalar_lea.vmem %s8462_s26, 128 }
 0xad7   : > { %6206 = vmatprep.subr.bf16.mxu1 %v7100_v10  ;;  %p6990_p10 = scmp.ne.s32.totalorder %s8462_s26, %s6989_s28 }
 0xad8   : > { %2007 = vrot.lane.b32.xlu1 %v1904_v57, %s8567_s11  ;;  %s8661_s11 = smov 96  }
 0xad9   : > { %p6991_p3 = pnand %p6990_p10, %p8668_p0 }
 0xadb   : > { %p6992_p9 = pneg %p6991_p3 }
 0xb46   : > { %v2004_v60 = vpop.permute.xlu1 %2003  ;;  %v2006_v61 = vpop.permute.xlu0 %2005 }
 0xb47   : > { %5855 = vmatmul.mubr.msk.f32.vlgmr.msra.gmra.mrb[8].mxu0 %vm1035_vm2, %v2004_v60  ;;  %5862 = vmatmul.mubr.msk.f32.vlgmr.msra.gmra.mrb[18].mxu1 %vm1035_vm2, %v2006_v61 }
 0xb48   : > { %6205 = vmatpush3.bf16.xpose.msk.msra.mxu0 %vm7894_vm9, %v6203_v59  ;;  %5868 = vmatprep.mubr.msk.f32.mxu0 %vm7101_vm1, %v7102_v13 }
 0xb49   : > { %5875 = vmatprep.mubr.msk.f32.mxu1 %vm7101_vm1, %v7102_v13  ;;  %6212 = vmatprep.subr.bf16.mxu0 %v7100_v10 }
 0xb4a   : > { %v2008_v62 = vpop.permute.xlu1 %2007 }
 0xb4f   : > { %5869 = vmatmul.mubr.msk.f32.vlgmr.msra.gmra.mrb[10].mxu0 %vm1035_vm2, %v2008_v62 }
 0xb50   : > { %5889 = vmatprep.mubr.msk.f32.mxu0 %vm7101_vm1, %v7102_v13 }
 0xba8   : > { %v2095_v3 = vpop.f32.mrb[16].mxu1 }
 0xba9   : > { %v2329_v4 = vsel %vm7948_vm10, %v2095_v3, -3.4028235e+38  ;;  %v5849_v5 = vpop.f32.mrb[17].mxu1 }
 0xbaa   : > { %v2333_v6 = vsel %vm1705_vm6, %v2329_v4, -inf }
 0xbab   : > { %2334 = vmax.xlane.f32.xlu0 %v2333_v6 }
 0xc1a   : > { %v2171_v0 = vpop.f32.mrb[8].mxu0  ;;  %v2247_v7 = vpop.f32.mrb[18].mxu1 }
 0xc1b   : > { %v2330_v8 = vsel %vm7948_vm10, %v2171_v0, -3.4028235e+38  ;;  %v2331_v9 = vsel %vm7948_vm10, %v2247_v7, -3.4028235e+38  ;;  %v5856_v40 = vpop.f32.mrb[9].mxu0  ;;  %v5863_v11 = vpop.f32.mrb[19].mxu1 }
 0xc1c   : > { %v2336_v12 = vsel %vm1705_vm6, %v2330_v8, -inf  ;;  %v2339_v14 = vsel %vm1705_vm6, %v2331_v9, -inf }
 0xc1d   : > { %2337 = vmax.xlane.f32.xlu1 %v2336_v12  ;;  %2340 = vmax.xlane.f32.xlu0 %v2339_v14  ;;  %v1997_v14 = vld [vmem:[%s8651_s24] sm:$0xff] }
 0xc22   : > { %v2323_v17 = vpop.f32.mrb[10].mxu0 }
 0xc23   : > { %v2332_v18 = vsel %vm7948_vm10, %v2323_v17, -3.4028235e+38  ;;  %v5870_v19 = vpop.f32.mrb[11].mxu0  ;;  %v1998_v17 = vld [vmem:[%s8651_s24 + $0x8] sm:$0xff] }
 0xc24   : > { %v2342_v20 = vsel %vm1705_vm6, %v2332_v18, -inf  ;;  %v1999_v19 = vld [vmem:[%s8651_s24 + $0x10] sm:$0xff] }
 0xc25   : > { %2343 = vmax.xlane.f32.xlu0 %v2342_v20  ;;  %v2000_v20 = vld [vmem:[%s8651_s24 + $0x18] sm:$0xff] }
 0xc2e   : > { %6525 = vrot.lane.b32.xlu1 %v7890_v37, %s8565_s4 }
 0xc38   : > { %v2335_v21 = vpop.xlane.xlu0 %2334 }
 0xc39   : > { %v2345_v22 = vsub.f32 %v2329_v4, %v2335_v21  ;;  %v6222_v21 = vpack.c.bf16 %v2000_v20, %v1999_v19 }
 0xc3b   : > { %v2349_v23 = vmul.f32 1.442695, %v2345_v22 }
 0xc3d   : > { %6599 = vpow2.f32 %v2349_v23 }
 0xc47   : > { %v6600_v24 = vpop.eup %6599 }
 0xc48   : > { %v2357_v25 = vsel %vm1705_vm6, %v6600_v24, 0.0 }
 0xc52   : > { %2358 = vadd.xlane.f32.xlu1 %v2357_v25 }
 0xcaa   : > { %v2338_v26 = vpop.xlane.xlu1 %2337  ;;  %v2341_v27 = vpop.xlane.xlu0 %2340 }
 0xcab   : > { %v2346_v28 = vsub.f32 %v2330_v8, %v2338_v26  ;;  %v2347_v29 = vsub.f32 %v2331_v9, %v2341_v27 }
 0xcad   : > { %v2351_v30 = vmul.f32 1.442695, %v2346_v28  ;;  %v2353_v31 = vmul.f32 1.442695, %v2347_v29  ;;  %v2709_v29 = vstv %s2708_s6  ;;  %s8660_s6 = smov 104  }
 0xcae   : > { %v6526_v32 = vpop.permute.xlu1 %6525  ;;  %vm8011_vm11 = vcmp.eq.s32.totalorder %v2709_v29, 1  ;;  %v2919_v29 = vld [vmem:[%s8657_s20 + $0x78] sm:$0xff] }
 0xcaf   : > { %6601 = vpow2.f32 %v2351_v30  ;;  %v6528_v33 = vunpack.i.h.bf16 %v6526_v32  ;;  %v6527_v34 = vunpack.i.l.bf16 %v6526_v32 }
 0xcb0   : > { %6603 = vpow2.f32 %v2353_v31 }
 0xcb1   : > { %v6207_v35 = vpack.c.bf16 %v6528_v33, %v6527_v34 }
 0xcb2   : > { %v2344_v36 = vpop.xlane.xlu0 %2343 }
 0xcb3   : > { %v2348_v37 = vsub.f32 %v2332_v18, %v2344_v36  ;;  %6208 = vmatpush3.bf16.msra.mxu1 %v6207_v35  ;;  %v6219_v18 = vpack.c.bf16 %v1998_v17, %v1997_v14  ;;  %v2916_v14 = vld [vmem:[%s8657_s20 + $0x60] sm:$0xff]  ;;  %v2917_v17 = vld [vmem:[%s8657_s20 + $0x68] sm:$0xff] }
 0xcb4   : > { %6209 = vmatprep.subr.bf16.mxu1 %v7100_v10 }
 0xcb5   : > { %v2355_v38 = vmul.f32 1.442695, %v2348_v37  ;;  %v5476_v37 = vld [vmem:[#allocation16] ss:$0 sm:$0xff] }
 0xcb7   : > { %6605 = vpow2.f32 %v2355_v38 }
 0xcb9   : > { %v6602_v44 = vpop.eup %6601 }
 0xcba   : > { %v6604_v45 = vpop.eup %6603  ;;  %v2360_v46 = vsel %vm1705_vm6, %v6602_v44, 0.0 }
 0xcbb   : > { %2361 = vadd.xlane.f32.xlu0 %v2360_v46  ;;  %v2363_v47 = vsel %vm1705_vm6, %v6604_v45, 0.0 }
 0xcbc   : > { %2364 = vadd.xlane.f32.xlu1 %v2363_v47 }
 0xcc1   : > { %v6606_v48 = vpop.eup %6605 }
 0xcc2   : > { %v2366_v50 = vsel %vm1705_vm6, %v6606_v48, 0.0 }
 0xcc3   : > { %2367 = vadd.xlane.f32.xlu0 %v2366_v50 }
 0xccd   : > { %6535 = vrot.lane.b32.xlu1 %v7909_v42, %s8565_s4 }
 0xcd1   : > { %6540 = vrot.lane.b32.xlu1 %v7915_v49, %s8565_s4 }
 0xcd9   : > { %6530 = vrot.lane.b32.xlu0 %v7907_v41, %s8565_s4  ;;  %s8662_s4 = smov 64  }
 0xcdf   : > { %v2359_v51 = vpop.xlane.xlu1 %2358 }
 0xce0   : > { %6607 = vrcp.f32 %v2359_v51 }
 0xcea   : > { %v6608_v52 = vpop.eup %6607 }
 0xceb   : > { %v2373_v53 = vmul.f32 %v6608_v52, %v6600_v24 }
 0xced   : > { %5876 = vmatmul.mubr.msk.f32.vlgmr.msra.gmra.mrb[20].mxu1 %vm1705_vm6, %v2373_v53 }
 0xcee   : > { %5882 = vmatprep.mubr.msk.f32.mxu1 %vm7101_vm1, %v7102_v13 }
 0xd48   : > { %v2362_v56 = vpop.xlane.xlu0 %2361 }
 0xd49   : > { %v2365_v54 = vpop.xlane.xlu1 %2364 }
 0xd4a   : > { %6609 = vrcp.f32 %v2365_v54  ;;  %v2819_v54 = vld [vmem:[#allocation17] sm:$0xff] }
 0xd4b   : > { %6611 = vrcp.f32 %v2362_v56  ;;  %v2820_v56 = vld [vmem:[#allocation17 + $0x8] sm:$0xff] }
 0xd4d   : > { %v6536_v42 = vpop.permute.xlu1 %6535 }
 0xd4e   : > { %v6538_v57 = vunpack.i.h.bf16 %v6536_v42  ;;  %v6537_v58 = vunpack.i.l.bf16 %v6536_v42  ;;  %v6225_v42 = vpack.c.bf16 %v2820_v56, %v2819_v54  ;;  %v5485_v56 = vld [vmem:[%s8637_s5 + $0x20] sm:$0xff] }
 0xd50   : > { %v6213_v49 = vpack.c.bf16 %v6538_v57, %v6537_v58  ;;  %v2368_v59 = vpop.xlane.xlu0 %2367  ;;  %v2822_v57 = vld [vmem:[#allocation17 + $0x18] sm:$0xff] }
 0xd51   : > { %6613 = vrcp.f32 %v2368_v59  ;;  %v6541_v60 = vpop.permute.xlu1 %6540  ;;  %v2905_v59 = vld [vmem:[%s8657_s20 + $0x8] sm:$0xff] }
 0xd52   : > { %6214 = vmatpush3.bf16.msra.mxu0 %v6213_v49  ;;  %v6543_v5 = vunpack.i.h.bf16 %v6541_v60  ;;  %v6542_v6 = vunpack.i.l.bf16 %v6541_v60  ;;  %v2904_v49 = vld [vmem:[%s8657_s20] sm:$0xff] }
 0xd53   : > { %6218 = vmatprep.subr.bf16.mxu0 %v7100_v10  ;;  %v6231_v60 = vpack.c.bf16 %v2905_v59, %v2904_v49 }
 0xd54   : > { %v6610_v41 = vpop.eup %6609  ;;  %v6531_v61 = vpop.permute.xlu0 %6530  ;;  %v6216_v9 = vpack.c.bf16 %v6543_v5, %v6542_v6  ;;  %v2910_v5 = vld [vmem:[%s8657_s20 + $0x30] sm:$0xff]  ;;  %v2911_v6 = vld [vmem:[%s8657_s20 + $0x38] sm:$0xff] }
 0xd55   : > { %v2375_v62 = vmul.f32 %v6610_v41, %v6604_v45  ;;  %v6533_v63 = vunpack.i.h.bf16 %v6531_v61  ;;  %v6532_v3 = vunpack.i.l.bf16 %v6531_v61  ;;  %v6612_v4 = vpop.eup %6611  ;;  %v2906_v41 = vld [vmem:[%s8657_s20 + $0x10] sm:$0xff]  ;;  %v2907_v61 = vld [vmem:[%s8657_s20 + $0x18] sm:$0xff] }
 0xd56   : > { %v2374_v7 = vmul.f32 %v6612_v4, %v6602_v44 }
 0xd57   : > { %v6210_v0 = vpack.c.bf16 %v6533_v63, %v6532_v3  ;;  %5890 = vmatmul.mubr.msk.f32.vlgmr.msra.gmra.mrb[12].mxu0 %vm1705_vm6, %v2375_v62  ;;  %v6234_v62 = vpack.c.bf16 %v2907_v61, %v2906_v41  ;;  %v2908_v63 = vld [vmem:[%s8657_s20 + $0x20] sm:$0xff]  ;;  %v2909_v3 = vld [vmem:[%s8657_s20 + $0x28] sm:$0xff]  ;;  %v5483_v61 = vld [vmem:[#allocation10 + $0x3] ss:$0 sm:$0xff] }
 0xd58   : > { %5907 = vmatprep.mubr.msk.f32.mxu0 %vm7101_vm1, %v7102_v13  ;;  %6220 = vmatpush3.bf16.msra.mxu0 %v6219_v18  ;;  %v6237_v4 = vpack.c.bf16 %v2909_v3, %v2908_v63  ;;  %v6249_v18 = vpack.c.bf16 %v2917_v17, %v2916_v14  ;;  %v5484_v63 = vld [vmem:[#allocation11 + $0x3] ss:$0 sm:$0xff] }
 0xd59   : > { %6211 = vmatpush3.bf16.msra.mxu1 %v6210_v0  ;;  %6221 = vmatprep.subr.bf16.mxu0 %v7100_v10  ;;  %v6240_v0 = vpack.c.bf16 %v2911_v6, %v2910_v5  ;;  %v5490_v5 = vld [vmem:[%s8638_s15 + $0x1] ss:$0 sm:$0xff]  ;;  %s5574_s15 = sshll.u32 %s7282_s30, 7  ;;  %s7111_s30 = smov [#allocation23]  }
 0xd5a   : > { %6215 = vmatprep.subr.bf16.mxu1 %v7100_v10 }
 0xd5b   : > { %v6614_v8 = vpop.eup %6613 }
 0xd5c   : > { %5883 = vmatmul.mubr.msk.f32.vlgmr.msra.gmra.mrb[22].mxu1 %vm1705_vm6, %v2374_v7  ;;  %v2376_v40 = vmul.f32 %v6614_v8, %v6606_v48  ;;  %6223 = vmatpush3.bf16.msra.mxu0 %v6222_v21  ;;  %v2912_v7 = vld [vmem:[%s8657_s20 + $0x40] sm:$0xff]  ;;  %v2913_v8 = vld [vmem:[%s8657_s20 + $0x48] sm:$0xff] }
 0xd5d   : > { %6217 = vmatpush3.bf16.msra.mxu1 %v6216_v9  ;;  %5896 = vmatprep.mubr.msk.f32.mxu1 %vm7101_vm1, %v7102_v13  ;;  %v6243_v9 = vpack.c.bf16 %v2913_v8, %v2912_v7 }
 0xd5e   : > { %6224 = vmatprep.subr.bf16.mxu1 %v7100_v10  ;;  %6230 = vmatprep.subr.bf16.mxu0 %v7100_v10 }
 0xd60   : > { %5897 = vmatmul.mubr.msk.f32.vlgmr.msra.gmra.mrb[24].mxu1 %vm1705_vm6, %v2376_v40  ;;  %v2914_v40 = vld [vmem:[%s8657_s20 + $0x50] sm:$0xff] }
 0xd61   : > { %5918 = vmatprep.mubr.msk.f32.mxu1 %vm7101_vm1, %v7102_v13  ;;  %6226 = vmatpush3.bf16.msra.mxu1 %v6225_v42 }
 0xd62   : > { %6227 = vmatprep.subr.bf16.mxu1 %v7100_v10 }
 0xdc0   : > { %v2452_v11 = vpop.f32.mrb[20].mxu1 }
 0xdc1   : > { %v5877_v12 = vpop.f32.mrb[21].mxu1 }
 0xe2a   : > { %v2610_v22 = vpop.f32.mrb[12].mxu0 }
 0xe2b   : > { %2698 = vrot.lane.b32.xlu1 %v2610_v22, %s8652_s7  ;;  %v5891_v23 = vpop.f32.mrb[13].mxu0 }
 0xe2c   : > { %v5478_v23 = vld [vmem:[#allocation10 + $0x2] ss:$0 sm:$0xff] }
 0xe2f   : > { %v2531_v24 = vpop.f32.mrb[22].mxu1 }
 0xe30   : > { %2694 = vrot.lane.b32.xlu0 %v2531_v24, %s8653_s16  ;;  %v5884_v25 = vpop.f32.mrb[23].mxu1 }
 0xe31   : > { %v5479_v25 = vld [vmem:[#allocation11 + $0x2] ss:$0 sm:$0xff] }
 0xe33   : > { %v2689_v26 = vpop.f32.mrb[24].mxu1 }
 0xe34   : > { %2702 = vrot.lane.b32.xlu0 %v2689_v26, %s8654_s13  ;;  %v5898_v27 = vpop.f32.mrb[25].mxu1 }
 0xe9d   : > { %v2699_v31 = vpop.permute.xlu1 %2698 }
 0xea2   : > { %v2695_v28 = vpop.permute.xlu0 %2694 }
 0xea3   : > { %v2705_v30 = vsel %vm1035_vm2, %v2452_v11, %v2695_v28  ;;  %v2915_v11 = vld [vmem:[%s8657_s20 + $0x58] sm:$0xff]  ;;  %v2918_v28 = vld [vmem:[%s8657_s20 + $0x70] sm:$0xff] }
 0xea4   : > { %v2706_v33 = vsel %vm1705_vm6, %v2705_v30, %v2699_v31  ;;  %v6246_v12 = vpack.c.bf16 %v2915_v11, %v2914_v40  ;;  %v6252_v30 = vpack.c.bf16 %v2919_v29, %v2918_v28  ;;  %v5480_v31 = vld [vmem:[#allocation19] ss:$0 sm:$0xff] }
 0xea6   : > { %v2703_v34 = vpop.permute.xlu0 %2702 }
 0xea7   : > { %v2707_v35 = vsel %vm1707_vm7, %v2706_v33, %v2703_v34 }
 0xea8   : > { %v2711_v36 = vsel %vm8011_vm11, %v2707_v35, 0.0 }
 0xea9   : > { %5908 = vmatmul.mubr.msk.f32.vlgmr.msra.gmra.mrb[14].mxu0 %vm900_vm0, %v2711_v36 }
 0xeaa   : > { %5953 = vmatprep.mubr.msk.f32.mxu0 %vm7101_vm1, %v7102_v13  ;;  %6232 = vmatpush3.bf16.msra.mxu0 %v6231_v60 }
 0xeab   : > { %6233 = vmatprep.subr.bf16.mxu0 %v7100_v10 }
 0xeae   : > { %6235 = vmatpush3.bf16.msra.mxu0 %v6234_v62 }
 0xeaf   : > { %6236 = vmatprep.subr.bf16.mxu0 %v7100_v10 }
 0xeb2   : > { %6238 = vmatpush3.bf16.msra.mxu0 %v6237_v4 }
 0xeb3   : > { %6239 = vmatprep.subr.bf16.mxu0 %v7100_v10 }
 0xeb6   : > { %6241 = vmatpush3.bf16.msra.mxu0 %v6240_v0 }
 0xeb7   : > { %6242 = vmatprep.subr.bf16.mxu0 %v7100_v10 }
 0xeba   : > { %6244 = vmatpush3.bf16.msra.mxu0 %v6243_v9 }
 0xebb   : > { %6245 = vmatprep.subr.bf16.mxu0 %v7100_v10 }
 0xebe   : > { %6247 = vmatpush3.bf16.msra.mxu0 %v6246_v12 }
 0xebf   : > { %6248 = vmatprep.subr.bf16.mxu0 %v7100_v10 }
 0xec2   : > { %6250 = vmatpush3.bf16.msra.mxu0 %v6249_v18 }
 0xec3   : > { %6251 = vmatprep.subr.bf16.mxu0 %v7100_v10 }
 0xec6   : > { %6253 = vmatpush3.bf16.msra.mxu0 %v6252_v30 }
 0xec7   : > { %5997 = vmatprep.subr.mxu0 %v7102_v13 }
 0xf7c   : > { %v2787_v38 = vpop.f32.mrb[14].mxu0 }
 0xf7d   : > { %v2788_v44 = vadd.f32 %v5476_v37, %v2787_v38  ;;  %v5909_v45 = vpop.f32.mrb[15].mxu0  ;;  %v5482_v38 = vld [vmem:[#allocation20] ss:$0 sm:$0xff] }
 0xf7f   : > { %v8023_v46 = vadd.f32 %v2788_v44, %v7842_v1  ;;  %v2821_v1 = vld [vmem:[#allocation17 + $0x10] sm:$0xff] }
 0xf80   : > { %v6228_v58 = vpack.c.bf16 %v2822_v57, %v2821_v1  ;;  %v5487_v1 = vld [vmem:[%s8637_s5 + $0x30] sm:$0xff]  ;;  %v5488_v57 = vld [vmem:[%s8637_s5 + $0x38] sm:$0xff] }
 0xf81   : > { %v2792_v47 = vsel %vm900_vm0, %v8023_v46, 0.0 }
 0xf82   : > { %2793 = vadd.xlane.f32.xlu1 %v2792_v47  ;;  %6229 = vmatpush3.bf16.msra.mxu1 %v6228_v58  ;;  %v6258_v58 = vpack.c.bf16 %v5488_v57, %v5487_v1 }
 0xf83   : > { %6254 = vmatprep.subr.bf16.mxu1 %v7100_v10 }
0x100f   : > { %v2794_v48 = vpop.xlane.xlu1 %2793 }
0x1010   : > { %v2795_v50 = vmul.f32 0.03125, %v2794_v48 }
0x1012   : > { %v2796_v51 = vsub.f32 %v8023_v46, %v2795_v50 }
0x1014   : > { %v2797_v52 = vmul.f32 %v2796_v51, %v2796_v51 }
0x1016   : > { %v2798_v53 = vsel %vm900_vm0, %v2797_v52, 0.0 }
0x1017   : > { %2799 = vadd.xlane.f32.xlu0 %v2798_v53 }
0x10a4   : > { %v2800_v19 = vpop.xlane.xlu0 %2799 }
0x10a5   : > { %v2801_v20 = vmul.f32 0.03125, %v2800_v19 }
0x10a7   : > { %v2802_v21 = vadd.f32 1e-12, %v2801_v20 }
0x10a9   : > { %6615 = vrsqrt.f32 %v2802_v21 }
0x10b3   : > { %v6616_v22 = vpop.eup %6615 }
0x10b4   : > { %v2804_v24 = vmul.f32 %v6616_v22, %v2796_v51 }
0x10b6   : > { %v2811_v26 = vmul.f32 %v5478_v23, %v2804_v24 }
0x10b8   : > { %v2818_v27 = vadd.f32 %v5479_v25, %v2811_v26 }
0x10ba   : > { %5919 = vmatmul.mubr.msk.f32.vlgmr.msra.gmra.mrb[26].mxu1 %vm900_vm0, %v2818_v27 }
0x10bb   : > { %5964 = vmatprep.mubr.msk.f32.mxu1 %vm7101_vm1, %v7102_v13 }
0x118d   : > { %v2899_v33 = vpop.f32.mrb[26].mxu1 }
0x118e   : > { %v2900_v34 = vadd.f32 %v5480_v31, %v2899_v33  ;;  %v5920_v35 = vpop.f32.mrb[27].mxu1 }
0x1190   : > { %v2903_v36 = vmax.f32 %v2900_v34, 0.0 }
0x1192   : > { %5954 = vmatmul.mubr.f32.vlgmr.msra.gmra.mrb[16].mxu0 %v2903_v36 }
0x1193   : > { %5999 = vmatprep.mubr.msk.f32.mxu0 %vm7101_vm1, %v7102_v13 }
0x1265   : > { %v2986_v37 = vpop.f32.mrb[16].mxu0 }
0x1266   : > { %v2990_v44 = vadd.f32 %v2986_v37, %v8023_v46  ;;  %v5955_v45 = vpop.f32.mrb[17].mxu0  ;;  %v5486_v46 = vld [vmem:[%s8637_s5 + $0x28] sm:$0xff]  ;;  %s6993_s5 = sshll.u32 %s7111_s30, 4  ;;  %s6994_s5 = int_to_ptr.vmem [resolvable:$false] %s6993_s5 }
0x1267   : > { %v6255_v42 = vpack.c.bf16 %v5486_v46, %v5485_v56  ;;  %p6996_p4 = scmp.lt.s32.totalorder %s8462_s26, %s6994_s5 }
0x1268   : > { %v8093_v47 = vadd.f32 %v5482_v38, %v2990_v44 }
0x1269   : > { %6256 = vmatpush3.bf16.msra.mxu1 %v6255_v42 }
0x126a   : > { %v3007_v48 = vsel %vm900_vm0, %v8093_v47, 0.0  ;;  %6257 = vmatprep.subr.bf16.mxu1 %v7100_v10 }
0x126b   : > { %3008 = vadd.xlane.f32.xlu0 %v3007_v48 }
0x126d   : > { %6259 = vmatpush3.bf16.msra.mxu1 %v6258_v58 }
0x126e   : > { %5967 = vmatprep.subr.mxu1 %v7102_v13 }
0x12f8   : > { %v3009_v50 = vpop.xlane.xlu0 %3008 }
0x12f9   : > { %v3010_v51 = vmul.f32 0.03125, %v3009_v50 }
0x12fb   : > { %v3011_v52 = vsub.f32 %v8093_v47, %v3010_v51 }
0x12fd   : > { %v3012_v53 = vmul.f32 %v3011_v52, %v3011_v52 }
0x12ff   : > { %v3013_v54 = vsel %vm900_vm0, %v3012_v53, 0.0 }
0x1300   : > { %3014 = vadd.xlane.f32.xlu1 %v3013_v54 }
0x138d   : > { %v3015_v49 = vpop.xlane.xlu1 %3014 }
0x138e   : > { %v3016_v59 = vmul.f32 0.03125, %v3015_v49 }
0x1390   : > { %v3017_v41 = vadd.f32 1e-12, %v3016_v59 }
0x1392   : > { %6617 = vrsqrt.f32 %v3017_v41 }
0x139c   : > { %v6618_v60 = vpop.eup %6617 }
0x139d   : > { %v3019_v62 = vmul.f32 %v6618_v60, %v3011_v52 }
0x139f   : > { %v3026_v3 = vmul.f32 %v5483_v61, %v3019_v62 }
0x13a1   : > { %v3033_v4 = vadd.f32 %v5484_v63, %v3026_v3 }
0x13a3   : > { %5965 = vmatmul.mubr.msk.f32.vlgmr.msra.gmra.mrb[28].mxu1 %vm900_vm0, %v3033_v4 }
0x13a4   : > { %5969 = vmatprep.mubr.msk.f32.mxu1 %vm7101_vm1, %v7102_v13 }
0x1476   : > { %v3116_v6 = vpop.f32.mrb[28].mxu1 }
0x1477   : > { %v3117_v0 = vadd.f32 %v5490_v5, %v3116_v6  ;;  %v5966_v7 = vpop.f32.mrb[29].mxu1 }
0x1479   : > { %3138 = vrot.lane.b32.xlu1 %v3117_v0, %s8658_s19  ;;  %3136 = vrot.lane.b32.xlu0 %v3117_v0, %s8659_s22  ;;  %v3120_v8 = vmul.f32 0.35355338, %v3117_v0 }
0x147d   : > { %3140 = vrot.lane.b32.xlu1 %v3117_v0, %s8660_s6  ;;  %3142 = vrot.lane.b32.xlu0 %v3117_v0, %s8661_s11 }
0x1481   : > { %3129 = vrot.lane.b32.xlu0 %v3120_v8, %s8659_s22 }
0x1485   : > { %3131 = vrot.lane.b32.xlu0 %v3120_v8, %s8658_s19 }
0x1489   : > { %3133 = vrot.lane.b32.xlu0 %v3120_v8, %s8660_s6 }
0x14eb   : > { %v3137_v9 = vpop.permute.xlu0 %3136  ;;  %v8127_v40 = vpop.permute.xlu1 %3138 }
0x14ec   : > { %3218 = vrot.lane.b32.xlu1 %v3137_v9, %s8661_s11 }
0x14ef   : > { %v3143_v11 = vpop.permute.xlu0 %3142  ;;  %v8133_v12 = vpop.permute.xlu1 %3140 }
0x14f0   : > { %3294 = vrot.lane.b32.xlu1 %v8127_v40, %s8661_s11  ;;  %5968 = vmatpush3.xpose.msk.msra.mxu1 %vm1035_vm2, %v3143_v11 }
0x14f1   : > { %5972 = vmatprep.subr.mxu1 %v7102_v13 }
0x14f3   : > { %5970 = vmatmul.mubr.msk.f32.vlgmr.msra.gmra.mrb[30].mxu1 %vm1035_vm2, %v3120_v8  ;;  %v3130_v14 = vpop.permute.xlu0 %3129 }
0x14f4   : > { %3370 = vrot.lane.b32.xlu1 %v8133_v12, %s8661_s11  ;;  %5974 = vmatprep.mubr.msk.f32.mxu1 %vm7101_vm1, %v7102_v13 }
0x14f7   : > { %v3132_v19 = vpop.permute.xlu0 %3131 }
0x14fb   : > { %v3134_v21 = vpop.permute.xlu0 %3133 }
0x155e   : > { %v3219_v17 = vpop.permute.xlu1 %3218 }
0x155f   : > { %5973 = vmatpush3.xpose.msk.msra.mxu1 %vm1035_vm2, %v3219_v17 }
0x1560   : > { %5977 = vmatprep.subr.mxu1 %v7102_v13 }
0x1562   : > { %v3295_v18 = vpop.permute.xlu1 %3294  ;;  %5975 = vmatmul.mubr.msk.f32.vlgmr.msra.gmra.mrb[32].mxu1 %vm1035_vm2, %v3130_v14 }
0x1563   : > { %5978 = vmatpush3.xpose.msk.msra.mxu1 %vm1035_vm2, %v3295_v18  ;;  %5979 = vmatprep.mubr.msk.f32.mxu1 %vm7101_vm1, %v7102_v13 }
0x1564   : > { %5982 = vmatprep.subr.mxu1 %v7102_v13 }
0x1566   : > { %v3371_v20 = vpop.permute.xlu1 %3370  ;;  %5980 = vmatmul.mubr.msk.f32.vlgmr.msra.gmra.mrb[34].mxu1 %vm1035_vm2, %v3132_v19 }
0x1567   : > { %5983 = vmatpush3.xpose.msk.msra.mxu1 %vm1035_vm2, %v3371_v20  ;;  %5984 = vmatprep.mubr.msk.f32.mxu1 %vm7101_vm1, %v7102_v13 }
0x1568   : > { %5987 = vmatprep.subr.mxu1 %v7102_v13 }
0x156a   : > { %5985 = vmatmul.mubr.msk.f32.vlgmr.msra.gmra.mrb[36].mxu1 %vm1035_vm2, %v3134_v21  ;;  %v5492_v21 = vld [vmem:[%s8641_s12 + $0x20] sm:$0xff] }
0x156b   : > { %5989 = vmatprep.mubr.msk.f32.mxu1 %vm7101_vm1, %v7102_v13 }
0x15c6   : > { %v3214_v22 = vpop.f32.mrb[30].mxu1 }
0x15c7   : > { %v3446_v23 = vsel %vm7768_vm5, %v3214_v22, -3.4028235e+38  ;;  %v5971_v24 = vpop.f32.mrb[31].mxu1  ;;  %v5493_v22 = vld [vmem:[%s8641_s12 + $0x28] sm:$0xff] }
0x15c8   : > { %v3450_v25 = vsel %vm1035_vm2, %v3446_v23, -inf  ;;  %v5494_v24 = vld [vmem:[%s8641_s12 + $0x30] sm:$0xff] }
0x15c9   : > { %3451 = vmax.xlane.f32.xlu1 %v3450_v25  ;;  %v5495_v25 = vld [vmem:[%s8641_s12 + $0x38] sm:$0xff] }
0x1635   : > { %v3290_v26 = vpop.f32.mrb[32].mxu1 }
0x1636   : > { %v3447_v27 = vsel %vm7768_vm5, %v3290_v26, -3.4028235e+38  ;;  %v5976_v28 = vpop.f32.mrb[33].mxu1  ;;  %v6264_v26 = vpack.c.bf16 %v5495_v25, %v5494_v24 }
0x1637   : > { %v3453_v29 = vsel %vm1035_vm2, %v3447_v27, -inf }
0x1638   : > { %3454 = vmax.xlane.f32.xlu0 %v3453_v29 }
0x1639   : > { %v3366_v30 = vpop.f32.mrb[34].mxu1 }
0x163a   : > { %v3448_v31 = vsel %vm7768_vm5, %v3366_v30, -3.4028235e+38  ;;  %v5981_v33 = vpop.f32.mrb[35].mxu1 }
0x163b   : > { %v3456_v34 = vsel %vm1035_vm2, %v3448_v31, -inf }
0x163c   : > { %3457 = vmax.xlane.f32.xlu0 %v3456_v34 }
0x163d   : > { %v3442_v35 = vpop.f32.mrb[36].mxu1 }
0x163e   : > { %v3449_v36 = vsel %vm7768_vm5, %v3442_v35, -3.4028235e+38  ;;  %v5986_v37 = vpop.f32.mrb[37].mxu1 }
0x163f   : > { %v3459_v38 = vsel %vm1035_vm2, %v3449_v36, -inf }
0x1640   : > { %3460 = vmax.xlane.f32.xlu1 %v3459_v38 }
0x1651   : > { %3570 = vrot.lane.b32.xlu1 %v3137_v9, %s8662_s4 }
0x1652   : > { %3494 = vrot.lane.b32.xlu0 %v3117_v0, %s8662_s4 }
0x1656   : > { %v3452_v44 = vpop.xlane.xlu1 %3451 }
0x1657   : > { %v3462_v45 = vsub.f32 %v3446_v23, %v3452_v44  ;;  %v6261_v23 = vpack.c.bf16 %v5493_v22, %v5492_v21 }
0x1659   : > { %v3466_v48 = vmul.f32 1.442695, %v3462_v45 }
0x165b   : > { %6619 = vpow2.f32 %v3466_v48  ;;  %v5509_v48 = vld [vmem:[%s8644_s2 + $0x1] ss:$0 sm:$0xff] }
0x1665   : > { %v6620_v50 = vpop.eup %6619 }
0x1666   : > { %v3474_v51 = vsel %vm1035_vm2, %v6620_v50, 0.0 }
0x1671   : > { %3475 = vadd.xlane.f32.xlu0 %v3474_v51 }
0x16c5   : > { %v3455_v52 = vpop.xlane.xlu0 %3454 }
0x16c6   : > { %v3463_v53 = vsub.f32 %v3447_v27, %v3455_v52 }
0x16c8   : > { %v3468_v43 = vmul.f32 1.442695, %v3463_v53 }
0x16c9   : > { %v3458_v54 = vpop.xlane.xlu0 %3457 }
0x16ca   : > { %6621 = vpow2.f32 %v3468_v43  ;;  %v3464_v56 = vsub.f32 %v3448_v31, %v3458_v54  ;;  %v5521_v54 = vld [vmem:[%s8645_s18 + $0x30] sm:$0xff] }
0x16cc   : > { %v3470_v46 = vmul.f32 1.442695, %v3464_v56 }
0x16cd   : > { %v3495_v42 = vpop.permute.xlu0 %3494  ;;  %v3461_v1 = vpop.xlane.xlu1 %3460 }
0x16ce   : > { %6623 = vpow2.f32 %v3470_v46  ;;  %v3465_v57 = vsub.f32 %v3449_v36, %v3461_v1  ;;  %5988 = vmatpush3.msra.mxu1 %v3495_v42 }
0x16cf   : > { %5992 = vmatprep.subr.mxu1 %v7102_v13 }
0x16d0   : > { %v3472_v58 = vmul.f32 1.442695, %v3465_v57 }
0x16d1   : > { %v3571_v5 = vpop.permute.xlu1 %3570 }
0x16d2   : > { %6625 = vpow2.f32 %v3472_v58 }
0x16d4   : > { %v6622_v49 = vpop.eup %6621 }
0x16d5   : > { %v3477_v59 = vsel %vm1035_vm2, %v6622_v49, 0.0 }
0x16d6   : > { %3478 = vadd.xlane.f32.xlu1 %v3477_v59  ;;  %v5513_v59 = vld [vmem:[%s8646_s0 + $0x20] sm:$0xff] }
0x16d8   : > { %v6624_v41 = vpop.eup %6623 }
0x16d9   : > { %v3480_v60 = vsel %vm1035_vm2, %v6624_v41, 0.0 }
0x16da   : > { %3481 = vadd.xlane.f32.xlu0 %v3480_v60  ;;  %v5515_v60 = vld [vmem:[%s8646_s0 + $0x30] sm:$0xff] }
0x16dc   : > { %v6626_v61 = vpop.eup %6625 }
0x16dd   : > { %v3483_v62 = vsel %vm1035_vm2, %v6626_v61, 0.0 }
0x16de   : > { %3484 = vadd.xlane.f32.xlu1 %v3483_v62 }
0x16ef   : > { %3646 = vrot.lane.b32.xlu1 %v8127_v40, %s8662_s4 }
0x16f0   : > { %3722 = vrot.lane.b32.xlu0 %v8133_v12, %s8662_s4  ;;  %s8663_s4 = sld [smem:[#allocation52_spill]] }
0x16fe   : > { %v3476_v63 = vpop.xlane.xlu0 %3475 }
0x16ff   : > { %6627 = vrcp.f32 %v3476_v63  ;;  %v5523_v63 = vld [vmem:[#allocation14 + $0x1] ss:$0 sm:$0xff] }
0x1709   : > { %v6628_v3 = vpop.eup %6627 }
0x170a   : > { %v3490_v4 = vmul.f32 %v6628_v3, %v6620_v50 }
0x170c   : > { %5990 = vmatmul.mubr.msk.f32.vlgmr.msra.gmra.mrb[38].mxu1 %vm1035_vm2, %v3490_v4 }
0x170d   : > { %5993 = vmatpush3.msra.mxu1 %v3571_v5  ;;  %5994 = vmatprep.mubr.msk.f32.mxu1 %vm7101_vm1, %v7102_v13 }
0x170e   : > { %6002 = vmatprep.subr.mxu1 %v7102_v13 }
0x1763   : > { %v3479_v6 = vpop.xlane.xlu1 %3478 }
0x1764   : > { %6629 = vrcp.f32 %v3479_v6 }
0x1767   : > { %v3482_v0 = vpop.xlane.xlu0 %3481 }
0x1768   : > { %6631 = vrcp.f32 %v3482_v0 }
0x176b   : > { %v3485_v7 = vpop.xlane.xlu1 %3484  ;;  %v3723_v11 = vpop.permute.xlu0 %3722 }
0x176c   : > { %6633 = vrcp.f32 %v3485_v7 }
0x176e   : > { %v6630_v8 = vpop.eup %6629 }
0x176f   : > { %v3491_v9 = vmul.f32 %v6630_v8, %v6622_v49  ;;  %v3647_v40 = vpop.permute.xlu1 %3646 }
0x1770   : > { %5998 = vmatpush3.msra.mxu0 %v3647_v40 }
0x1771   : > { %5995 = vmatmul.mubr.msk.f32.vlgmr.msra.gmra.mrb[40].mxu1 %vm1035_vm2, %v3491_v9  ;;  %6260 = vmatprep.subr.bf16.mxu0 %v7100_v10 }
0x1772   : > { %v6632_v12 = vpop.eup %6631  ;;  %6003 = vmatpush3.msra.mxu1 %v3723_v11  ;;  %6004 = vmatprep.mubr.msk.f32.mxu1 %vm7101_vm1, %v7102_v13  ;;  %v5511_v11 = vld [vmem:[#allocation10 + $0x4] ss:$0 sm:$0xff] }
0x1773   : > { %v3492_v14 = vmul.f32 %v6632_v12, %v6624_v41  ;;  %6266 = vmatprep.subr.bf16.mxu1 %v7100_v10  ;;  %v5514_v41 = vld [vmem:[%s8646_s0 + $0x28] sm:$0xff] }
0x1775   : > { %6000 = vmatmul.mubr.msk.f32.vlgmr.msra.gmra.mrb[18].mxu0 %vm1035_vm2, %v3492_v14  ;;  %v5512_v14 = vld [vmem:[#allocation11 + $0x4] ss:$0 sm:$0xff] }
0x1776   : > { %v6634_v17 = vpop.eup %6633  ;;  %6015 = vmatprep.mubr.msk.f32.mxu0 %vm7101_vm1, %v7102_v13  ;;  %6262 = vmatpush3.bf16.msra.mxu0 %v6261_v23 }
0x1777   : > { %v3493_v18 = vmul.f32 %v6634_v17, %v6626_v61  ;;  %6263 = vmatprep.subr.bf16.mxu0 %v7100_v10  ;;  %v5516_v61 = vld [vmem:[%s8646_s0 + $0x38] sm:$0xff] }
0x1778   : > { %v6270_v62 = vpack.c.bf16 %v5516_v61, %v5515_v60 }
0x1779   : > { %6005 = vmatmul.mubr.msk.f32.vlgmr.msra.gmra.mrb[42].mxu1 %vm1035_vm2, %v3493_v18 }
0x177a   : > { %6026 = vmatprep.mubr.msk.f32.mxu1 %vm7101_vm1, %v7102_v13  ;;  %6265 = vmatpush3.bf16.msra.mxu0 %v6264_v26 }
0x17df   : > { %v3566_v19 = vpop.f32.mrb[38].mxu1 }
0x17e0   : > { %v5991_v20 = vpop.f32.mrb[39].mxu1 }
0x1844   : > { %v3642_v27 = vpop.f32.mrb[40].mxu1 }
0x1845   : > { %3799 = vrot.lane.b32.xlu1 %v3642_v27, %s8653_s16  ;;  %v5996_v28 = vpop.f32.mrb[41].mxu1 }
0x1848   : > { %v3718_v29 = vpop.f32.mrb[18].mxu0 }
0x1849   : > { %3803 = vrot.lane.b32.xlu0 %v3718_v29, %s8652_s7  ;;  %v6001_v30 = vpop.f32.mrb[19].mxu0 }
0x184a   : > { %v5517_v30 = vld [vmem:[#allocation13 + $0x1] ss:$0 sm:$0xff] }
0x184c   : > { %v3794_v31 = vpop.f32.mrb[42].mxu1 }
0x184d   : > { %3807 = vrot.lane.b32.xlu1 %v3794_v31, %s8654_s13  ;;  %v6006_v33 = vpop.f32.mrb[43].mxu1 }
0x18b7   : > { %v3800_v34 = vpop.permute.xlu1 %3799 }
0x18b8   : > { %v3810_v36 = vsel %vm1035_vm2, %v3566_v19, %v3800_v34 }
0x18bb   : > { %v3804_v35 = vpop.permute.xlu0 %3803 }
0x18bc   : > { %v3811_v37 = vsel %vm1705_vm6, %v3810_v36, %v3804_v35 }
0x18bf   : > { %v3808_v38 = vpop.permute.xlu1 %3807 }
0x18c0   : > { %v3812_v44 = vsel %vm1707_vm7, %v3811_v37, %v3808_v38 }
0x18c1   : > { %v3813_v45 = vsel %vm7829_vm8, %v3812_v44, 0.0 }
0x18c2   : > { %6016 = vmatmul.mubr.msk.f32.vlgmr.msra.gmra.mrb[20].mxu0 %vm900_vm0, %v3813_v45 }
0x18c3   : > { %6037 = vmatprep.mubr.msk.f32.mxu0 %vm900_vm0, %v7862_v15  ;;  %v5520_v15 = vld [vmem:[%s8645_s18 + $0x28] sm:$0xff] }
0x18c4   : > { %v6272_v56 = vpack.c.bf16 %v5520_v15, %v5519_v55 }
0x18c6   : > { %6273 = vmatprep.subr.bf16.mxu0 %v6272_v56 }
0x18c7   : > { %6275 = vmatpush3.bf16.msra.mxu0 %v6272_v56 }
0x1995   : > { %v3889_v50 = vpop.f32.mrb[20].mxu0 }
0x1996   : > { %v3890_v51 = vadd.f32 %v5509_v48, %v3889_v50  ;;  %v6017_v52 = vpop.f32.mrb[21].mxu0 }
0x1998   : > { %v8221_v53 = vadd.f32 %v3890_v51, %v8093_v47  ;;  %v5522_v47 = vld [vmem:[%s8645_s18 + $0x38] sm:$0xff] }
0x1999   : > { %v6276_v46 = vpack.c.bf16 %v5522_v47, %v5521_v54 }
0x199a   : > { %v3894_v43 = vsel %vm900_vm0, %v8221_v53, 0.0 }
0x199b   : > { %3895 = vadd.xlane.f32.xlu0 %v3894_v43  ;;  %6277 = vmatprep.subr.bf16.mxu0 %v6276_v46 }
0x199c   : > { %6279 = vmatpush3.bf16.msra.mxu0 %v6276_v46 }
0x199d   : > { %6284 = vmatprep.subr.bf16.mxu0 %v7100_v10 }
0x199f   : > { %6038 = vmatmul.mubr.msk.f32.vlgmr.msra.gmra.mrb[22].mxu0 %vm900_vm0, %v7867_v16  ;;  %v6267_v16 = vpack.c.bf16 %v5514_v41, %v5513_v59 }
0x19a0   : > { %6051 = vmatprep.mubr.msk.f32.mxu0 %vm7101_vm1, %v7102_v13 }
0x19a1   : > { %6268 = vmatpush3.bf16.msra.mxu1 %v6267_v16 }
0x19a2   : > { %6269 = vmatprep.subr.bf16.mxu1 %v7100_v10 }
0x19a5   : > { %6271 = vmatpush3.bf16.msra.mxu1 %v6270_v62 }
0x19a6   : > { %6280 = vmatprep.subr.bf16.mxu1 %v7100_v10 }
0x1a28   : > { %v3896_v42 = vpop.xlane.xlu0 %3895 }
0x1a29   : > { %v3897_v1 = vmul.f32 0.03125, %v3896_v42 }
0x1a2b   : > { %v3898_v57 = vsub.f32 %v8221_v53, %v3897_v1 }
0x1a2d   : > { %v3899_v58 = vmul.f32 %v3898_v57, %v3898_v57 }
0x1a2f   : > { %v3900_v49 = vsel %vm900_vm0, %v3899_v58, 0.0 }
0x1a30   : > { %3901 = vadd.xlane.f32.xlu1 %v3900_v49 }
0x1a72   : > { %v6039_v3 = vpop.f32.mrb[22].mxu0 }
0x1a73   : > { %v4093_v4 = vadd.f32 %v6039_v3, %v5523_v63  ;;  %v4087_v5 = vpop.f32.mrb[23].mxu0 }
0x1a74   : > { %v4088_v6 = vadd.f32 %v5523_v63, %v4087_v5 }
0x1a76   : > { %v8258_v0 = vpack.i.bf16 %v4093_v4, %v4088_v6  ;;  %v6281_v18 = vpack.c.bf16 %v4093_v4, %v4088_v6 }
0x1a78   : > { %6545 = vrot.lane.b32.xlu0 %v8258_v0, %s8659_s22  ;;  %6550 = vrot.lane.b32.xlu1 %v8258_v0, %s8658_s19 }
0x1a7c   : > { %6555 = vrot.lane.b32.xlu0 %v8258_v0, %s8660_s6 }
0x1abd   : > { %v3902_v7 = vpop.xlane.xlu1 %3901 }
0x1abe   : > { %v3903_v8 = vmul.f32 0.03125, %v3902_v7 }
0x1ac0   : > { %v3904_v9 = vadd.f32 1e-12, %v3903_v8 }
0x1ac2   : > { %6635 = vrsqrt.f32 %v3904_v9 }
0x1acc   : > { %v6636_v40 = vpop.eup %6635 }
0x1acd   : > { %v3906_v12 = vmul.f32 %v6636_v40, %v3898_v57 }
0x1acf   : > { %v3913_v17 = vmul.f32 %v5511_v11, %v3906_v12 }
0x1ad1   : > { %v3920_v19 = vadd.f32 %v5512_v14, %v3913_v17 }
0x1ad3   : > { %6027 = vmatmul.mubr.msk.f32.vlgmr.msra.gmra.mrb[44].mxu1 %vm900_vm0, %v3920_v19 }
0x1ad4   : > { %6283 = vmatpush3.bf16.xpose.msk.msra.mxu1 %vm7894_vm9, %v6281_v18  ;;  %6044 = vmatprep.mubr.msk.f32.mxu1 %vm7101_vm1, %v7102_v13 }
0x1ad5   : > { %6288 = vmatprep.subr.bf16.mxu1 %v7100_v10 }
0x1aea   : > { %v8272_v20 = vpop.permute.xlu0 %6545  ;;  %v8274_v21 = vpop.permute.xlu1 %6550 }
0x1aeb   : > { %v6548_v22 = vunpack.i.h.bf16 %v8272_v20  ;;  %v6547_v23 = vunpack.i.l.bf16 %v8272_v20  ;;  %v6553_v24 = vunpack.i.h.bf16 %v8274_v21  ;;  %v6552_v25 = vunpack.i.l.bf16 %v8274_v21 }
0x1aed   : > { %v6285_v26 = vpack.c.bf16 %v6548_v22, %v6547_v23  ;;  %v6289_v36 = vpack.c.bf16 %v6553_v24, %v6552_v25 }
0x1aee   : > { %v8280_v27 = vpop.permute.xlu0 %6555 }
0x1aef   : > { %v6558_v28 = vunpack.i.h.bf16 %v8280_v27  ;;  %v6557_v29 = vunpack.i.l.bf16 %v8280_v27  ;;  %6287 = vmatpush3.bf16.xpose.msk.msra.mxu0 %vm7894_vm9, %v6285_v26 }
0x1af0   : > { %6292 = vmatprep.subr.bf16.mxu0 %v7100_v10 }
0x1af1   : > { %v6293_v37 = vpack.c.bf16 %v6558_v28, %v6557_v29 }
0x1ba6   : > { %v4003_v31 = vpop.f32.mrb[44].mxu1 }
0x1ba7   : > { %v4004_v33 = vadd.f32 %v5517_v30, %v4003_v31  ;;  %v6028_v34 = vpop.f32.mrb[45].mxu1 }
0x1ba9   : > { %v4007_v35 = vmul.f32 0.35355338, %v4004_v33 }
0x1bab   : > { %4106 = vrot.lane.b32.xlu0 %v4007_v35, %s8658_s19  ;;  %4104 = vrot.lane.b32.xlu1 %v4007_v35, %s8659_s22  ;;  %s8664_s19 = sld [smem:[#allocation53_spill]] }
0x1bac   : > { %6045 = vmatmul.mubr.msk.f32.vlgmr.msra.gmra.mrb[46].mxu1 %vm1035_vm2, %v4007_v35 }
0x1bad   : > { %6291 = vmatpush3.bf16.xpose.msk.msra.mxu1 %vm7894_vm9, %v6289_v36  ;;  %6058 = vmatprep.mubr.msk.f32.mxu1 %vm7101_vm1, %v7102_v13 }
0x1bae   : > { %6296 = vmatprep.subr.bf16.mxu1 %v7100_v10 }
0x1baf   : > { %4108 = vrot.lane.b32.xlu1 %v4007_v35, %s8660_s6 }
0x1c1d   : > { %v4107_v38 = vpop.permute.xlu0 %4106  ;;  %v4105_v44 = vpop.permute.xlu1 %4104 }
0x1c1e   : > { %6052 = vmatmul.mubr.msk.f32.vlgmr.msra.gmra.mrb[24].mxu0 %vm1035_vm2, %v4105_v44  ;;  %6059 = vmatmul.mubr.msk.f32.vlgmr.msra.gmra.mrb[48].mxu1 %vm1035_vm2, %v4107_v38 }
0x1c1f   : > { %6295 = vmatpush3.bf16.xpose.msk.msra.mxu0 %vm7894_vm9, %v6293_v37  ;;  %6065 = vmatprep.mubr.msk.f32.mxu0 %vm7101_vm1, %v7102_v13 }
0x1c20   : > { %6072 = vmatprep.mubr.msk.f32.mxu1 %vm7101_vm1, %v7102_v13  ;;  %6302 = vmatprep.subr.bf16.mxu0 %v7100_v10 }
0x1c21   : > { %v4109_v45 = vpop.permute.xlu1 %4108 }
0x1c26   : > { %6066 = vmatmul.mubr.msk.f32.vlgmr.msra.gmra.mrb[26].mxu0 %vm1035_vm2, %v4109_v45 }
0x1c27   : > { %6086 = vmatprep.mubr.msk.f32.mxu0 %vm7101_vm1, %v7102_v13 }
0x1c7f   : > { %v4196_v48 = vpop.f32.mrb[46].mxu1 }
0x1c80   : > { %v4428_v50 = vsel %vm7948_vm10, %v4196_v48, -3.4028235e+38  ;;  %v6046_v39 = vpop.f32.mrb[47].mxu1 }
0x1c81   : > { %v4432_v51 = vsel %vm1705_vm6, %v4428_v50, -inf }
0x1c82   : > { %4433 = vmax.xlane.f32.xlu0 %v4432_v51 }
0x1cf1   : > { %v4272_v52 = vpop.f32.mrb[24].mxu0  ;;  %v4348_v43 = vpop.f32.mrb[48].mxu1 }
0x1cf2   : > { %v4429_v55 = vsel %vm7948_vm10, %v4272_v52, -3.4028235e+38  ;;  %v4430_v15 = vsel %vm7948_vm10, %v4348_v43, -3.4028235e+38  ;;  %v6053_v54 = vpop.f32.mrb[25].mxu0  ;;  %v6060_v56 = vpop.f32.mrb[49].mxu1 }
0x1cf3   : > { %v4435_v47 = vsel %vm1705_vm6, %v4429_v55, -inf  ;;  %v4438_v46 = vsel %vm1705_vm6, %v4430_v15, -inf  ;;  %v5528_v56 = vld [vmem:[%s8651_s24 + $0x30] sm:$0xff] }
0x1cf4   : > { %4436 = vmax.xlane.f32.xlu1 %v4435_v47  ;;  %4439 = vmax.xlane.f32.xlu0 %v4438_v46  ;;  %v5529_v47 = vld [vmem:[%s8651_s24 + $0x38] sm:$0xff] }
0x1cf5   : > { %v6312_v46 = vpack.c.bf16 %v5529_v47, %v5528_v56  ;;  %v5566_v47 = vld [vmem:[%s8657_s20 + $0xf0] sm:$0xff] }
0x1cf9   : > { %v4424_v42 = vpop.f32.mrb[26].mxu0 }
0x1cfa   : > { %v4431_v1 = vsel %vm7948_vm10, %v4424_v42, -3.4028235e+38  ;;  %v6067_v57 = vpop.f32.mrb[27].mxu0 }
0x1cfb   : > { %v4441_v58 = vsel %vm1705_vm6, %v4431_v1, -inf }
0x1cfc   : > { %4442 = vmax.xlane.f32.xlu0 %v4441_v58 }
0x1d05   : > { %6560 = vrot.lane.b32.xlu1 %v8258_v0, %s8661_s11 }
0x1d0f   : > { %v4434_v49 = vpop.xlane.xlu0 %4433 }
0x1d10   : > { %v4444_v59 = vsub.f32 %v4428_v50, %v4434_v49 }
0x1d12   : > { %v4448_v41 = vmul.f32 1.442695, %v4444_v59 }
0x1d14   : > { %6637 = vpow2.f32 %v4448_v41 }
0x1d1e   : > { %v6638_v16 = vpop.eup %6637 }
0x1d1f   : > { %v4456_v60 = vsel %vm1705_vm6, %v6638_v16, 0.0 }
0x1d29   : > { %4457 = vadd.xlane.f32.xlu1 %v4456_v60 }
0x1d81   : > { %v4437_v61 = vpop.xlane.xlu1 %4436  ;;  %v4440_v62 = vpop.xlane.xlu0 %4439 }
0x1d82   : > { %v4445_v63 = vsub.f32 %v4429_v55, %v4437_v61  ;;  %v4446_v2 = vsub.f32 %v4430_v15, %v4440_v62  ;;  %v5526_v55 = vld [vmem:[%s8651_s24 + $0x20] sm:$0xff]  ;;  %v5527_v15 = vld [vmem:[%s8651_s24 + $0x28] sm:$0xff] }
0x1d83   : > { %v6309_v54 = vpack.c.bf16 %v5527_v15, %v5526_v55  ;;  %v5549_v15 = vld [vmem:[#allocation11 + $0x5] ss:$0 sm:$0xff] }
0x1d84   : > { %v4450_v3 = vmul.f32 1.442695, %v4445_v63  ;;  %v4452_v4 = vmul.f32 1.442695, %v4446_v2 }
0x1d85   : > { %v6561_v5 = vpop.permute.xlu1 %6560 }
0x1d86   : > { %6639 = vpow2.f32 %v4450_v3  ;;  %v6563_v6 = vunpack.i.h.bf16 %v6561_v5  ;;  %v6562_v7 = vunpack.i.l.bf16 %v6561_v5  ;;  %v5546_v3 = vld [vmem:[#allocation16 + $0x1] ss:$0 sm:$0xff] }
0x1d87   : > { %6641 = vpow2.f32 %v4452_v4 }
0x1d88   : > { %v6297_v0 = vpack.c.bf16 %v6563_v6, %v6562_v7 }
0x1d89   : > { %v4443_v8 = vpop.xlane.xlu0 %4442 }
0x1d8a   : > { %v4447_v9 = vsub.f32 %v4431_v1, %v4443_v8  ;;  %6298 = vmatpush3.bf16.msra.mxu1 %v6297_v0 }
0x1d8b   : > { %6299 = vmatprep.subr.bf16.mxu1 %v7100_v10 }
0x1d8c   : > { %v4454_v40 = vmul.f32 1.442695, %v4447_v9 }
0x1d8e   : > { %6643 = vpow2.f32 %v4454_v40 }
0x1d90   : > { %v6640_v11 = vpop.eup %6639 }
0x1d91   : > { %v6642_v12 = vpop.eup %6641  ;;  %v4459_v14 = vsel %vm1705_vm6, %v6640_v11, 0.0 }
0x1d92   : > { %4460 = vadd.xlane.f32.xlu0 %v4459_v14  ;;  %v4462_v17 = vsel %vm1705_vm6, %v6642_v12, 0.0  ;;  %v4917_v14 = vld [vmem:[#allocation17 + $0x28] sm:$0xff] }
0x1d93   : > { %4463 = vadd.xlane.f32.xlu1 %v4462_v17 }
0x1d98   : > { %v6644_v18 = vpop.eup %6643 }
0x1d99   : > { %v4465_v19 = vsel %vm1705_vm6, %v6644_v18, 0.0 }
0x1d9a   : > { %4466 = vadd.xlane.f32.xlu0 %v4465_v19 }
0x1da4   : > { %6570 = vrot.lane.b32.xlu1 %v8274_v21, %s8661_s11 }
0x1da8   : > { %6575 = vrot.lane.b32.xlu1 %v8280_v27, %s8661_s11 }
0x1db0   : > { %6565 = vrot.lane.b32.xlu0 %v8272_v20, %s8661_s11  ;;  %s8665_s11 = sld [smem:[#allocation55_spill]] }
0x1db6   : > { %v4458_v22 = vpop.xlane.xlu1 %4457 }
0x1db7   : > { %6645 = vrcp.f32 %v4458_v22  ;;  %v5552_v22 = vld [vmem:[%s8657_s20 + $0x80] sm:$0xff] }
0x1dc1   : > { %v6646_v23 = vpop.eup %6645 }
0x1dc2   : > { %v4472_v24 = vmul.f32 %v6646_v23, %v6638_v16  ;;  %v5553_v23 = vld [vmem:[%s8657_s20 + $0x88] sm:$0xff] }
0x1dc4   : > { %6073 = vmatmul.mubr.msk.f32.vlgmr.msra.gmra.mrb[50].mxu1 %vm1705_vm6, %v4472_v24  ;;  %v5554_v24 = vld [vmem:[%s8657_s20 + $0x90] sm:$0xff] }
0x1dc5   : > { %6079 = vmatprep.mubr.msk.f32.mxu1 %vm7101_vm1, %v7102_v13 }
0x1e1f   : > { %v4461_v26 = vpop.xlane.xlu0 %4460 }
0x1e20   : > { %v4464_v25 = vpop.xlane.xlu1 %4463 }
0x1e21   : > { %6647 = vrcp.f32 %v4464_v25  ;;  %v6321_v25 = vpack.c.bf16 %v5553_v23, %v5552_v22  ;;  %v5571_v22 = vld [vmem:[%s8665_s11] ss:$0 sm:$0xff] }
0x1e22   : > { %6649 = vrcp.f32 %v4461_v26  ;;  %v5555_v26 = vld [vmem:[%s8657_s20 + $0x98] sm:$0xff] }
0x1e24   : > { %v6571_v21 = vpop.permute.xlu1 %6570 }
0x1e25   : > { %v6573_v28 = vunpack.i.h.bf16 %v6571_v21  ;;  %v6572_v29 = vunpack.i.l.bf16 %v6571_v21  ;;  %v6324_v21 = vpack.c.bf16 %v5555_v26, %v5554_v24 }
0x1e27   : > { %v6303_v27 = vpack.c.bf16 %v6573_v28, %v6572_v29  ;;  %v4467_v30 = vpop.xlane.xlu0 %4466  ;;  %v5556_v28 = vld [vmem:[%s8657_s20 + $0xa0] sm:$0xff]  ;;  %v5557_v29 = vld [vmem:[%s8657_s20 + $0xa8] sm:$0xff] }
0x1e28   : > { %6651 = vrcp.f32 %v4467_v30  ;;  %v6576_v31 = vpop.permute.xlu1 %6575  ;;  %v5558_v30 = vld [vmem:[%s8657_s20 + $0xb0] sm:$0xff] }
0x1e29   : > { %6304 = vmatpush3.bf16.msra.mxu0 %v6303_v27  ;;  %v6578_v38 = vunpack.i.h.bf16 %v6576_v31  ;;  %v6577_v44 = vunpack.i.l.bf16 %v6576_v31  ;;  %v6327_v27 = vpack.c.bf16 %v5557_v29, %v5556_v28 }
0x1e2a   : > { %6308 = vmatprep.subr.bf16.mxu0 %v7100_v10 }
0x1e2b   : > { %v6648_v20 = vpop.eup %6647  ;;  %v6566_v33 = vpop.permute.xlu0 %6565  ;;  %v6306_v39 = vpack.c.bf16 %v6578_v38, %v6577_v44  ;;  %v5564_v44 = vld [vmem:[%s8657_s20 + $0xe0] sm:$0xff] }
0x1e2c   : > { %v4474_v34 = vmul.f32 %v6648_v20, %v6642_v12  ;;  %v6568_v35 = vunpack.i.h.bf16 %v6566_v33  ;;  %v6567_v36 = vunpack.i.l.bf16 %v6566_v33  ;;  %v6650_v37 = vpop.eup %6649  ;;  %v4916_v12 = vld [vmem:[#allocation17 + $0x20] sm:$0xff]  ;;  %v5559_v20 = vld [vmem:[%s8657_s20 + $0xb8] sm:$0xff] }
0x1e2d   : > { %v4473_v48 = vmul.f32 %v6650_v37, %v6640_v11  ;;  %v6315_v17 = vpack.c.bf16 %v4917_v14, %v4916_v12  ;;  %v6330_v31 = vpack.c.bf16 %v5559_v20, %v5558_v30  ;;  %v5560_v33 = vld [vmem:[%s8657_s20 + $0xc0] sm:$0xff]  ;;  %v5563_v37 = vld [vmem:[%s8657_s20 + $0xd8] sm:$0xff] }
0x1e2e   : > { %v6300_v45 = vpack.c.bf16 %v6568_v35, %v6567_v36  ;;  %6087 = vmatmul.mubr.msk.f32.vlgmr.msra.gmra.mrb[28].mxu0 %vm1705_vm6, %v4474_v34  ;;  %v5561_v34 = vld [vmem:[%s8657_s20 + $0xc8] sm:$0xff]  ;;  %v5562_v36 = vld [vmem:[%s8657_s20 + $0xd0] sm:$0xff] }
0x1e2f   : > { %6104 = vmatprep.mubr.msk.f32.mxu0 %vm7101_vm1, %v7102_v13  ;;  %6310 = vmatpush3.bf16.msra.mxu0 %v6309_v54  ;;  %v6333_v35 = vpack.c.bf16 %v5561_v34, %v5560_v33  ;;  %v6336_v38 = vpack.c.bf16 %v5563_v37, %v5562_v36 }
0x1e30   : > { %6301 = vmatpush3.bf16.msra.mxu1 %v6300_v45  ;;  %6311 = vmatprep.subr.bf16.mxu0 %v7100_v10  ;;  %v5565_v45 = vld [vmem:[%s8657_s20 + $0xe8] sm:$0xff] }
0x1e31   : > { %6305 = vmatprep.subr.bf16.mxu1 %v7100_v10 }
0x1e32   : > { %v6652_v50 = vpop.eup %6651 }
0x1e33   : > { %6080 = vmatmul.mubr.msk.f32.vlgmr.msra.gmra.mrb[52].mxu1 %vm1705_vm6, %v4473_v48  ;;  %v4475_v51 = vmul.f32 %v6652_v50, %v6644_v18  ;;  %6313 = vmatpush3.bf16.msra.mxu0 %v6312_v46  ;;  %v4919_v18 = vld [vmem:[#allocation17 + $0x38] sm:$0xff]  ;;  %v6339_v48 = vpack.c.bf16 %v5565_v45, %v5564_v44 }
0x1e34   : > { %6307 = vmatpush3.bf16.msra.mxu1 %v6306_v39  ;;  %6093 = vmatprep.mubr.msk.f32.mxu1 %vm7101_vm1, %v7102_v13  ;;  %v5567_v46 = vld [vmem:[%s8657_s20 + $0xf8] sm:$0xff] }
0x1e35   : > { %6314 = vmatprep.subr.bf16.mxu1 %v7100_v10  ;;  %6320 = vmatprep.subr.bf16.mxu0 %v7100_v10 }
0x1e37   : > { %6094 = vmatmul.mubr.msk.f32.vlgmr.msra.gmra.mrb[54].mxu1 %vm1705_vm6, %v4475_v51 }
0x1e38   : > { %6115 = vmatprep.mubr.msk.f32.mxu1 %vm7101_vm1, %v7102_v13  ;;  %6316 = vmatpush3.bf16.msra.mxu1 %v6315_v17  ;;  %v5569_v17 = vld [vmem:[%s8663_s4] ss:$0 sm:$0xff]  ;;  %s5214_s4 = scalar_lea.sflag [#allocation7], %s7647_s21 }
0x1e39   : > { %6317 = vmatprep.subr.bf16.mxu1 %v7100_v10 }
0x1e97   : > { %v4551_v52 = vpop.f32.mrb[50].mxu1 }
0x1e98   : > { %v6074_v43 = vpop.f32.mrb[51].mxu1 }
0x1e99   : > { %v5548_v43 = vld [vmem:[#allocation10 + $0x5] ss:$0 sm:$0xff] }
0x1f01   : > { %v4709_v42 = vpop.f32.mrb[28].mxu0 }
0x1f02   : > { %4797 = vrot.lane.b32.xlu1 %v4709_v42, %s8652_s7  ;;  %v6088_v1 = vpop.f32.mrb[29].mxu0  ;;  %v6342_v42 = vpack.c.bf16 %v5567_v46, %v5566_v47 }
0x1f03   : > { %v5550_v1 = vld [vmem:[#allocation19 + $0x1] ss:$0 sm:$0xff] }
0x1f06   : > { %v4630_v57 = vpop.f32.mrb[52].mxu1 }
0x1f07   : > { %4793 = vrot.lane.b32.xlu0 %v4630_v57, %s8653_s16  ;;  %v6081_v58 = vpop.f32.mrb[53].mxu1 }
0x1f0a   : > { %v4788_v49 = vpop.f32.mrb[54].mxu1 }
0x1f0b   : > { %4801 = vrot.lane.b32.xlu0 %v4788_v49, %s8654_s13  ;;  %v6095_v59 = vpop.f32.mrb[55].mxu1  ;;  %s8667_s13 = sld [smem:[#allocation56_spill]] }
0x1f11   : > { %s8460_s10 = scalar_lea.hbm %s8667_s13, %s5574_s15 }
0x1f74   : > { %v4798_v60 = vpop.permute.xlu1 %4797 }
0x1f79   : > { %v4794_v41 = vpop.permute.xlu0 %4793 }
0x1f7a   : > { %v4804_v16 = vsel %vm1035_vm2, %v4551_v52, %v4794_v41 }
0x1f7b   : > { %v4805_v61 = vsel %vm1705_vm6, %v4804_v16, %v4798_v60  ;;  %v5568_v16 = vld [vmem:[#allocation20 + $0x1] ss:$0 sm:$0xff] }
0x1f7d   : > { %v4802_v62 = vpop.permute.xlu0 %4801 }
0x1f7e   : > { %v4806_v63 = vsel %vm1707_vm7, %v4805_v61, %v4802_v62 }
0x1f7f   : > { %v4807_v2 = vsel %vm8011_vm11, %v4806_v63, 0.0 }
0x1f80   : > { %6105 = vmatmul.mubr.msk.f32.vlgmr.msra.gmra.mrb[30].mxu0 %vm900_vm0, %v4807_v2 }
0x1f81   : > { %6150 = vmatprep.mubr.msk.f32.mxu0 %vm7101_vm1, %v7102_v13  ;;  %6322 = vmatpush3.bf16.msra.mxu0 %v6321_v25 }
0x1f82   : > { %6323 = vmatprep.subr.bf16.mxu0 %v7100_v10 }
0x1f85   : > { %6325 = vmatpush3.bf16.msra.mxu0 %v6324_v21 }
0x1f86   : > { %6326 = vmatprep.subr.bf16.mxu0 %v7100_v10 }
0x1f89   : > { %6328 = vmatpush3.bf16.msra.mxu0 %v6327_v27 }
0x1f8a   : > { %6329 = vmatprep.subr.bf16.mxu0 %v7100_v10 }
0x1f8d   : > { %6331 = vmatpush3.bf16.msra.mxu0 %v6330_v31 }
0x1f8e   : > { %6332 = vmatprep.subr.bf16.mxu0 %v7100_v10 }
0x1f91   : > { %6334 = vmatpush3.bf16.msra.mxu0 %v6333_v35 }
0x1f92   : > { %6335 = vmatprep.subr.bf16.mxu0 %v7100_v10 }
0x1f95   : > { %6337 = vmatpush3.bf16.msra.mxu0 %v6336_v38 }
0x1f96   : > { %6338 = vmatprep.subr.bf16.mxu0 %v7100_v10 }
0x1f99   : > { %6340 = vmatpush3.bf16.msra.mxu0 %v6339_v48 }
0x1f9a   : > { %6341 = vmatprep.subr.bf16.mxu0 %v7100_v10 }
0x1f9d   : > { %6343 = vmatpush3.bf16.msra.mxu0 %v6342_v42 }
0x2053   : > { %v4883_v4 = vpop.f32.mrb[30].mxu0 }
0x2054   : > { %v4884_v5 = vadd.f32 %v5546_v3, %v4883_v4  ;;  %v6106_v6 = vpop.f32.mrb[31].mxu0 }
0x2055   : > { %v5128_v6 = vld [vmem:[#allocation22] sm:$0xff] }
0x2056   : > { %v8374_v7 = vadd.f32 %v4884_v5, %v8221_v53  ;;  %v4918_v53 = vld [vmem:[#allocation17 + $0x30] sm:$0xff] }
0x2057   : > { %v6318_v19 = vpack.c.bf16 %v4919_v18, %v4918_v53 }
0x2058   : > { %v4888_v0 = vsel %vm900_vm0, %v8374_v7, 0.0 }
0x2059   : > { %4889 = vadd.xlane.f32.xlu1 %v4888_v0  ;;  %6319 = vmatpush3.bf16.msra.mxu1 %v6318_v19  ;;  %v5129_v0 = vld [vmem:[#allocation22 + $0x8] sm:$0xff] }
0x205a   : > { %6344 = vmatprep.subr.bf16.mxu1 %v7100_v10 }
0x20e6   : > { %v4890_v8 = vpop.xlane.xlu1 %4889 }
0x20e7   : > { %v4891_v9 = vmul.f32 0.03125, %v4890_v8  ;;  %v6345_v8 = vpack.c.bf16 %v5129_v0, %v5128_v6 }
0x20e9   : > { %v4892_v32 = vsub.f32 %v8374_v7, %v4891_v9  ;;  %v5130_v9 = vld [vmem:[#allocation22 + $0x10] sm:$0xff] }
0x20eb   : > { %v4893_v40 = vmul.f32 %v4892_v32, %v4892_v32 }
0x20ed   : > { %v4894_v11 = vsel %vm900_vm0, %v4893_v40, 0.0 }
0x20ee   : > { %4895 = vadd.xlane.f32.xlu0 %v4894_v11 }
0x217b   : > { %v4896_v50 = vpop.xlane.xlu0 %4895 }
0x217c   : > { %v4897_v39 = vmul.f32 0.03125, %v4896_v50 }
0x217e   : > { %v4898_v51 = vadd.f32 1e-12, %v4897_v39 }
0x2180   : > { %6653 = vrsqrt.f32 %v4898_v51 }
0x218a   : > { %v6654_v52 = vpop.eup %6653 }
0x218b   : > { %v4900_v55 = vmul.f32 %v6654_v52, %v4892_v32 }
0x218d   : > { %v4907_v54 = vmul.f32 %v5548_v43, %v4900_v55 }
0x218f   : > { %v4914_v56 = vadd.f32 %v5549_v15, %v4907_v54 }
0x2191   : > { %6116 = vmatmul.mubr.msk.f32.vlgmr.msra.gmra.mrb[56].mxu1 %vm900_vm0, %v4914_v56 }
0x2192   : > { %6161 = vmatprep.mubr.msk.f32.mxu1 %vm7101_vm1, %v7102_v13  ;;  %6346 = vmatpush3.bf16.msra.mxu1 %v6345_v8 }
0x2193   : > { %6347 = vmatprep.subr.bf16.mxu1 %v7100_v10  ;;  %v5570_v10 = vld [vmem:[%s8664_s19] ss:$0 sm:$0xff]  ;;  %s6995_s19 = scalar_lea.vmem %s6994_s5, 256 }
0x2194   : > { %p6997_p7 = scmp.lt.s32.totalorder %s6995_s19, %s6989_s28 }
0x2196   : > { %p6998_p5 = por %p6997_p7, %p6996_p4 }
0x2198   : > { %p6999_p6 = pnand %p6998_p5, %p6992_p9 }
0x2264   : > { %v4997_v57 = vpop.f32.mrb[56].mxu1 }
0x2265   : > { %v4998_v58 = vadd.f32 %v5550_v1, %v4997_v57  ;;  %v6117_v49 = vpop.f32.mrb[57].mxu1 }
0x2267   : > { %v5001_v59 = vmax.f32 %v4998_v58, 0.0 }
0x2269   : > { %6151 = vmatmul.mubr.f32.vlgmr.msra.gmra.mrb[32].mxu0 %v5001_v59 }
0x233c   : > { %v5085_v41 = vpop.f32.mrb[32].mxu0 }
0x233d   : > { %v5089_v13 = vadd.f32 %v5085_v41, %v8374_v7  ;;  %v6152_v60 = vpop.f32.mrb[33].mxu0  ;;  %v5131_v7 = vld [vmem:[#allocation22 + $0x18] sm:$0xff] }
0x233e   : > { %v6348_v32 = vpack.c.bf16 %v5131_v7, %v5130_v9 }
0x233f   : > { %v5098_v61 = vadd.f32 %v5568_v16, %v5089_v13 }
0x2340   : > { %6349 = vmatpush3.bf16.msra.mxu1 %v6348_v32 }
0x2341   : > { %v5101_v62 = vsel %vm900_vm0, %v5098_v61, 0.0 }
0x2342   : > { %5102 = vadd.xlane.f32.xlu0 %v5101_v62 }
0x23cf   : > { %v5103_v63 = vpop.xlane.xlu0 %5102 }
0x23d0   : > { %v5104_v2 = vmul.f32 0.03125, %v5103_v63 }
0x23d2   : > { %v5105_v3 = vsub.f32 %v5098_v61, %v5104_v2 }
0x23d4   : > { %v5106_v4 = vmul.f32 %v5105_v3, %v5105_v3 }
0x23d6   : > { %v5107_v5 = vsel %vm900_vm0, %v5106_v4, 0.0 }
0x23d7   : > { %5108 = vadd.xlane.f32.xlu1 %v5107_v5 }
0x2464   : > { %v5109_v40 = vpop.xlane.xlu1 %5108 }
0x2465   : > { %v5110_v11 = vmul.f32 0.03125, %v5109_v40 }
0x2467   : > { %v5111_v12 = vadd.f32 1e-12, %v5110_v11 }
0x2469   : > { %6655 = vrsqrt.f32 %v5111_v12 }
0x2473   : > { %v6656_v14 = vpop.eup %6655 }
0x2474   : > { %v5113_v53 = vmul.f32 %v6656_v14, %v5105_v3 }
0x2476   : > { %v5120_v18 = vmul.f32 %v5569_v17, %v5113_v53 }
0x2478   : > { %v5127_v19 = vadd.f32 %v5570_v10, %v5120_v18 }
0x247a   : > { %6162 = vmatmul.mubr.msk.f32.vlgmr.msra.gmra.mrb[58].mxu1 %vm900_vm0, %v5127_v19 }
0x254d   : > { %v5208_v23 = vpop.f32.mrb[58].mxu1 }
0x254e   : > { %v5209_v24 = vadd.f32 %v5571_v22, %v5208_v23  ;;  %v6163_v25 = vpop.f32.mrb[59].mxu1 }
0x2550   : > { %5212 = vst [vmem:[%s876_s17] sm:$0xff] %v5209_v24 }
0x2551   : > { %7002 = shalt.err (!%p6999_p6)
}
0x2552   : > { %s7003_s21 = scalar_lea.hbm %s8460_s10, 128  ;;  %s7007_s11 = scalar_lea.hbm %s8667_s13, 256 }
0x2553   : > { %p7004_p13 = scmp.ne.s32.totalorder %s8460_s10, %s7003_s21  ;;  %p7008_p2 = scmp.lt.u32.totalorder %s8460_s10, %s8667_s13 }
0x2554   : > { %p7009_p11 = scmp.lt.u32.totalorder %s7007_s11, %s7003_s21  ;;  %p7011_p10 = scmp.lt.u32.totalorder %s7003_s21, %s8460_s10 }
0x2555   : > { %p7005_p8 = pnand %p7004_p13, %p8668_p0 }
0x2556   : > { %p7010_p1 = por %p7009_p11, %p7008_p2 }
0x2557   : > { %p7006_p12 = pneg %p7005_p8 }
0x2558   : > { %p7012_p3 = por %p7011_p10, %p7010_p1 }
0x255a   : > { %p7013_p9 = pnand %p7012_p3, %p7006_p12 }
0x255c   : > { %7016 = shalt.err (!%p7013_p9)
}
0x255d   : > { %6390 = dma.vmem_to_hbm [thread:$0]  (%p8668_p0), %s8462_s26, 128, %s8460_s10, %s5214_s4  }
0x255e PF: > { %s5239_s17 = sand.u32 1, %s7069_s27   ;;  %p8669_p4 = scmp.ne.s32.totalorder %s8621_s8, 0 }
0x255f   : > { %p8670_p7 = scmp.ge.s32.totalorder %s7081_s1, 2  ;;  %s5240_s7 = scalar_lea.sflag [#allocation7], %s5239_s17 }
0x2561   : > { %p6428_p5 = pnand %p8670_p7, %p8669_p4 }
0x2563   : > { %7064 = dma.done.wait (!%p6428_p5), %s5240_s7, 128  }
0x2564   : > { %7066 = vsyncadd (!%p6428_p5), %s5240_s7, 4294967168  ;;  %p50_p6 = scmp.ge.s32.totalorder %s7532_s25, 4   ;;  %s8671_s27 = smov %s7073_s3 }
0x2565   : > { %s8672_s3 = smov %s7077_s29  ;;  %s8673_s29 = smov %s7544_s14 }
0x2566   : > { %s8674_s1 = smov %s7532_s25  ;;  %52 = sbr.rel (!%p50_p6) target bundleno = 49 (0x31), region = 218 }
0x256d   :  { %5245 = vsyncpa [#allocation6], 1 }
0x256e   :  { %5247 = vsyncpa [#allocation6 + $0x1], 1 }
0x256f   :  { %5248 = vsyncpa [#allocation9], 1 }
0x2570   :  { %5250 = vsyncpa [#allocation9 + $0x1], 1 }
0x2571   :  { %5251 = vsyncpa [#allocation12], 1 }
0x2572   :  { %5252 = vsyncpa [#allocation15], 1 }
0x2573   :  { %5253 = vsyncpa [#allocation18], 1 }
0x2574   :  { %5254 = vsyncpa [#allocation21], 1 }
0x2575   :  { %5255 = vsyncpa [#allocation7], 1 }
0x2576   :  { %5257 = vsyncpa [#allocation7 + $0x1], 1 }

</bundles_post_ra>
